<compile_context>
chip_gen: v7x
topology: tpu7x:2x2x1
jax: 0.10.0
libtpu: 0.0.40
codegen_flags: <defaults>
</compile_context>

<pallas_src>
import functools

import jax
import jax.numpy as jnp
from jax.experimental import pallas as pl
from jax.experimental.pallas import tpu as pltpu

LANE = 128


def _round_up(x, m):
    return ((x + m - 1) // m) * m


# --------------------------- fused multi-layer GRU kernel ---------------------------

def _make_encoder_kernel(num_layers, seq_len, batch, gate_pad):
    """Builds the fused GRU kernel.  gate_pad = per-gate lane width (>= hidden, mult of 128)."""
    P = gate_pad

    def kernel(*refs):
        # refs layout:
        #   gx0                      (S, B, 3P)  precomputed layer-0 input projection (+bias)
        #   layer 0:  whh (P,3P), bhh_n (1,P)
        #   layer l>0: wih (P,3P), bias_gx (1,3P), whh (P,3P), bhh_n (1,P)
        #   out: h_n (L, B, P)
        gx0_ref = refs[0]
        pos = 1
        layers = []
        for l in range(num_layers):
            if l == 0:
                whh_ref, bhhn_ref = refs[pos], refs[pos + 1]
                pos += 2
                layers.append((None, None, whh_ref, bhhn_ref))
            else:
                wih_ref, bgx_ref, whh_ref, bhhn_ref = refs[pos:pos + 4]
                pos += 4
                layers.append((wih_ref, bgx_ref, whh_ref, bhhn_ref))
        hn_ref = refs[pos]

        prev_seq = None  # previous layer's hidden states, list of (B, P) values (VMEM/vregs)
        for l, (wih_ref, bgx_ref, whh_ref, bhhn_ref) in enumerate(layers):
            # Input projections for every timestep: hoisted off the recurrent chain.
            if l > 0:
                gx = [
                    jnp.dot(prev_seq[t], wih_ref[...],
                            preferred_element_type=jnp.float32) + bgx_ref[...]
                    for t in range(seq_len)
                ]

            # Serial recurrence: only h @ W_hh + gate elementwise math on the critical path.
            h = jnp.zeros((batch, P), jnp.float32)
            cur_seq = []
            for t in range(seq_len):
                gx_t = gx0_ref[t] if l == 0 else gx[t]          # (B, 3P)
                gh = jnp.dot(h, whh_ref[...], preferred_element_type=jnp.float32)
                # PyTorch GRU gate order r, z, n; lane-aligned gate blocks of width P.
                r = jax.nn.sigmoid(gx_t[:, 0:P] + gh[:, 0:P])
                z = jax.nn.sigmoid(gx_t[:, P:2 * P] + gh[:, P:2 * P])
                n = jnp.tanh(gx_t[:, 2 * P:3 * P]
                             + r * (gh[:, 2 * P:3 * P] + bhhn_ref[...]))
                h = (1.0 - z) * n + z * h
                cur_seq.append(h)

            hn_ref[l, :, :] = h
            prev_seq = cur_seq

    return kernel


# --------------------------------- parameter prep ----------------------------------

def init_encoder_params(key, input_size, hidden_size, num_layers):
    """Deterministic GRU parameters in raw PyTorch layout: (W_ih, W_hh, b_ih, b_hh)."""
    params = []
    k = 1.0 / (hidden_size ** 0.5)
    for layer in range(num_layers):
        in_sz = input_size if layer == 0 else hidden_size
        key, k1, k2, k3, k4 = jax.random.split(key, 5)
        wih = jax.random.uniform(k1, (3 * hidden_size, in_sz), jnp.float32, -k, k)
        whh = jax.random.uniform(k2, (3 * hidden_size, hidden_size), jnp.float32, -k, k)
        bih = jax.random.uniform(k3, (3 * hidden_size,), jnp.float32, -k, k)
        bhh = jax.random.uniform(k4, (3 * hidden_size,), jnp.float32, -k, k)
        params.append((wih, whh, bih, bhh))
    return params


def prepare_kernel_params(raw_params, hidden_size):
    """Transpose + gate-align (pad each gate to 128 lanes) + pre-fold r/z biases."""
    H = hidden_size
    P = _round_up(max(H, LANE), LANE)
    prepared = []
    for l, (wih, whh, bih, bhh) in enumerate(raw_params):
        in_sz = wih.shape[1]
        rows_in = in_sz if l == 0 else P   # layer 0: multiplied against raw input in XLA
        wih_pad = jnp.zeros((rows_in, 3 * P), jnp.float32)
        whh_pad = jnp.zeros((P, 3 * P), jnp.float32)
        for g in range(3):
            wih_pad = wih_pad.at[:in_sz, g * P:g * P + H].set(wih[g * H:(g + 1) * H, :].T)
            whh_pad = whh_pad.at[:H, g * P:g * P + H].set(whh[g * H:(g + 1) * H, :].T)
        bias_gx = jnp.zeros((1, 3 * P), jnp.float32)
        bias_gx = bias_gx.at[0, 0:H].set(bih[0:H] + bhh[0:H])                    # r: fold b_hr
        bias_gx = bias_gx.at[0, P:P + H].set(bih[H:2 * H] + bhh[H:2 * H])        # z: fold b_hz
        bias_gx = bias_gx.at[0, 2 * P:2 * P + H].set(bih[2 * H:3 * H])           # n: b_in only
        bhh_n = jnp.zeros((1, P), jnp.float32).at[0, :H].set(bhh[2 * H:3 * H])   # b_hn stays inside
        prepared.append({"wih": wih_pad, "bias_gx": bias_gx, "whh": whh_pad, "bhh_n": bhh_n})
    return prepared


# -------------------------------------- Encoder -------------------------------------

@functools.partial(jax.jit, static_argnames=("hidden_size",))
def encoder_forward(images, kernel_params, hidden_size):
    """Pallas Encoder.forward: returns (h_n, sequence_features).

    images: (B, S, input_size)  -> get_features() passthrough (3-D input).
    h_n   : (num_layers, B, hidden_size)
    """
    sequence_features = images          # get_features: len(shape) != 5 -> return images
    B, S, I = images.shape
    L = len(kernel_params)
    P = kernel_params[0]["whh"].shape[0]

    # Layer-0 input projection hoisted out of the recurrence: one XLA matmul.
    p0 = kernel_params[0]
    gx0 = jnp.dot(images.reshape(B * S, I), p0["wih"]) + p0["bias_gx"][0]
    gx0 = gx0.reshape(B, S, 3 * P).transpose(1, 0, 2)        # time-major (S, B, 3P)

    flat_inputs = [gx0]
    for l, p in enumerate(kernel_params):
        if l > 0:
            flat_inputs += [p["wih"], p["bias_gx"]]
        flat_inputs += [p["whh"], p["bhh_n"]]

    hn_pad = pl.pallas_call(
        _make_encoder_kernel(L, S, B, P),
        out_shape=jax.ShapeDtypeStruct((L, B, P), jnp.float32),
        in_specs=[pl.BlockSpec(memory_space=pltpu.MemorySpace.VMEM)] * len(flat_inputs),
        out_specs=pl.BlockSpec(memory_space=pltpu.MemorySpace.VMEM),
    )(*flat_inputs)

    return hn_pad[:, :, :hidden_size], sequence_features


# --------------------------------- pure-JAX reference --------------------------------

def encoder_ref(images, raw_params):
    B = images.shape[0]
    seq = images
    h_ns = []
    for (wih, whh, bih, bhh) in raw_params:
        H = whh.shape[1]
        wihT, whhT = wih.T, whh.T

        def step(h, x_t, wihT=wihT, whhT=whhT, bih=bih, bhh=bhh, H=H):
            gx = x_t @ wihT + bih
            gh = h @ whhT + bhh
            r = jax.nn.sigmoid(gx[:, :H] + gh[:, :H])
            z = jax.nn.sigmoid(gx[:, H:2 * H] + gh[:, H:2 * H])
            n = jnp.tanh(gx[:, 2 * H:] + r * gh[:, 2 * H:])
            h_new = (1.0 - z) * n + z * h
            return h_new, h_new

        h0 = jnp.zeros((B, H), jnp.float32)
        h_last, ys = jax.lax.scan(step, h0, jnp.swapaxes(seq, 0, 1))
        seq = jnp.swapaxes(ys, 0, 1)
        h_ns.append(h_last)
    return jnp.stack(h_ns, axis=0), images


# -------------------------------------- main -----------------------------------------

if __name__ == "__main__":
    # Model hyperparameters (p.input_size, p.hidden_size, p.num_layers, p.dropout=0.0)
    batch, seq_len, input_size, hidden_size, num_layers = 2, 8, 32, 32, 2

    key = jax.random.PRNGKey(0)
    key, pkey, xkey = jax.random.split(key, 3)
    raw_params = init_encoder_params(pkey, input_size, hidden_size, num_layers)
    kernel_params = prepare_kernel_params(raw_params, hidden_size)

    images = jax.random.normal(xkey, (batch, seq_len, input_size), jnp.float32)

    h_n, feats = encoder_forward(images, kernel_params, hidden_size=hidden_size)
    h_n = jax.block_until_ready(h_n)
    feats = jax.block_until_ready(feats)

    # sanity check against pure-JAX GRU reference
    h_n_ref, feats_ref = encoder_ref(images, raw_params)
    assert h_n.shape == (num_layers, batch, hidden_size)
    assert feats.shape == images.shape
    max_err = float(jnp.max(jnp.abs(h_n - h_n_ref)))
    assert jnp.allclose(h_n, h_n_ref, atol=5e-5, rtol=5e-5), max_err
    assert jnp.allclose(feats, feats_ref)

    print("KERNEL_OK")
</pallas_src>

<mosaic_0001>
module attributes {stable_mosaic.version = 11 : i64} {
  func.func @kernel(%arg0: memref<8x2x384xf32, #tpu.memory_space<vmem>>, %arg1: memref<128x384xf32, #tpu.memory_space<vmem>>, %arg2: memref<1x128xf32, #tpu.memory_space<vmem>>, %arg3: memref<128x384xf32, #tpu.memory_space<vmem>>, %arg4: memref<1x384xf32, #tpu.memory_space<vmem>>, %arg5: memref<128x384xf32, #tpu.memory_space<vmem>>, %arg6: memref<1x128xf32, #tpu.memory_space<vmem>>, %arg7: memref<2x2x128xf32, #tpu.memory_space<vmem>>) attributes {dimension_semantics = [], scalar_prefetch = 0 : i64, scratch_operands = 0 : i64, tpu.core_type = #tpu.core_type<tc>} {
    %cst = arith.constant 0.000000e+00 : f32
    %0 = vector.broadcast %cst : f32 to vector<2x128xf32>
    %c0 = arith.constant 0 : index
    %c0_0 = arith.constant 0 : index
    %c0_1 = arith.constant 0 : index
    %1 = vector.load %arg0[%c0, %c0_0, %c0_1] : memref<8x2x384xf32, #tpu.memory_space<vmem>>, vector<1x2x384xf32>
    %2 = vector.shape_cast %1 : vector<1x2x384xf32> to vector<2x384xf32>
    %c0_2 = arith.constant 0 : index
    %c0_3 = arith.constant 0 : index
    %3 = vector.load %arg1[%c0_2, %c0_3] : memref<128x384xf32, #tpu.memory_space<vmem>>, vector<128x384xf32>
    %cst_4 = arith.constant dense<0.000000e+00> : vector<2x384xf32>
    %4 = tpu.matmul %0, %3, %cst_4 {dimension_numbers = #tpu.dot_dimension_numbers<[1], [0], [0], [1], [0, 0, 1, 1], [], []>} : vector<2x128xf32>, vector<128x384xf32>, vector<2x384xf32> -> vector<2x384xf32>
    %5 = vector.extract_strided_slice %2 {offsets = [0, 0], sizes = [2, 128], strides = [1, 1]} : vector<2x384xf32> to vector<2x128xf32>
    %6 = vector.extract_strided_slice %4 {offsets = [0, 0], sizes = [2, 128], strides = [1, 1]} : vector<2x384xf32> to vector<2x128xf32>
    %7 = arith.addf %5, %6 : vector<2x128xf32>
    %8 = arith.negf %7 : vector<2x128xf32>
    %9 = math.exp %8 : vector<2x128xf32>
    %cst_5 = arith.constant 1.000000e+00 : f32
    %10 = vector.broadcast %cst_5 : f32 to vector<2x128xf32>
    %11 = arith.addf %10, %9 : vector<2x128xf32>
    %12 = arith.divf %10, %11 : vector<2x128xf32>
    %13 = vector.extract_strided_slice %2 {offsets = [0, 128], sizes = [2, 128], strides = [1, 1]} : vector<2x384xf32> to vector<2x128xf32>
    %14 = vector.extract_strided_slice %4 {offsets = [0, 128], sizes = [2, 128], strides = [1, 1]} : vector<2x384xf32> to vector<2x128xf32>
    %15 = arith.addf %13, %14 : vector<2x128xf32>
    %16 = arith.negf %15 : vector<2x128xf32>
    %17 = math.exp %16 : vector<2x128xf32>
    %cst_6 = arith.constant 1.000000e+00 : f32
    %18 = vector.broadcast %cst_6 : f32 to vector<2x128xf32>
    %19 = arith.addf %18, %17 : vector<2x128xf32>
    %20 = arith.divf %18, %19 : vector<2x128xf32>
    %21 = vector.extract_strided_slice %2 {offsets = [0, 256], sizes = [2, 128], strides = [1, 1]} : vector<2x384xf32> to vector<2x128xf32>
    %22 = vector.extract_strided_slice %4 {offsets = [0, 256], sizes = [2, 128], strides = [1, 1]} : vector<2x384xf32> to vector<2x128xf32>
    %c0_7 = arith.constant 0 : index
    %c0_8 = arith.constant 0 : index
    %23 = vector.load %arg2[%c0_7, %c0_8] : memref<1x128xf32, #tpu.memory_space<vmem>>, vector<1x128xf32>
    %24 = vector.broadcast %23 : vector<1x128xf32> to vector<2x128xf32>
    %25 = arith.addf %22, %24 : vector<2x128xf32>
    %26 = arith.mulf %12, %25 : vector<2x128xf32>
    %27 = arith.addf %21, %26 : vector<2x128xf32>
    %28 = math.tanh %27 : vector<2x128xf32>
    %cst_9 = arith.constant 1.000000e+00 : f32
    %29 = vector.broadcast %cst_9 : f32 to vector<2x128xf32>
    %30 = arith.subf %29, %20 : vector<2x128xf32>
    %31 = arith.mulf %30, %28 : vector<2x128xf32>
    %32 = arith.mulf %20, %0 : vector<2x128xf32>
    %33 = arith.addf %31, %32 : vector<2x128xf32>
    %c1 = arith.constant 1 : index
    %c0_10 = arith.constant 0 : index
    %c0_11 = arith.constant 0 : index
    %34 = vector.load %arg0[%c1, %c0_10, %c0_11] : memref<8x2x384xf32, #tpu.memory_space<vmem>>, vector<1x2x384xf32>
    %35 = vector.shape_cast %34 : vector<1x2x384xf32> to vector<2x384xf32>
    %c0_12 = arith.constant 0 : index
    %c0_13 = arith.constant 0 : index
    %36 = vector.load %arg1[%c0_12, %c0_13] : memref<128x384xf32, #tpu.memory_space<vmem>>, vector<128x384xf32>
    %cst_14 = arith.constant dense<0.000000e+00> : vector<2x384xf32>
    %37 = tpu.matmul %33, %36, %cst_14 {dimension_numbers = #tpu.dot_dimension_numbers<[1], [0], [0], [1], [0, 0, 1, 1], [], []>} : vector<2x128xf32>, vector<128x384xf32>, vector<2x384xf32> -> vector<2x384xf32>
    %38 = vector.extract_strided_slice %35 {offsets = [0, 0], sizes = [2, 128], strides = [1, 1]} : vector<2x384xf32> to vector<2x128xf32>
    %39 = vector.extract_strided_slice %37 {offsets = [0, 0], sizes = [2, 128], strides = [1, 1]} : vector<2x384xf32> to vector<2x128xf32>
    %40 = arith.addf %38, %39 : vector<2x128xf32>
    %41 = arith.negf %40 : vector<2x128xf32>
    %42 = math.exp %41 : vector<2x128xf32>
    %cst_15 = arith.constant 1.000000e+00 : f32
    %43 = vector.broadcast %cst_15 : f32 to vector<2x128xf32>
    %44 = arith.addf %43, %42 : vector<2x128xf32>
    %45 = arith.divf %43, %44 : vector<2x128xf32>
    %46 = vector.extract_strided_slice %35 {offsets = [0, 128], sizes = [2, 128], strides = [1, 1]} : vector<2x384xf32> to vector<2x128xf32>
    %47 = vector.extract_strided_slice %37 {offsets = [0, 128], sizes = [2, 128], strides = [1, 1]} : vector<2x384xf32> to vector<2x128xf32>
    %48 = arith.addf %46, %47 : vector<2x128xf32>
    %49 = arith.negf %48 : vector<2x128xf32>
    %50 = math.exp %49 : vector<2x128xf32>
    %cst_16 = arith.constant 1.000000e+00 : f32
    %51 = vector.broadcast %cst_16 : f32 to vector<2x128xf32>
    %52 = arith.addf %51, %50 : vector<2x128xf32>
    %53 = arith.divf %51, %52 : vector<2x128xf32>
    %54 = vector.extract_strided_slice %35 {offsets = [0, 256], sizes = [2, 128], strides = [1, 1]} : vector<2x384xf32> to vector<2x128xf32>
    %55 = vector.extract_strided_slice %37 {offsets = [0, 256], sizes = [2, 128], strides = [1, 1]} : vector<2x384xf32> to vector<2x128xf32>
    %c0_17 = arith.constant 0 : index
    %c0_18 = arith.constant 0 : index
    %56 = vector.load %arg2[%c0_17, %c0_18] : memref<1x128xf32, #tpu.memory_space<vmem>>, vector<1x128xf32>
    %57 = vector.broadcast %56 : vector<1x128xf32> to vector<2x128xf32>
    %58 = arith.addf %55, %57 : vector<2x128xf32>
    %59 = arith.mulf %45, %58 : vector<2x128xf32>
    %60 = arith.addf %54, %59 : vector<2x128xf32>
    %61 = math.tanh %60 : vector<2x128xf32>
    %cst_19 = arith.constant 1.000000e+00 : f32
    %62 = vector.broadcast %cst_19 : f32 to vector<2x128xf32>
    %63 = arith.subf %62, %53 : vector<2x128xf32>
    %64 = arith.mulf %63, %61 : vector<2x128xf32>
    %65 = arith.mulf %53, %33 : vector<2x128xf32>
    %66 = arith.addf %64, %65 : vector<2x128xf32>
    %c2 = arith.constant 2 : index
    %c0_20 = arith.constant 0 : index
    %c0_21 = arith.constant 0 : index
    %67 = vector.load %arg0[%c2, %c0_20, %c0_21] : memref<8x2x384xf32, #tpu.memory_space<vmem>>, vector<1x2x384xf32>
    %68 = vector.shape_cast %67 : vector<1x2x384xf32> to vector<2x384xf32>
    %c0_22 = arith.constant 0 : index
    %c0_23 = arith.constant 0 : index
    %69 = vector.load %arg1[%c0_22, %c0_23] : memref<128x384xf32, #tpu.memory_space<vmem>>, vector<128x384xf32>
    %cst_24 = arith.constant dense<0.000000e+00> : vector<2x384xf32>
    %70 = tpu.matmul %66, %69, %cst_24 {dimension_numbers = #tpu.dot_dimension_numbers<[1], [0], [0], [1], [0, 0, 1, 1], [], []>} : vector<2x128xf32>, vector<128x384xf32>, vector<2x384xf32> -> vector<2x384xf32>
    %71 = vector.extract_strided_slice %68 {offsets = [0, 0], sizes = [2, 128], strides = [1, 1]} : vector<2x384xf32> to vector<2x128xf32>
    %72 = vector.extract_strided_slice %70 {offsets = [0, 0], sizes = [2, 128], strides = [1, 1]} : vector<2x384xf32> to vector<2x128xf32>
    %73 = arith.addf %71, %72 : vector<2x128xf32>
    %74 = arith.negf %73 : vector<2x128xf32>
    %75 = math.exp %74 : vector<2x128xf32>
    %cst_25 = arith.constant 1.000000e+00 : f32
    %76 = vector.broadcast %cst_25 : f32 to vector<2x128xf32>
    %77 = arith.addf %76, %75 : vector<2x128xf32>
    %78 = arith.divf %76, %77 : vector<2x128xf32>
    %79 = vector.extract_strided_slice %68 {offsets = [0, 128], sizes = [2, 128], strides = [1, 1]} : vector<2x384xf32> to vector<2x128xf32>
    %80 = vector.extract_strided_slice %70 {offsets = [0, 128], sizes = [2, 128], strides = [1, 1]} : vector<2x384xf32> to vector<2x128xf32>
    %81 = arith.addf %79, %80 : vector<2x128xf32>
    %82 = arith.negf %81 : vector<2x128xf32>
    %83 = math.exp %82 : vector<2x128xf32>
    %cst_26 = arith.constant 1.000000e+00 : f32
    %84 = vector.broadcast %cst_26 : f32 to vector<2x128xf32>
    %85 = arith.addf %84, %83 : vector<2x128xf32>
    %86 = arith.divf %84, %85 : vector<2x128xf32>
    %87 = vector.extract_strided_slice %68 {offsets = [0, 256], sizes = [2, 128], strides = [1, 1]} : vector<2x384xf32> to vector<2x128xf32>
    %88 = vector.extract_strided_slice %70 {offsets = [0, 256], sizes = [2, 128], strides = [1, 1]} : vector<2x384xf32> to vector<2x128xf32>
    %c0_27 = arith.constant 0 : index
    %c0_28 = arith.constant 0 : index
    %89 = vector.load %arg2[%c0_27, %c0_28] : memref<1x128xf32, #tpu.memory_space<vmem>>, vector<1x128xf32>
    %90 = vector.broadcast %89 : vector<1x128xf32> to vector<2x128xf32>
    %91 = arith.addf %88, %90 : vector<2x128xf32>
    %92 = arith.mulf %78, %91 : vector<2x128xf32>
    %93 = arith.addf %87, %92 : vector<2x128xf32>
    %94 = math.tanh %93 : vector<2x128xf32>
    %cst_29 = arith.constant 1.000000e+00 : f32
    %95 = vector.broadcast %cst_29 : f32 to vector<2x128xf32>
    %96 = arith.subf %95, %86 : vector<2x128xf32>
    %97 = arith.mulf %96, %94 : vector<2x128xf32>
    %98 = arith.mulf %86, %66 : vector<2x128xf32>
    %99 = arith.addf %97, %98 : vector<2x128xf32>
    %c3 = arith.constant 3 : index
    %c0_30 = arith.constant 0 : index
    %c0_31 = arith.constant 0 : index
    %100 = vector.load %arg0[%c3, %c0_30, %c0_31] : memref<8x2x384xf32, #tpu.memory_space<vmem>>, vector<1x2x384xf32>
    %101 = vector.shape_cast %100 : vector<1x2x384xf32> to vector<2x384xf32>
    %c0_32 = arith.constant 0 : index
    %c0_33 = arith.constant 0 : index
    %102 = vector.load %arg1[%c0_32, %c0_33] : memref<128x384xf32, #tpu.memory_space<vmem>>, vector<128x384xf32>
    %cst_34 = arith.constant dense<0.000000e+00> : vector<2x384xf32>
    %103 = tpu.matmul %99, %102, %cst_34 {dimension_numbers = #tpu.dot_dimension_numbers<[1], [0], [0], [1], [0, 0, 1, 1], [], []>} : vector<2x128xf32>, vector<128x384xf32>, vector<2x384xf32> -> vector<2x384xf32>
    %104 = vector.extract_strided_slice %101 {offsets = [0, 0], sizes = [2, 128], strides = [1, 1]} : vector<2x384xf32> to vector<2x128xf32>
    %105 = vector.extract_strided_slice %103 {offsets = [0, 0], sizes = [2, 128], strides = [1, 1]} : vector<2x384xf32> to vector<2x128xf32>
    %106 = arith.addf %104, %105 : vector<2x128xf32>
    %107 = arith.negf %106 : vector<2x128xf32>
    %108 = math.exp %107 : vector<2x128xf32>
    %cst_35 = arith.constant 1.000000e+00 : f32
    %109 = vector.broadcast %cst_35 : f32 to vector<2x128xf32>
    %110 = arith.addf %109, %108 : vector<2x128xf32>
    %111 = arith.divf %109, %110 : vector<2x128xf32>
    %112 = vector.extract_strided_slice %101 {offsets = [0, 128], sizes = [2, 128], strides = [1, 1]} : vector<2x384xf32> to vector<2x128xf32>
    %113 = vector.extract_strided_slice %103 {offsets = [0, 128], sizes = [2, 128], strides = [1, 1]} : vector<2x384xf32> to vector<2x128xf32>
    %114 = arith.addf %112, %113 : vector<2x128xf32>
    %115 = arith.negf %114 : vector<2x128xf32>
    %116 = math.exp %115 : vector<2x128xf32>
    %cst_36 = arith.constant 1.000000e+00 : f32
    %117 = vector.broadcast %cst_36 : f32 to vector<2x128xf32>
    %118 = arith.addf %117, %116 : vector<2x128xf32>
    %119 = arith.divf %117, %118 : vector<2x128xf32>
    %120 = vector.extract_strided_slice %101 {offsets = [0, 256], sizes = [2, 128], strides = [1, 1]} : vector<2x384xf32> to vector<2x128xf32>
    %121 = vector.extract_strided_slice %103 {offsets = [0, 256], sizes = [2, 128], strides = [1, 1]} : vector<2x384xf32> to vector<2x128xf32>
    %c0_37 = arith.constant 0 : index
    %c0_38 = arith.constant 0 : index
    %122 = vector.load %arg2[%c0_37, %c0_38] : memref<1x128xf32, #tpu.memory_space<vmem>>, vector<1x128xf32>
    %123 = vector.broadcast %122 : vector<1x128xf32> to vector<2x128xf32>
    %124 = arith.addf %121, %123 : vector<2x128xf32>
    %125 = arith.mulf %111, %124 : vector<2x128xf32>
    %126 = arith.addf %120, %125 : vector<2x128xf32>
    %127 = math.tanh %126 : vector<2x128xf32>
    %cst_39 = arith.constant 1.000000e+00 : f32
    %128 = vector.broadcast %cst_39 : f32 to vector<2x128xf32>
    %129 = arith.subf %128, %119 : vector<2x128xf32>
    %130 = arith.mulf %129, %127 : vector<2x128xf32>
    %131 = arith.mulf %119, %99 : vector<2x128xf32>
    %132 = arith.addf %130, %131 : vector<2x128xf32>
    %c4 = arith.constant 4 : index
    %c0_40 = arith.constant 0 : index
    %c0_41 = arith.constant 0 : index
    %133 = vector.load %arg0[%c4, %c0_40, %c0_41] : memref<8x2x384xf32, #tpu.memory_space<vmem>>, vector<1x2x384xf32>
    %134 = vector.shape_cast %133 : vector<1x2x384xf32> to vector<2x384xf32>
    %c0_42 = arith.constant 0 : index
    %c0_43 = arith.constant 0 : index
    %135 = vector.load %arg1[%c0_42, %c0_43] : memref<128x384xf32, #tpu.memory_space<vmem>>, vector<128x384xf32>
    %cst_44 = arith.constant dense<0.000000e+00> : vector<2x384xf32>
    %136 = tpu.matmul %132, %135, %cst_44 {dimension_numbers = #tpu.dot_dimension_numbers<[1], [0], [0], [1], [0, 0, 1, 1], [], []>} : vector<2x128xf32>, vector<128x384xf32>, vector<2x384xf32> -> vector<2x384xf32>
    %137 = vector.extract_strided_slice %134 {offsets = [0, 0], sizes = [2, 128], strides = [1, 1]} : vector<2x384xf32> to vector<2x128xf32>
    %138 = vector.extract_strided_slice %136 {offsets = [0, 0], sizes = [2, 128], strides = [1, 1]} : vector<2x384xf32> to vector<2x128xf32>
    %139 = arith.addf %137, %138 : vector<2x128xf32>
    %140 = arith.negf %139 : vector<2x128xf32>
    %141 = math.exp %140 : vector<2x128xf32>
    %cst_45 = arith.constant 1.000000e+00 : f32
    %142 = vector.broadcast %cst_45 : f32 to vector<2x128xf32>
    %143 = arith.addf %142, %141 : vector<2x128xf32>
    %144 = arith.divf %142, %143 : vector<2x128xf32>
    %145 = vector.extract_strided_slice %134 {offsets = [0, 128], sizes = [2, 128], strides = [1, 1]} : vector<2x384xf32> to vector<2x128xf32>
    %146 = vector.extract_strided_slice %136 {offsets = [0, 128], sizes = [2, 128], strides = [1, 1]} : vector<2x384xf32> to vector<2x128xf32>
    %147 = arith.addf %145, %146 : vector<2x128xf32>
    %148 = arith.negf %147 : vector<2x128xf32>
    %149 = math.exp %148 : vector<2x128xf32>
    %cst_46 = arith.constant 1.000000e+00 : f32
    %150 = vector.broadcast %cst_46 : f32 to vector<2x128xf32>
    %151 = arith.addf %150, %149 : vector<2x128xf32>
    %152 = arith.divf %150, %151 : vector<2x128xf32>
    %153 = vector.extract_strided_slice %134 {offsets = [0, 256], sizes = [2, 128], strides = [1, 1]} : vector<2x384xf32> to vector<2x128xf32>
    %154 = vector.extract_strided_slice %136 {offsets = [0, 256], sizes = [2, 128], strides = [1, 1]} : vector<2x384xf32> to vector<2x128xf32>
    %c0_47 = arith.constant 0 : index
    %c0_48 = arith.constant 0 : index
    %155 = vector.load %arg2[%c0_47, %c0_48] : memref<1x128xf32, #tpu.memory_space<vmem>>, vector<1x128xf32>
    %156 = vector.broadcast %155 : vector<1x128xf32> to vector<2x128xf32>
    %157 = arith.addf %154, %156 : vector<2x128xf32>
    %158 = arith.mulf %144, %157 : vector<2x128xf32>
    %159 = arith.addf %153, %158 : vector<2x128xf32>
    %160 = math.tanh %159 : vector<2x128xf32>
    %cst_49 = arith.constant 1.000000e+00 : f32
    %161 = vector.broadcast %cst_49 : f32 to vector<2x128xf32>
    %162 = arith.subf %161, %152 : vector<2x128xf32>
    %163 = arith.mulf %162, %160 : vector<2x128xf32>
    %164 = arith.mulf %152, %132 : vector<2x128xf32>
    %165 = arith.addf %163, %164 : vector<2x128xf32>
    %c5 = arith.constant 5 : index
    %c0_50 = arith.constant 0 : index
    %c0_51 = arith.constant 0 : index
    %166 = vector.load %arg0[%c5, %c0_50, %c0_51] : memref<8x2x384xf32, #tpu.memory_space<vmem>>, vector<1x2x384xf32>
    %167 = vector.shape_cast %166 : vector<1x2x384xf32> to vector<2x384xf32>
    %c0_52 = arith.constant 0 : index
    %c0_53 = arith.constant 0 : index
    %168 = vector.load %arg1[%c0_52, %c0_53] : memref<128x384xf32, #tpu.memory_space<vmem>>, vector<128x384xf32>
    %cst_54 = arith.constant dense<0.000000e+00> : vector<2x384xf32>
    %169 = tpu.matmul %165, %168, %cst_54 {dimension_numbers = #tpu.dot_dimension_numbers<[1], [0], [0], [1], [0, 0, 1, 1], [], []>} : vector<2x128xf32>, vector<128x384xf32>, vector<2x384xf32> -> vector<2x384xf32>
    %170 = vector.extract_strided_slice %167 {offsets = [0, 0], sizes = [2, 128], strides = [1, 1]} : vector<2x384xf32> to vector<2x128xf32>
    %171 = vector.extract_strided_slice %169 {offsets = [0, 0], sizes = [2, 128], strides = [1, 1]} : vector<2x384xf32> to vector<2x128xf32>
    %172 = arith.addf %170, %171 : vector<2x128xf32>
    %173 = arith.negf %172 : vector<2x128xf32>
    %174 = math.exp %173 : vector<2x128xf32>
    %cst_55 = arith.constant 1.000000e+00 : f32
    %175 = vector.broadcast %cst_55 : f32 to vector<2x128xf32>
    %176 = arith.addf %175, %174 : vector<2x128xf32>
    %177 = arith.divf %175, %176 : vector<2x128xf32>
    %178 = vector.extract_strided_slice %167 {offsets = [0, 128], sizes = [2, 128], strides = [1, 1]} : vector<2x384xf32> to vector<2x128xf32>
    %179 = vector.extract_strided_slice %169 {offsets = [0, 128], sizes = [2, 128], strides = [1, 1]} : vector<2x384xf32> to vector<2x128xf32>
    %180 = arith.addf %178, %179 : vector<2x128xf32>
    %181 = arith.negf %180 : vector<2x128xf32>
    %182 = math.exp %181 : vector<2x128xf32>
    %cst_56 = arith.constant 1.000000e+00 : f32
    %183 = vector.broadcast %cst_56 : f32 to vector<2x128xf32>
    %184 = arith.addf %183, %182 : vector<2x128xf32>
    %185 = arith.divf %183, %184 : vector<2x128xf32>
    %186 = vector.extract_strided_slice %167 {offsets = [0, 256], sizes = [2, 128], strides = [1, 1]} : vector<2x384xf32> to vector<2x128xf32>
    %187 = vector.extract_strided_slice %169 {offsets = [0, 256], sizes = [2, 128], strides = [1, 1]} : vector<2x384xf32> to vector<2x128xf32>
    %c0_57 = arith.constant 0 : index
    %c0_58 = arith.constant 0 : index
    %188 = vector.load %arg2[%c0_57, %c0_58] : memref<1x128xf32, #tpu.memory_space<vmem>>, vector<1x128xf32>
    %189 = vector.broadcast %188 : vector<1x128xf32> to vector<2x128xf32>
    %190 = arith.addf %187, %189 : vector<2x128xf32>
    %191 = arith.mulf %177, %190 : vector<2x128xf32>
    %192 = arith.addf %186, %191 : vector<2x128xf32>
    %193 = math.tanh %192 : vector<2x128xf32>
    %cst_59 = arith.constant 1.000000e+00 : f32
    %194 = vector.broadcast %cst_59 : f32 to vector<2x128xf32>
    %195 = arith.subf %194, %185 : vector<2x128xf32>
    %196 = arith.mulf %195, %193 : vector<2x128xf32>
    %197 = arith.mulf %185, %165 : vector<2x128xf32>
    %198 = arith.addf %196, %197 : vector<2x128xf32>
    %c6 = arith.constant 6 : index
    %c0_60 = arith.constant 0 : index
    %c0_61 = arith.constant 0 : index
    %199 = vector.load %arg0[%c6, %c0_60, %c0_61] : memref<8x2x384xf32, #tpu.memory_space<vmem>>, vector<1x2x384xf32>
    %200 = vector.shape_cast %199 : vector<1x2x384xf32> to vector<2x384xf32>
    %c0_62 = arith.constant 0 : index
    %c0_63 = arith.constant 0 : index
    %201 = vector.load %arg1[%c0_62, %c0_63] : memref<128x384xf32, #tpu.memory_space<vmem>>, vector<128x384xf32>
    %cst_64 = arith.constant dense<0.000000e+00> : vector<2x384xf32>
    %202 = tpu.matmul %198, %201, %cst_64 {dimension_numbers = #tpu.dot_dimension_numbers<[1], [0], [0], [1], [0, 0, 1, 1], [], []>} : vector<2x128xf32>, vector<128x384xf32>, vector<2x384xf32> -> vector<2x384xf32>
    %203 = vector.extract_strided_slice %200 {offsets = [0, 0], sizes = [2, 128], strides = [1, 1]} : vector<2x384xf32> to vector<2x128xf32>
    %204 = vector.extract_strided_slice %202 {offsets = [0, 0], sizes = [2, 128], strides = [1, 1]} : vector<2x384xf32> to vector<2x128xf32>
    %205 = arith.addf %203, %204 : vector<2x128xf32>
    %206 = arith.negf %205 : vector<2x128xf32>
    %207 = math.exp %206 : vector<2x128xf32>
    %cst_65 = arith.constant 1.000000e+00 : f32
    %208 = vector.broadcast %cst_65 : f32 to vector<2x128xf32>
    %209 = arith.addf %208, %207 : vector<2x128xf32>
    %210 = arith.divf %208, %209 : vector<2x128xf32>
    %211 = vector.extract_strided_slice %200 {offsets = [0, 128], sizes = [2, 128], strides = [1, 1]} : vector<2x384xf32> to vector<2x128xf32>
    %212 = vector.extract_strided_slice %202 {offsets = [0, 128], sizes = [2, 128], strides = [1, 1]} : vector<2x384xf32> to vector<2x128xf32>
    %213 = arith.addf %211, %212 : vector<2x128xf32>
    %214 = arith.negf %213 : vector<2x128xf32>
    %215 = math.exp %214 : vector<2x128xf32>
    %cst_66 = arith.constant 1.000000e+00 : f32
    %216 = vector.broadcast %cst_66 : f32 to vector<2x128xf32>
    %217 = arith.addf %216, %215 : vector<2x128xf32>
    %218 = arith.divf %216, %217 : vector<2x128xf32>
    %219 = vector.extract_strided_slice %200 {offsets = [0, 256], sizes = [2, 128], strides = [1, 1]} : vector<2x384xf32> to vector<2x128xf32>
    %220 = vector.extract_strided_slice %202 {offsets = [0, 256], sizes = [2, 128], strides = [1, 1]} : vector<2x384xf32> to vector<2x128xf32>
    %c0_67 = arith.constant 0 : index
    %c0_68 = arith.constant 0 : index
    %221 = vector.load %arg2[%c0_67, %c0_68] : memref<1x128xf32, #tpu.memory_space<vmem>>, vector<1x128xf32>
    %222 = vector.broadcast %221 : vector<1x128xf32> to vector<2x128xf32>
    %223 = arith.addf %220, %222 : vector<2x128xf32>
    %224 = arith.mulf %210, %223 : vector<2x128xf32>
    %225 = arith.addf %219, %224 : vector<2x128xf32>
    %226 = math.tanh %225 : vector<2x128xf32>
    %cst_69 = arith.constant 1.000000e+00 : f32
    %227 = vector.broadcast %cst_69 : f32 to vector<2x128xf32>
    %228 = arith.subf %227, %218 : vector<2x128xf32>
    %229 = arith.mulf %228, %226 : vector<2x128xf32>
    %230 = arith.mulf %218, %198 : vector<2x128xf32>
    %231 = arith.addf %229, %230 : vector<2x128xf32>
    %c7 = arith.constant 7 : index
    %c0_70 = arith.constant 0 : index
    %c0_71 = arith.constant 0 : index
    %232 = vector.load %arg0[%c7, %c0_70, %c0_71] : memref<8x2x384xf32, #tpu.memory_space<vmem>>, vector<1x2x384xf32>
    %233 = vector.shape_cast %232 : vector<1x2x384xf32> to vector<2x384xf32>
    %c0_72 = arith.constant 0 : index
    %c0_73 = arith.constant 0 : index
    %234 = vector.load %arg1[%c0_72, %c0_73] : memref<128x384xf32, #tpu.memory_space<vmem>>, vector<128x384xf32>
    %cst_74 = arith.constant dense<0.000000e+00> : vector<2x384xf32>
    %235 = tpu.matmul %231, %234, %cst_74 {dimension_numbers = #tpu.dot_dimension_numbers<[1], [0], [0], [1], [0, 0, 1, 1], [], []>} : vector<2x128xf32>, vector<128x384xf32>, vector<2x384xf32> -> vector<2x384xf32>
    %236 = vector.extract_strided_slice %233 {offsets = [0, 0], sizes = [2, 128], strides = [1, 1]} : vector<2x384xf32> to vector<2x128xf32>
    %237 = vector.extract_strided_slice %235 {offsets = [0, 0], sizes = [2, 128], strides = [1, 1]} : vector<2x384xf32> to vector<2x128xf32>
    %238 = arith.addf %236, %237 : vector<2x128xf32>
    %239 = arith.negf %238 : vector<2x128xf32>
    %240 = math.exp %239 : vector<2x128xf32>
    %cst_75 = arith.constant 1.000000e+00 : f32
    %241 = vector.broadcast %cst_75 : f32 to vector<2x128xf32>
    %242 = arith.addf %241, %240 : vector<2x128xf32>
    %243 = arith.divf %241, %242 : vector<2x128xf32>
    %244 = vector.extract_strided_slice %233 {offsets = [0, 128], sizes = [2, 128], strides = [1, 1]} : vector<2x384xf32> to vector<2x128xf32>
    %245 = vector.extract_strided_slice %235 {offsets = [0, 128], sizes = [2, 128], strides = [1, 1]} : vector<2x384xf32> to vector<2x128xf32>
    %246 = arith.addf %244, %245 : vector<2x128xf32>
    %247 = arith.negf %246 : vector<2x128xf32>
    %248 = math.exp %247 : vector<2x128xf32>
    %cst_76 = arith.constant 1.000000e+00 : f32
    %249 = vector.broadcast %cst_76 : f32 to vector<2x128xf32>
    %250 = arith.addf %249, %248 : vector<2x128xf32>
    %251 = arith.divf %249, %250 : vector<2x128xf32>
    %252 = vector.extract_strided_slice %233 {offsets = [0, 256], sizes = [2, 128], strides = [1, 1]} : vector<2x384xf32> to vector<2x128xf32>
    %253 = vector.extract_strided_slice %235 {offsets = [0, 256], sizes = [2, 128], strides = [1, 1]} : vector<2x384xf32> to vector<2x128xf32>
    %c0_77 = arith.constant 0 : index
    %c0_78 = arith.constant 0 : index
    %254 = vector.load %arg2[%c0_77, %c0_78] : memref<1x128xf32, #tpu.memory_space<vmem>>, vector<1x128xf32>
    %255 = vector.broadcast %254 : vector<1x128xf32> to vector<2x128xf32>
    %256 = arith.addf %253, %255 : vector<2x128xf32>
    %257 = arith.mulf %243, %256 : vector<2x128xf32>
    %258 = arith.addf %252, %257 : vector<2x128xf32>
    %259 = math.tanh %258 : vector<2x128xf32>
    %cst_79 = arith.constant 1.000000e+00 : f32
    %260 = vector.broadcast %cst_79 : f32 to vector<2x128xf32>
    %261 = arith.subf %260, %251 : vector<2x128xf32>
    %262 = arith.mulf %261, %259 : vector<2x128xf32>
    %263 = arith.mulf %251, %231 : vector<2x128xf32>
    %264 = arith.addf %262, %263 : vector<2x128xf32>
    %c0_80 = arith.constant 0 : index
    %c0_81 = arith.constant 0 : index
    %c0_82 = arith.constant 0 : index
    %265 = vector.load %arg7[%c0_80, %c0_81, %c0_82] : memref<2x2x128xf32, #tpu.memory_space<vmem>>, vector<1x2x128xf32>
    %266 = vector.shape_cast %265 : vector<1x2x128xf32> to vector<2x128xf32>
    %267 = vector.shape_cast %264 : vector<2x128xf32> to vector<1x2x128xf32>
    tpu.vector_store %arg7[%c0_80, %c0_81, %c0_82], %267 {strides = array<i32>} : memref<2x2x128xf32, #tpu.memory_space<vmem>>, vector<1x2x128xf32>,
    %c0_83 = arith.constant 0 : index
    %c0_84 = arith.constant 0 : index
    %268 = vector.load %arg3[%c0_83, %c0_84] : memref<128x384xf32, #tpu.memory_space<vmem>>, vector<128x384xf32>
    %cst_85 = arith.constant dense<0.000000e+00> : vector<2x384xf32>
    %269 = tpu.matmul %33, %268, %cst_85 {dimension_numbers = #tpu.dot_dimension_numbers<[1], [0], [0], [1], [0, 0, 1, 1], [], []>} : vector<2x128xf32>, vector<128x384xf32>, vector<2x384xf32> -> vector<2x384xf32>
    %c0_86 = arith.constant 0 : index
    %c0_87 = arith.constant 0 : index
    %270 = vector.load %arg4[%c0_86, %c0_87] : memref<1x384xf32, #tpu.memory_space<vmem>>, vector<1x384xf32>
    %271 = vector.broadcast %270 : vector<1x384xf32> to vector<2x384xf32>
    %272 = arith.addf %269, %271 : vector<2x384xf32>
    %c0_88 = arith.constant 0 : index
    %c0_89 = arith.constant 0 : index
    %273 = vector.load %arg3[%c0_88, %c0_89] : memref<128x384xf32, #tpu.memory_space<vmem>>, vector<128x384xf32>
    %cst_90 = arith.constant dense<0.000000e+00> : vector<2x384xf32>
    %274 = tpu.matmul %66, %273, %cst_90 {dimension_numbers = #tpu.dot_dimension_numbers<[1], [0], [0], [1], [0, 0, 1, 1], [], []>} : vector<2x128xf32>, vector<128x384xf32>, vector<2x384xf32> -> vector<2x384xf32>
    %c0_91 = arith.constant 0 : index
    %c0_92 = arith.constant 0 : index
    %275 = vector.load %arg4[%c0_91, %c0_92] : memref<1x384xf32, #tpu.memory_space<vmem>>, vector<1x384xf32>
    %276 = vector.broadcast %275 : vector<1x384xf32> to vector<2x384xf32>
    %277 = arith.addf %274, %276 : vector<2x384xf32>
    %c0_93 = arith.constant 0 : index
    %c0_94 = arith.constant 0 : index
    %278 = vector.load %arg3[%c0_93, %c0_94] : memref<128x384xf32, #tpu.memory_space<vmem>>, vector<128x384xf32>
    %cst_95 = arith.constant dense<0.000000e+00> : vector<2x384xf32>
    %279 = tpu.matmul %99, %278, %cst_95 {dimension_numbers = #tpu.dot_dimension_numbers<[1], [0], [0], [1], [0, 0, 1, 1], [], []>} : vector<2x128xf32>, vector<128x384xf32>, vector<2x384xf32> -> vector<2x384xf32>
    %c0_96 = arith.constant 0 : index
    %c0_97 = arith.constant 0 : index
    %280 = vector.load %arg4[%c0_96, %c0_97] : memref<1x384xf32, #tpu.memory_space<vmem>>, vector<1x384xf32>
    %281 = vector.broadcast %280 : vector<1x384xf32> to vector<2x384xf32>
    %282 = arith.addf %279, %281 : vector<2x384xf32>
    %c0_98 = arith.constant 0 : index
    %c0_99 = arith.constant 0 : index
    %283 = vector.load %arg3[%c0_98, %c0_99] : memref<128x384xf32, #tpu.memory_space<vmem>>, vector<128x384xf32>
    %cst_100 = arith.constant dense<0.000000e+00> : vector<2x384xf32>
    %284 = tpu.matmul %132, %283, %cst_100 {dimension_numbers = #tpu.dot_dimension_numbers<[1], [0], [0], [1], [0, 0, 1, 1], [], []>} : vector<2x128xf32>, vector<128x384xf32>, vector<2x384xf32> -> vector<2x384xf32>
    %c0_101 = arith.constant 0 : index
    %c0_102 = arith.constant 0 : index
    %285 = vector.load %arg4[%c0_101, %c0_102] : memref<1x384xf32, #tpu.memory_space<vmem>>, vector<1x384xf32>
    %286 = vector.broadcast %285 : vector<1x384xf32> to vector<2x384xf32>
    %287 = arith.addf %284, %286 : vector<2x384xf32>
    %c0_103 = arith.constant 0 : index
    %c0_104 = arith.constant 0 : index
    %288 = vector.load %arg3[%c0_103, %c0_104] : memref<128x384xf32, #tpu.memory_space<vmem>>, vector<128x384xf32>
    %cst_105 = arith.constant dense<0.000000e+00> : vector<2x384xf32>
    %289 = tpu.matmul %165, %288, %cst_105 {dimension_numbers = #tpu.dot_dimension_numbers<[1], [0], [0], [1], [0, 0, 1, 1], [], []>} : vector<2x128xf32>, vector<128x384xf32>, vector<2x384xf32> -> vector<2x384xf32>
    %c0_106 = arith.constant 0 : index
    %c0_107 = arith.constant 0 : index
    %290 = vector.load %arg4[%c0_106, %c0_107] : memref<1x384xf32, #tpu.memory_space<vmem>>, vector<1x384xf32>
    %291 = vector.broadcast %290 : vector<1x384xf32> to vector<2x384xf32>
    %292 = arith.addf %289, %291 : vector<2x384xf32>
    %c0_108 = arith.constant 0 : index
    %c0_109 = arith.constant 0 : index
    %293 = vector.load %arg3[%c0_108, %c0_109] : memref<128x384xf32, #tpu.memory_space<vmem>>, vector<128x384xf32>
    %cst_110 = arith.constant dense<0.000000e+00> : vector<2x384xf32>
    %294 = tpu.matmul %198, %293, %cst_110 {dimension_numbers = #tpu.dot_dimension_numbers<[1], [0], [0], [1], [0, 0, 1, 1], [], []>} : vector<2x128xf32>, vector<128x384xf32>, vector<2x384xf32> -> vector<2x384xf32>
    %c0_111 = arith.constant 0 : index
    %c0_112 = arith.constant 0 : index
    %295 = vector.load %arg4[%c0_111, %c0_112] : memref<1x384xf32, #tpu.memory_space<vmem>>, vector<1x384xf32>
    %296 = vector.broadcast %295 : vector<1x384xf32> to vector<2x384xf32>
    %297 = arith.addf %294, %296 : vector<2x384xf32>
    %c0_113 = arith.constant 0 : index
    %c0_114 = arith.constant 0 : index
    %298 = vector.load %arg3[%c0_113, %c0_114] : memref<128x384xf32, #tpu.memory_space<vmem>>, vector<128x384xf32>
    %cst_115 = arith.constant dense<0.000000e+00> : vector<2x384xf32>
    %299 = tpu.matmul %231, %298, %cst_115 {dimension_numbers = #tpu.dot_dimension_numbers<[1], [0], [0], [1], [0, 0, 1, 1], [], []>} : vector<2x128xf32>, vector<128x384xf32>, vector<2x384xf32> -> vector<2x384xf32>
    %c0_116 = arith.constant 0 : index
    %c0_117 = arith.constant 0 : index
    %300 = vector.load %arg4[%c0_116, %c0_117] : memref<1x384xf32, #tpu.memory_space<vmem>>, vector<1x384xf32>
    %301 = vector.broadcast %300 : vector<1x384xf32> to vector<2x384xf32>
    %302 = arith.addf %299, %301 : vector<2x384xf32>
    %c0_118 = arith.constant 0 : index
    %c0_119 = arith.constant 0 : index
    %303 = vector.load %arg3[%c0_118, %c0_119] : memref<128x384xf32, #tpu.memory_space<vmem>>, vector<128x384xf32>
    %cst_120 = arith.constant dense<0.000000e+00> : vector<2x384xf32>
    %304 = tpu.matmul %264, %303, %cst_120 {dimension_numbers = #tpu.dot_dimension_numbers<[1], [0], [0], [1], [0, 0, 1, 1], [], []>} : vector<2x128xf32>, vector<128x384xf32>, vector<2x384xf32> -> vector<2x384xf32>
    %c0_121 = arith.constant 0 : index
    %c0_122 = arith.constant 0 : index
    %305 = vector.load %arg4[%c0_121, %c0_122] : memref<1x384xf32, #tpu.memory_space<vmem>>, vector<1x384xf32>
    %306 = vector.broadcast %305 : vector<1x384xf32> to vector<2x384xf32>
    %307 = arith.addf %304, %306 : vector<2x384xf32>
    %cst_123 = arith.constant 0.000000e+00 : f32
    %308 = vector.broadcast %cst_123 : f32 to vector<2x128xf32>
    %c0_124 = arith.constant 0 : index
    %c0_125 = arith.constant 0 : index
    %309 = vector.load %arg5[%c0_124, %c0_125] : memref<128x384xf32, #tpu.memory_space<vmem>>, vector<128x384xf32>
    %cst_126 = arith.constant dense<0.000000e+00> : vector<2x384xf32>
    %310 = tpu.matmul %308, %309, %cst_126 {dimension_numbers = #tpu.dot_dimension_numbers<[1], [0], [0], [1], [0, 0, 1, 1], [], []>} : vector<2x128xf32>, vector<128x384xf32>, vector<2x384xf32> -> vector<2x384xf32>
    %311 = vector.extract_strided_slice %272 {offsets = [0, 0], sizes = [2, 128], strides = [1, 1]} : vector<2x384xf32> to vector<2x128xf32>
    %312 = vector.extract_strided_slice %310 {offsets = [0, 0], sizes = [2, 128], strides = [1, 1]} : vector<2x384xf32> to vector<2x128xf32>
    %313 = arith.addf %311, %312 : vector<2x128xf32>
    %314 = arith.negf %313 : vector<2x128xf32>
    %315 = math.exp %314 : vector<2x128xf32>
    %cst_127 = arith.constant 1.000000e+00 : f32
    %316 = vector.broadcast %cst_127 : f32 to vector<2x128xf32>
    %317 = arith.addf %316, %315 : vector<2x128xf32>
    %318 = arith.divf %316, %317 : vector<2x128xf32>
    %319 = vector.extract_strided_slice %272 {offsets = [0, 128], sizes = [2, 128], strides = [1, 1]} : vector<2x384xf32> to vector<2x128xf32>
    %320 = vector.extract_strided_slice %310 {offsets = [0, 128], sizes = [2, 128], strides = [1, 1]} : vector<2x384xf32> to vector<2x128xf32>
    %321 = arith.addf %319, %320 : vector<2x128xf32>
    %322 = arith.negf %321 : vector<2x128xf32>
    %323 = math.exp %322 : vector<2x128xf32>
    %cst_128 = arith.constant 1.000000e+00 : f32
    %324 = vector.broadcast %cst_128 : f32 to vector<2x128xf32>
    %325 = arith.addf %324, %323 : vector<2x128xf32>
    %326 = arith.divf %324, %325 : vector<2x128xf32>
    %327 = vector.extract_strided_slice %272 {offsets = [0, 256], sizes = [2, 128], strides = [1, 1]} : vector<2x384xf32> to vector<2x128xf32>
    %328 = vector.extract_strided_slice %310 {offsets = [0, 256], sizes = [2, 128], strides = [1, 1]} : vector<2x384xf32> to vector<2x128xf32>
    %c0_129 = arith.constant 0 : index
    %c0_130 = arith.constant 0 : index
    %329 = vector.load %arg6[%c0_129, %c0_130] : memref<1x128xf32, #tpu.memory_space<vmem>>, vector<1x128xf32>
    %330 = vector.broadcast %329 : vector<1x128xf32> to vector<2x128xf32>
    %331 = arith.addf %328, %330 : vector<2x128xf32>
    %332 = arith.mulf %318, %331 : vector<2x128xf32>
    %333 = arith.addf %327, %332 : vector<2x128xf32>
    %334 = math.tanh %333 : vector<2x128xf32>
    %cst_131 = arith.constant 1.000000e+00 : f32
    %335 = vector.broadcast %cst_131 : f32 to vector<2x128xf32>
    %336 = arith.subf %335, %326 : vector<2x128xf32>
    %337 = arith.mulf %336, %334 : vector<2x128xf32>
    %338 = arith.mulf %326, %308 : vector<2x128xf32>
    %339 = arith.addf %337, %338 : vector<2x128xf32>
    %c0_132 = arith.constant 0 : index
    %c0_133 = arith.constant 0 : index
    %340 = vector.load %arg5[%c0_132, %c0_133] : memref<128x384xf32, #tpu.memory_space<vmem>>, vector<128x384xf32>
    %cst_134 = arith.constant dense<0.000000e+00> : vector<2x384xf32>
    %341 = tpu.matmul %339, %340, %cst_134 {dimension_numbers = #tpu.dot_dimension_numbers<[1], [0], [0], [1], [0, 0, 1, 1], [], []>} : vector<2x128xf32>, vector<128x384xf32>, vector<2x384xf32> -> vector<2x384xf32>
    %342 = vector.extract_strided_slice %277 {offsets = [0, 0], sizes = [2, 128], strides = [1, 1]} : vector<2x384xf32> to vector<2x128xf32>
    %343 = vector.extract_strided_slice %341 {offsets = [0, 0], sizes = [2, 128], strides = [1, 1]} : vector<2x384xf32> to vector<2x128xf32>
    %344 = arith.addf %342, %343 : vector<2x128xf32>
    %345 = arith.negf %344 : vector<2x128xf32>
    %346 = math.exp %345 : vector<2x128xf32>
    %cst_135 = arith.constant 1.000000e+00 : f32
    %347 = vector.broadcast %cst_135 : f32 to vector<2x128xf32>
    %348 = arith.addf %347, %346 : vector<2x128xf32>
    %349 = arith.divf %347, %348 : vector<2x128xf32>
    %350 = vector.extract_strided_slice %277 {offsets = [0, 128], sizes = [2, 128], strides = [1, 1]} : vector<2x384xf32> to vector<2x128xf32>
    %351 = vector.extract_strided_slice %341 {offsets = [0, 128], sizes = [2, 128], strides = [1, 1]} : vector<2x384xf32> to vector<2x128xf32>
    %352 = arith.addf %350, %351 : vector<2x128xf32>
    %353 = arith.negf %352 : vector<2x128xf32>
    %354 = math.exp %353 : vector<2x128xf32>
    %cst_136 = arith.constant 1.000000e+00 : f32
    %355 = vector.broadcast %cst_136 : f32 to vector<2x128xf32>
    %356 = arith.addf %355, %354 : vector<2x128xf32>
    %357 = arith.divf %355, %356 : vector<2x128xf32>
    %358 = vector.extract_strided_slice %277 {offsets = [0, 256], sizes = [2, 128], strides = [1, 1]} : vector<2x384xf32> to vector<2x128xf32>
    %359 = vector.extract_strided_slice %341 {offsets = [0, 256], sizes = [2, 128], strides = [1, 1]} : vector<2x384xf32> to vector<2x128xf32>
    %c0_137 = arith.constant 0 : index
    %c0_138 = arith.constant 0 : index
    %360 = vector.load %arg6[%c0_137, %c0_138] : memref<1x128xf32, #tpu.memory_space<vmem>>, vector<1x128xf32>
    %361 = vector.broadcast %360 : vector<1x128xf32> to vector<2x128xf32>
    %362 = arith.addf %359, %361 : vector<2x128xf32>
    %363 = arith.mulf %349, %362 : vector<2x128xf32>
    %364 = arith.addf %358, %363 : vector<2x128xf32>
    %365 = math.tanh %364 : vector<2x128xf32>
    %cst_139 = arith.constant 1.000000e+00 : f32
    %366 = vector.broadcast %cst_139 : f32 to vector<2x128xf32>
    %367 = arith.subf %366, %357 : vector<2x128xf32>
    %368 = arith.mulf %367, %365 : vector<2x128xf32>
    %369 = arith.mulf %357, %339 : vector<2x128xf32>
    %370 = arith.addf %368, %369 : vector<2x128xf32>
    %c0_140 = arith.constant 0 : index
    %c0_141 = arith.constant 0 : index
    %371 = vector.load %arg5[%c0_140, %c0_141] : memref<128x384xf32, #tpu.memory_space<vmem>>, vector<128x384xf32>
    %cst_142 = arith.constant dense<0.000000e+00> : vector<2x384xf32>
    %372 = tpu.matmul %370, %371, %cst_142 {dimension_numbers = #tpu.dot_dimension_numbers<[1], [0], [0], [1], [0, 0, 1, 1], [], []>} : vector<2x128xf32>, vector<128x384xf32>, vector<2x384xf32> -> vector<2x384xf32>
    %373 = vector.extract_strided_slice %282 {offsets = [0, 0], sizes = [2, 128], strides = [1, 1]} : vector<2x384xf32> to vector<2x128xf32>
    %374 = vector.extract_strided_slice %372 {offsets = [0, 0], sizes = [2, 128], strides = [1, 1]} : vector<2x384xf32> to vector<2x128xf32>
    %375 = arith.addf %373, %374 : vector<2x128xf32>
    %376 = arith.negf %375 : vector<2x128xf32>
    %377 = math.exp %376 : vector<2x128xf32>
    %cst_143 = arith.constant 1.000000e+00 : f32
    %378 = vector.broadcast %cst_143 : f32 to vector<2x128xf32>
    %379 = arith.addf %378, %377 : vector<2x128xf32>
    %380 = arith.divf %378, %379 : vector<2x128xf32>
    %381 = vector.extract_strided_slice %282 {offsets = [0, 128], sizes = [2, 128], strides = [1, 1]} : vector<2x384xf32> to vector<2x128xf32>
    %382 = vector.extract_strided_slice %372 {offsets = [0, 128], sizes = [2, 128], strides = [1, 1]} : vector<2x384xf32> to vector<2x128xf32>
    %383 = arith.addf %381, %382 : vector<2x128xf32>
    %384 = arith.negf %383 : vector<2x128xf32>
    %385 = math.exp %384 : vector<2x128xf32>
    %cst_144 = arith.constant 1.000000e+00 : f32
    %386 = vector.broadcast %cst_144 : f32 to vector<2x128xf32>
    %387 = arith.addf %386, %385 : vector<2x128xf32>
    %388 = arith.divf %386, %387 : vector<2x128xf32>
    %389 = vector.extract_strided_slice %282 {offsets = [0, 256], sizes = [2, 128], strides = [1, 1]} : vector<2x384xf32> to vector<2x128xf32>
    %390 = vector.extract_strided_slice %372 {offsets = [0, 256], sizes = [2, 128], strides = [1, 1]} : vector<2x384xf32> to vector<2x128xf32>
    %c0_145 = arith.constant 0 : index
    %c0_146 = arith.constant 0 : index
    %391 = vector.load %arg6[%c0_145, %c0_146] : memref<1x128xf32, #tpu.memory_space<vmem>>, vector<1x128xf32>
    %392 = vector.broadcast %391 : vector<1x128xf32> to vector<2x128xf32>
    %393 = arith.addf %390, %392 : vector<2x128xf32>
    %394 = arith.mulf %380, %393 : vector<2x128xf32>
    %395 = arith.addf %389, %394 : vector<2x128xf32>
    %396 = math.tanh %395 : vector<2x128xf32>
    %cst_147 = arith.constant 1.000000e+00 : f32
    %397 = vector.broadcast %cst_147 : f32 to vector<2x128xf32>
    %398 = arith.subf %397, %388 : vector<2x128xf32>
    %399 = arith.mulf %398, %396 : vector<2x128xf32>
    %400 = arith.mulf %388, %370 : vector<2x128xf32>
    %401 = arith.addf %399, %400 : vector<2x128xf32>
    %c0_148 = arith.constant 0 : index
    %c0_149 = arith.constant 0 : index
    %402 = vector.load %arg5[%c0_148, %c0_149] : memref<128x384xf32, #tpu.memory_space<vmem>>, vector<128x384xf32>
    %cst_150 = arith.constant dense<0.000000e+00> : vector<2x384xf32>
    %403 = tpu.matmul %401, %402, %cst_150 {dimension_numbers = #tpu.dot_dimension_numbers<[1], [0], [0], [1], [0, 0, 1, 1], [], []>} : vector<2x128xf32>, vector<128x384xf32>, vector<2x384xf32> -> vector<2x384xf32>
    %404 = vector.extract_strided_slice %287 {offsets = [0, 0], sizes = [2, 128], strides = [1, 1]} : vector<2x384xf32> to vector<2x128xf32>
    %405 = vector.extract_strided_slice %403 {offsets = [0, 0], sizes = [2, 128], strides = [1, 1]} : vector<2x384xf32> to vector<2x128xf32>
    %406 = arith.addf %404, %405 : vector<2x128xf32>
    %407 = arith.negf %406 : vector<2x128xf32>
    %408 = math.exp %407 : vector<2x128xf32>
    %cst_151 = arith.constant 1.000000e+00 : f32
    %409 = vector.broadcast %cst_151 : f32 to vector<2x128xf32>
    %410 = arith.addf %409, %408 : vector<2x128xf32>
    %411 = arith.divf %409, %410 : vector<2x128xf32>
    %412 = vector.extract_strided_slice %287 {offsets = [0, 128], sizes = [2, 128], strides = [1, 1]} : vector<2x384xf32> to vector<2x128xf32>
    %413 = vector.extract_strided_slice %403 {offsets = [0, 128], sizes = [2, 128], strides = [1, 1]} : vector<2x384xf32> to vector<2x128xf32>
    %414 = arith.addf %412, %413 : vector<2x128xf32>
    %415 = arith.negf %414 : vector<2x128xf32>
    %416 = math.exp %415 : vector<2x128xf32>
    %cst_152 = arith.constant 1.000000e+00 : f32
    %417 = vector.broadcast %cst_152 : f32 to vector<2x128xf32>
    %418 = arith.addf %417, %416 : vector<2x128xf32>
    %419 = arith.divf %417, %418 : vector<2x128xf32>
    %420 = vector.extract_strided_slice %287 {offsets = [0, 256], sizes = [2, 128], strides = [1, 1]} : vector<2x384xf32> to vector<2x128xf32>
    %421 = vector.extract_strided_slice %403 {offsets = [0, 256], sizes = [2, 128], strides = [1, 1]} : vector<2x384xf32> to vector<2x128xf32>
    %c0_153 = arith.constant 0 : index
    %c0_154 = arith.constant 0 : index
    %422 = vector.load %arg6[%c0_153, %c0_154] : memref<1x128xf32, #tpu.memory_space<vmem>>, vector<1x128xf32>
    %423 = vector.broadcast %422 : vector<1x128xf32> to vector<2x128xf32>
    %424 = arith.addf %421, %423 : vector<2x128xf32>
    %425 = arith.mulf %411, %424 : vector<2x128xf32>
    %426 = arith.addf %420, %425 : vector<2x128xf32>
    %427 = math.tanh %426 : vector<2x128xf32>
    %cst_155 = arith.constant 1.000000e+00 : f32
    %428 = vector.broadcast %cst_155 : f32 to vector<2x128xf32>
    %429 = arith.subf %428, %419 : vector<2x128xf32>
    %430 = arith.mulf %429, %427 : vector<2x128xf32>
    %431 = arith.mulf %419, %401 : vector<2x128xf32>
    %432 = arith.addf %430, %431 : vector<2x128xf32>
    %c0_156 = arith.constant 0 : index
    %c0_157 = arith.constant 0 : index
    %433 = vector.load %arg5[%c0_156, %c0_157] : memref<128x384xf32, #tpu.memory_space<vmem>>, vector<128x384xf32>
    %cst_158 = arith.constant dense<0.000000e+00> : vector<2x384xf32>
    %434 = tpu.matmul %432, %433, %cst_158 {dimension_numbers = #tpu.dot_dimension_numbers<[1], [0], [0], [1], [0, 0, 1, 1], [], []>} : vector<2x128xf32>, vector<128x384xf32>, vector<2x384xf32> -> vector<2x384xf32>
    %435 = vector.extract_strided_slice %292 {offsets = [0, 0], sizes = [2, 128], strides = [1, 1]} : vector<2x384xf32> to vector<2x128xf32>
    %436 = vector.extract_strided_slice %434 {offsets = [0, 0], sizes = [2, 128], strides = [1, 1]} : vector<2x384xf32> to vector<2x128xf32>
    %437 = arith.addf %435, %436 : vector<2x128xf32>
    %438 = arith.negf %437 : vector<2x128xf32>
    %439 = math.exp %438 : vector<2x128xf32>
    %cst_159 = arith.constant 1.000000e+00 : f32
    %440 = vector.broadcast %cst_159 : f32 to vector<2x128xf32>
    %441 = arith.addf %440, %439 : vector<2x128xf32>
    %442 = arith.divf %440, %441 : vector<2x128xf32>
    %443 = vector.extract_strided_slice %292 {offsets = [0, 128], sizes = [2, 128], strides = [1, 1]} : vector<2x384xf32> to vector<2x128xf32>
    %444 = vector.extract_strided_slice %434 {offsets = [0, 128], sizes = [2, 128], strides = [1, 1]} : vector<2x384xf32> to vector<2x128xf32>
    %445 = arith.addf %443, %444 : vector<2x128xf32>
    %446 = arith.negf %445 : vector<2x128xf32>
    %447 = math.exp %446 : vector<2x128xf32>
    %cst_160 = arith.constant 1.000000e+00 : f32
    %448 = vector.broadcast %cst_160 : f32 to vector<2x128xf32>
    %449 = arith.addf %448, %447 : vector<2x128xf32>
    %450 = arith.divf %448, %449 : vector<2x128xf32>
    %451 = vector.extract_strided_slice %292 {offsets = [0, 256], sizes = [2, 128], strides = [1, 1]} : vector<2x384xf32> to vector<2x128xf32>
    %452 = vector.extract_strided_slice %434 {offsets = [0, 256], sizes = [2, 128], strides = [1, 1]} : vector<2x384xf32> to vector<2x128xf32>
    %c0_161 = arith.constant 0 : index
    %c0_162 = arith.constant 0 : index
    %453 = vector.load %arg6[%c0_161, %c0_162] : memref<1x128xf32, #tpu.memory_space<vmem>>, vector<1x128xf32>
    %454 = vector.broadcast %453 : vector<1x128xf32> to vector<2x128xf32>
    %455 = arith.addf %452, %454 : vector<2x128xf32>
    %456 = arith.mulf %442, %455 : vector<2x128xf32>
    %457 = arith.addf %451, %456 : vector<2x128xf32>
    %458 = math.tanh %457 : vector<2x128xf32>
    %cst_163 = arith.constant 1.000000e+00 : f32
    %459 = vector.broadcast %cst_163 : f32 to vector<2x128xf32>
    %460 = arith.subf %459, %450 : vector<2x128xf32>
    %461 = arith.mulf %460, %458 : vector<2x128xf32>
    %462 = arith.mulf %450, %432 : vector<2x128xf32>
    %463 = arith.addf %461, %462 : vector<2x128xf32>
    %c0_164 = arith.constant 0 : index
    %c0_165 = arith.constant 0 : index
    %464 = vector.load %arg5[%c0_164, %c0_165] : memref<128x384xf32, #tpu.memory_space<vmem>>, vector<128x384xf32>
    %cst_166 = arith.constant dense<0.000000e+00> : vector<2x384xf32>
    %465 = tpu.matmul %463, %464, %cst_166 {dimension_numbers = #tpu.dot_dimension_numbers<[1], [0], [0], [1], [0, 0, 1, 1], [], []>} : vector<2x128xf32>, vector<128x384xf32>, vector<2x384xf32> -> vector<2x384xf32>
    %466 = vector.extract_strided_slice %297 {offsets = [0, 0], sizes = [2, 128], strides = [1, 1]} : vector<2x384xf32> to vector<2x128xf32>
    %467 = vector.extract_strided_slice %465 {offsets = [0, 0], sizes = [2, 128], strides = [1, 1]} : vector<2x384xf32> to vector<2x128xf32>
    %468 = arith.addf %466, %467 : vector<2x128xf32>
    %469 = arith.negf %468 : vector<2x128xf32>
    %470 = math.exp %469 : vector<2x128xf32>
    %cst_167 = arith.constant 1.000000e+00 : f32
    %471 = vector.broadcast %cst_167 : f32 to vector<2x128xf32>
    %472 = arith.addf %471, %470 : vector<2x128xf32>
    %473 = arith.divf %471, %472 : vector<2x128xf32>
    %474 = vector.extract_strided_slice %297 {offsets = [0, 128], sizes = [2, 128], strides = [1, 1]} : vector<2x384xf32> to vector<2x128xf32>
    %475 = vector.extract_strided_slice %465 {offsets = [0, 128], sizes = [2, 128], strides = [1, 1]} : vector<2x384xf32> to vector<2x128xf32>
    %476 = arith.addf %474, %475 : vector<2x128xf32>
    %477 = arith.negf %476 : vector<2x128xf32>
    %478 = math.exp %477 : vector<2x128xf32>
    %cst_168 = arith.constant 1.000000e+00 : f32
    %479 = vector.broadcast %cst_168 : f32 to vector<2x128xf32>
    %480 = arith.addf %479, %478 : vector<2x128xf32>
    %481 = arith.divf %479, %480 : vector<2x128xf32>
    %482 = vector.extract_strided_slice %297 {offsets = [0, 256], sizes = [2, 128], strides = [1, 1]} : vector<2x384xf32> to vector<2x128xf32>
    %483 = vector.extract_strided_slice %465 {offsets = [0, 256], sizes = [2, 128], strides = [1, 1]} : vector<2x384xf32> to vector<2x128xf32>
    %c0_169 = arith.constant 0 : index
    %c0_170 = arith.constant 0 : index
    %484 = vector.load %arg6[%c0_169, %c0_170] : memref<1x128xf32, #tpu.memory_space<vmem>>, vector<1x128xf32>
    %485 = vector.broadcast %484 : vector<1x128xf32> to vector<2x128xf32>
    %486 = arith.addf %483, %485 : vector<2x128xf32>
    %487 = arith.mulf %473, %486 : vector<2x128xf32>
    %488 = arith.addf %482, %487 : vector<2x128xf32>
    %489 = math.tanh %488 : vector<2x128xf32>
    %cst_171 = arith.constant 1.000000e+00 : f32
    %490 = vector.broadcast %cst_171 : f32 to vector<2x128xf32>
    %491 = arith.subf %490, %481 : vector<2x128xf32>
    %492 = arith.mulf %491, %489 : vector<2x128xf32>
    %493 = arith.mulf %481, %463 : vector<2x128xf32>
    %494 = arith.addf %492, %493 : vector<2x128xf32>
    %c0_172 = arith.constant 0 : index
    %c0_173 = arith.constant 0 : index
    %495 = vector.load %arg5[%c0_172, %c0_173] : memref<128x384xf32, #tpu.memory_space<vmem>>, vector<128x384xf32>
    %cst_174 = arith.constant dense<0.000000e+00> : vector<2x384xf32>
    %496 = tpu.matmul %494, %495, %cst_174 {dimension_numbers = #tpu.dot_dimension_numbers<[1], [0], [0], [1], [0, 0, 1, 1], [], []>} : vector<2x128xf32>, vector<128x384xf32>, vector<2x384xf32> -> vector<2x384xf32>
    %497 = vector.extract_strided_slice %302 {offsets = [0, 0], sizes = [2, 128], strides = [1, 1]} : vector<2x384xf32> to vector<2x128xf32>
    %498 = vector.extract_strided_slice %496 {offsets = [0, 0], sizes = [2, 128], strides = [1, 1]} : vector<2x384xf32> to vector<2x128xf32>
    %499 = arith.addf %497, %498 : vector<2x128xf32>
    %500 = arith.negf %499 : vector<2x128xf32>
    %501 = math.exp %500 : vector<2x128xf32>
    %cst_175 = arith.constant 1.000000e+00 : f32
    %502 = vector.broadcast %cst_175 : f32 to vector<2x128xf32>
    %503 = arith.addf %502, %501 : vector<2x128xf32>
    %504 = arith.divf %502, %503 : vector<2x128xf32>
    %505 = vector.extract_strided_slice %302 {offsets = [0, 128], sizes = [2, 128], strides = [1, 1]} : vector<2x384xf32> to vector<2x128xf32>
    %506 = vector.extract_strided_slice %496 {offsets = [0, 128], sizes = [2, 128], strides = [1, 1]} : vector<2x384xf32> to vector<2x128xf32>
    %507 = arith.addf %505, %506 : vector<2x128xf32>
    %508 = arith.negf %507 : vector<2x128xf32>
    %509 = math.exp %508 : vector<2x128xf32>
    %cst_176 = arith.constant 1.000000e+00 : f32
    %510 = vector.broadcast %cst_176 : f32 to vector<2x128xf32>
    %511 = arith.addf %510, %509 : vector<2x128xf32>
    %512 = arith.divf %510, %511 : vector<2x128xf32>
    %513 = vector.extract_strided_slice %302 {offsets = [0, 256], sizes = [2, 128], strides = [1, 1]} : vector<2x384xf32> to vector<2x128xf32>
    %514 = vector.extract_strided_slice %496 {offsets = [0, 256], sizes = [2, 128], strides = [1, 1]} : vector<2x384xf32> to vector<2x128xf32>
    %c0_177 = arith.constant 0 : index
    %c0_178 = arith.constant 0 : index
    %515 = vector.load %arg6[%c0_177, %c0_178] : memref<1x128xf32, #tpu.memory_space<vmem>>, vector<1x128xf32>
    %516 = vector.broadcast %515 : vector<1x128xf32> to vector<2x128xf32>
    %517 = arith.addf %514, %516 : vector<2x128xf32>
    %518 = arith.mulf %504, %517 : vector<2x128xf32>
    %519 = arith.addf %513, %518 : vector<2x128xf32>
    %520 = math.tanh %519 : vector<2x128xf32>
    %cst_179 = arith.constant 1.000000e+00 : f32
    %521 = vector.broadcast %cst_179 : f32 to vector<2x128xf32>
    %522 = arith.subf %521, %512 : vector<2x128xf32>
    %523 = arith.mulf %522, %520 : vector<2x128xf32>
    %524 = arith.mulf %512, %494 : vector<2x128xf32>
    %525 = arith.addf %523, %524 : vector<2x128xf32>
    %c0_180 = arith.constant 0 : index
    %c0_181 = arith.constant 0 : index
    %526 = vector.load %arg5[%c0_180, %c0_181] : memref<128x384xf32, #tpu.memory_space<vmem>>, vector<128x384xf32>
    %cst_182 = arith.constant dense<0.000000e+00> : vector<2x384xf32>
    %527 = tpu.matmul %525, %526, %cst_182 {dimension_numbers = #tpu.dot_dimension_numbers<[1], [0], [0], [1], [0, 0, 1, 1], [], []>} : vector<2x128xf32>, vector<128x384xf32>, vector<2x384xf32> -> vector<2x384xf32>
    %528 = vector.extract_strided_slice %307 {offsets = [0, 0], sizes = [2, 128], strides = [1, 1]} : vector<2x384xf32> to vector<2x128xf32>
    %529 = vector.extract_strided_slice %527 {offsets = [0, 0], sizes = [2, 128], strides = [1, 1]} : vector<2x384xf32> to vector<2x128xf32>
    %530 = arith.addf %528, %529 : vector<2x128xf32>
    %531 = arith.negf %530 : vector<2x128xf32>
    %532 = math.exp %531 : vector<2x128xf32>
    %cst_183 = arith.constant 1.000000e+00 : f32
    %533 = vector.broadcast %cst_183 : f32 to vector<2x128xf32>
    %534 = arith.addf %533, %532 : vector<2x128xf32>
    %535 = arith.divf %533, %534 : vector<2x128xf32>
    %536 = vector.extract_strided_slice %307 {offsets = [0, 128], sizes = [2, 128], strides = [1, 1]} : vector<2x384xf32> to vector<2x128xf32>
    %537 = vector.extract_strided_slice %527 {offsets = [0, 128], sizes = [2, 128], strides = [1, 1]} : vector<2x384xf32> to vector<2x128xf32>
    %538 = arith.addf %536, %537 : vector<2x128xf32>
    %539 = arith.negf %538 : vector<2x128xf32>
    %540 = math.exp %539 : vector<2x128xf32>
    %cst_184 = arith.constant 1.000000e+00 : f32
    %541 = vector.broadcast %cst_184 : f32 to vector<2x128xf32>
    %542 = arith.addf %541, %540 : vector<2x128xf32>
    %543 = arith.divf %541, %542 : vector<2x128xf32>
    %544 = vector.extract_strided_slice %307 {offsets = [0, 256], sizes = [2, 128], strides = [1, 1]} : vector<2x384xf32> to vector<2x128xf32>
    %545 = vector.extract_strided_slice %527 {offsets = [0, 256], sizes = [2, 128], strides = [1, 1]} : vector<2x384xf32> to vector<2x128xf32>
    %c0_185 = arith.constant 0 : index
    %c0_186 = arith.constant 0 : index
    %546 = vector.load %arg6[%c0_185, %c0_186] : memref<1x128xf32, #tpu.memory_space<vmem>>, vector<1x128xf32>
    %547 = vector.broadcast %546 : vector<1x128xf32> to vector<2x128xf32>
    %548 = arith.addf %545, %547 : vector<2x128xf32>
    %549 = arith.mulf %535, %548 : vector<2x128xf32>
    %550 = arith.addf %544, %549 : vector<2x128xf32>
    %551 = math.tanh %550 : vector<2x128xf32>
    %cst_187 = arith.constant 1.000000e+00 : f32
    %552 = vector.broadcast %cst_187 : f32 to vector<2x128xf32>
    %553 = arith.subf %552, %543 : vector<2x128xf32>
    %554 = arith.mulf %553, %551 : vector<2x128xf32>
    %555 = arith.mulf %543, %525 : vector<2x128xf32>
    %556 = arith.addf %554, %555 : vector<2x128xf32>
    %c1_188 = arith.constant 1 : index
    %c0_189 = arith.constant 0 : index
    %c0_190 = arith.constant 0 : index
    %557 = vector.load %arg7[%c1_188, %c0_189, %c0_190] : memref<2x2x128xf32, #tpu.memory_space<vmem>>, vector<1x2x128xf32>
    %558 = vector.shape_cast %557 : vector<1x2x128xf32> to vector<2x128xf32>
    %559 = vector.shape_cast %556 : vector<2x128xf32> to vector<1x2x128xf32>
    tpu.vector_store %arg7[%c1_188, %c0_189, %c0_190], %559 {strides = array<i32>} : memref<2x2x128xf32, #tpu.memory_space<vmem>>, vector<1x2x128xf32>,
    return
  }
}

</mosaic_0001>

<bundles_post_ra>
// kernel: encoder_forward.1
= control target key start
LH: loop header
LB: loop body
LE: loop exit
PB: predicated region body
PF: predicated region fallthrough
CT: control target
= control target key end

     0   :  { %12 = vsyncpa [#allocation3], 0  ;;  %s8272_s0 = inlined_call_operand.vmem [shape: f32[8,2,384], index: 0, kind: input, shape index: {}]   ;;  %s8273_s1 = inlined_call_operand.hbm [shape: f32[128,384], index: 1, kind: input, shape index: {}]   ;;  %s8274_s2 = inlined_call_operand.vmem [shape: f32[1,128], index: 2, kind: input, shape index: {}]   ;;  %s8275_s3 = inlined_call_operand.hbm [shape: f32[128,384], index: 3, kind: input, shape index: {}]   ;;  %s8276_s4 = inlined_call_operand.vmem [shape: f32[1,384], index: 4, kind: input, shape index: {}]   ;;  %s8277_s5 = inlined_call_operand.hbm [shape: f32[128,384], index: 5, kind: input, shape index: {}]   ;;  %s8278_s6 = inlined_call_operand.vmem [shape: f32[1,128], index: 6, kind: input, shape index: {}]   ;;  %s8279_s7 = inlined_call_operand.hbm [shape: f32[2,2,128], index: 7, kind: output, shape index: {}]  }
   0x1   :  { %13 = vsyncpa [#allocation6], 0 }
   0x2   :  { %14 = vsyncpa [#allocation4], 0  ;;  %s6986_s24 = smov [#allocation5]   ;;  %s6987_s26 = smov [#allocation2]  }
   0x3   :  { %s36_s25 = sshll.u32 %s6986_s24, 4  ;;  %s22_s27 = sshll.u32 %s6987_s26, 4  ;;  %s37_s25 = int_to_ptr.vmem [resolvable:$true] %s36_s25  ;;  %s7037_s27 = int_to_ptr.vmem [resolvable:$true] %s22_s27 }
   0x4   :  { %s6892_s30 = scalar_lea.hbm %s8275_s3, 6144 }
   0x5   :  { %p6893_p0 = scmp.ne.s32.totalorder %s8275_s3, %s6892_s30  ;;  %p6896_p1 = scmp.lt.u32.totalorder %s6892_s30, %s8275_s3 }
   0x7   :  { %p6898_p2 = pnand %p6896_p1, %p6893_p0 }
   0x9   :  { %6901 = shalt.err (!%p6898_p2)
}
   0xa   :  { %s6902_s12 = scalar_lea.vmem %s37_s25, 6144  ;;  %p6907_p4 = scmp.lt.s32.totalorder %s37_s25, %s37_s25 }
   0xb   :  { %p6903_p3 = scmp.ne.s32.totalorder %s37_s25, %s6902_s12  ;;  %p6908_p5 = scmp.lt.s32.totalorder %s6902_s12, %s6902_s12 }
   0xd   :  { %p6909_p6 = por %p6908_p5, %p6907_p4 }
   0xf   :  { %p6910_p7 = pnand %p6909_p6, %p6903_p3 }
  0x11   :  { %6913 = shalt.err (!%p6910_p7)
}
  0x12   :  { %s6988_s13 = smov 384   ;;  %s6989_s14 = smov 24  }
  0x13   :  { %42 = dma.hbm_to_vmem [thread:$0]  %s8275_s3, 6144, %s37_s25, [#allocation6], %s6988_s13, %s6988_s13, %s6989_s14  }
  0x14   :  { %s6914_s19 = scalar_lea.hbm %s8273_s1, 6144 }
  0x15   :  { %p6915_p8 = scmp.ne.s32.totalorder %s8273_s1, %s6914_s19  ;;  %p6918_p9 = scmp.lt.u32.totalorder %s6914_s19, %s8273_s1 }
  0x17   :  { %p6920_p10 = pnand %p6918_p9, %p6915_p8 }
  0x19   :  { %6923 = shalt.err (!%p6920_p10)
}
  0x1a   :  { %s6924_s24 = scalar_lea.vmem %s7037_s27, 6144  ;;  %p6929_p12 = scmp.lt.s32.totalorder %s7037_s27, %s7037_s27 }
  0x1b   :  { %p6925_p11 = scmp.ne.s32.totalorder %s7037_s27, %s6924_s24  ;;  %p6930_p13 = scmp.lt.s32.totalorder %s6924_s24, %s6924_s24 }
  0x1d   :  { %p6931_p0 = por %p6930_p13, %p6929_p12 }
  0x1f   :  { %p6932_p1 = pnand %p6931_p0, %p6925_p11 }
  0x21   :  { %6935 = shalt.err (!%p6932_p1)
}
  0x22   :  { %28 = dma.hbm_to_vmem [thread:$0]  %s8273_s1, 6144, %s7037_s27, [#allocation3], %s6988_s13, %s6988_s13, %s6989_s14  }
  0x23   :  { %s6990_s26 = smov [#allocation7]   ;;  %s6936_s8 = scalar_lea.hbm %s8277_s5, 6144 }
  0x24   :  { %s50_s28 = sshll.u32 %s6990_s26, 4  ;;  %p6937_p2 = scmp.ne.s32.totalorder %s8277_s5, %s6936_s8  ;;  %s51_s28 = int_to_ptr.vmem [resolvable:$true] %s50_s28 }
  0x25   :  { %p6940_p3 = scmp.lt.u32.totalorder %s6936_s8, %s8277_s5 }
  0x27   :  { %p6942_p4 = pnand %p6940_p3, %p6937_p2 }
  0x29   :  { %6945 = shalt.err (!%p6942_p4)
}
  0x2a   :  { %s6946_s15 = scalar_lea.vmem %s51_s28, 6144  ;;  %p6951_p6 = scmp.lt.s32.totalorder %s51_s28, %s51_s28 }
  0x2b   :  { %p6947_p5 = scmp.ne.s32.totalorder %s51_s28, %s6946_s15  ;;  %p6952_p7 = scmp.lt.s32.totalorder %s6946_s15, %s6946_s15 }
  0x2d   :  { %p6953_p8 = por %p6952_p7, %p6951_p6 }
  0x2f   :  { %p6954_p9 = pnand %p6953_p8, %p6947_p5 }
  0x31   :  { %6957 = shalt.err (!%p6954_p9)
}
  0x32   :  { %56 = dma.hbm_to_vmem [thread:$0]  %s8277_s5, 6144, %s51_s28, [#allocation6], %s6988_s13, %s6988_s13, %s6989_s14  }
  0x33   :  { %6980 = dma.done.wait [#allocation3], 6144  }
  0x34   :  { %6981 = vsyncadd [#allocation3], 4294961152 }
  0x35   :  { %6982 = dma.done.wait [#allocation6], 12288  }
  0x36   :  { %6983 = vsyncadd [#allocation6], 4294955008  ;;  %v6991_v0 = vmov 0.0|0.0   ;;  %v6992_v1 = vmov 0.0   ;;  %vm6993_vm0 = vmmov 0   ;;  %v70_v2 = vld [vmem:[#allocation2 + $0x8] sm:$0xff] }
  0x37   :  { %5376 = vmatprep.subr.bf16.mxu1 %v6991_v0  ;;  %181 = vmatprep.mubr.f32.mxu0 %v6992_v1  ;;  %v73_v3 = vld [vmem:[#allocation2 + $0x20] sm:$0xff]  ;;  %v72_v6 = vld [vmem:[#allocation2 + $0x18] sm:$0xff]  ;;  %v79_v8 = vld [vmem:[#allocation2 + $0x50] sm:$0xff] }
  0x38   :  { %4536 = vmatprep.mubr.msk.f32.mxu1 %vm6993_vm0, %v6992_v1  ;;  %v69_v4 = vld [vmem:[#allocation2] sm:$0xff]  ;;  %v7093_v5 = vpack.c.bf16 %v73_v3, %v70_v2  ;;  %v76_v7 = vld [vmem:[#allocation2 + $0x38] sm:$0xff]  ;;  %v75_v11 = vld [vmem:[#allocation2 + $0x30] sm:$0xff] }
  0x39   :  { %v7095_v9 = vpack.c.bf16 %v72_v6, %v69_v4  ;;  %v7097_v10 = vpack.c.bf16 %v79_v8, %v76_v7  ;;  %v78_v12 = vld [vmem:[#allocation2 + $0x48] sm:$0xff]  ;;  %v85_v14 = vld [vmem:[#allocation2 + $0x80] sm:$0xff]  ;;  %v84_v18 = vld [vmem:[#allocation2 + $0x78] sm:$0xff] }
  0x3a   :  { %v82_v13 = vld [vmem:[#allocation2 + $0x68] sm:$0xff]  ;;  %5345 = vmatprep.subr.bf16.mxu0 %v7093_v5  ;;  %v7101_v15 = vpack.c.bf16 %v78_v12, %v75_v11  ;;  %v81_v17 = vld [vmem:[#allocation2 + $0x60] sm:$0xff]  ;;  %v88_v19 = vld [vmem:[#allocation2 + $0x98] sm:$0xff] }
  0x3b   :  { %5347 = vmatpush1.bf16.msra.mxu0 %v7095_v9  ;;  %v7104_v16 = vpack.c.bf16 %v85_v14, %v82_v13  ;;  %v91_v20 = vld [vmem:[#allocation2 + $0xb0] sm:$0xff]  ;;  %v7107_v21 = vpack.c.bf16 %v84_v18, %v81_v17  ;;  %v90_v24 = vld [vmem:[#allocation2 + $0xa8] sm:$0xff]  ;;  %v97_v28 = vld [vmem:[#allocation2 + $0xe0] sm:$0xff] }
  0x3c   :  { %5349 = vmatprep.subr.bf16.mxu0 %v7097_v10  ;;  %v87_v22 = vld [vmem:[#allocation2 + $0x90] sm:$0xff]  ;;  %v7110_v23 = vpack.c.bf16 %v91_v20, %v88_v19  ;;  %v74_v26 = vld [vmem:[#allocation2 + $0x28] sm:$0xff]  ;;  %v77_v30 = vld [vmem:[#allocation2 + $0x40] sm:$0xff] }
  0x3d   :  { %v71_v25 = vld [vmem:[#allocation2 + $0x10] sm:$0xff]  ;;  %v94_v27 = vld [vmem:[#allocation2 + $0xc8] sm:$0xff]  ;;  %v80_v31 = vld [vmem:[#allocation2 + $0x58] sm:$0xff]  ;;  %v7115_v32 = vpack.c.bf16 %v90_v24, %v87_v22 }
  0x3e   :  { %v7112_v29 = vpack.c.bf16 %v74_v26, %v71_v25  ;;  %v93_v33 = vld [vmem:[#allocation2 + $0xc0] sm:$0xff]  ;;  %v7118_v34 = vpack.c.bf16 %v80_v31, %v77_v30  ;;  %v7121_v35 = vpack.c.bf16 %v97_v28, %v94_v27  ;;  %v96_v36 = vld [vmem:[#allocation2 + $0xd8] sm:$0xff]  ;;  %v83_v37 = vld [vmem:[#allocation2 + $0x70] sm:$0xff] }
  0x3f   :  { %5351 = vmatpush1.bf16.msra.mxu0 %v7101_v15  ;;  %v86_v38 = vld [vmem:[#allocation2 + $0x88] sm:$0xff]  ;;  %v100_v39 = vld [vmem:[#allocation2 + $0xf8] sm:$0xff]  ;;  %v103_v40 = vld [vmem:[#allocation2 + $0x110] sm:$0xff]  ;;  %v7125_v41 = vpack.c.bf16 %v96_v36, %v93_v33 }
  0x40   :  { %5353 = vmatprep.subr.bf16.mxu0 %v7104_v16  ;;  %5378 = vmatpush3.bf16.msra.mxu1 %v7112_v29  ;;  %v99_v42 = vld [vmem:[#allocation2 + $0xf0] sm:$0xff]  ;;  %v7128_v43 = vpack.c.bf16 %v86_v38, %v83_v37  ;;  %v7131_v44 = vpack.c.bf16 %v103_v40, %v100_v39  ;;  %v102_v45 = vld [vmem:[#allocation2 + $0x108] sm:$0xff]  ;;  %v89_v46 = vld [vmem:[#allocation2 + $0xa0] sm:$0xff] }
  0x41   :  { %5379 = vmatprep.subr.bf16.mxu1 %v6991_v0  ;;  %v92_v47 = vld [vmem:[#allocation2 + $0xb8] sm:$0xff]  ;;  %v106_v48 = vld [vmem:[#allocation2 + $0x128] sm:$0xff]  ;;  %v109_v49 = vld [vmem:[#allocation2 + $0x140] sm:$0xff]  ;;  %v7135_v50 = vpack.c.bf16 %v102_v45, %v99_v42 }
  0x42   :  { %v105_v51 = vld [vmem:[#allocation2 + $0x120] sm:$0xff]  ;;  %v7138_v52 = vpack.c.bf16 %v92_v47, %v89_v46  ;;  %v7141_v53 = vpack.c.bf16 %v109_v49, %v106_v48  ;;  %v108_v54 = vld [vmem:[#allocation2 + $0x138] sm:$0xff]  ;;  %v95_v55 = vld [vmem:[#allocation2 + $0xd0] sm:$0xff] }
  0x43   :  { %5355 = vmatpush1.bf16.msra.mxu0 %v7107_v21  ;;  %v98_v56 = vld [vmem:[#allocation2 + $0xe8] sm:$0xff]  ;;  %v112_v57 = vld [vmem:[#allocation2 + $0x158] sm:$0xff]  ;;  %v115_v58 = vld [vmem:[#allocation2 + $0x170] sm:$0xff]  ;;  %v7145_v59 = vpack.c.bf16 %v108_v54, %v105_v51 }
  0x44   :  { %5357 = vmatprep.subr.bf16.mxu0 %v7110_v23  ;;  %5381 = vmatpush3.bf16.msra.mxu1 %v7118_v34  ;;  %v111_v60 = vld [vmem:[#allocation2 + $0x150] sm:$0xff]  ;;  %v7148_v61 = vpack.c.bf16 %v98_v56, %v95_v55  ;;  %v7151_v62 = vpack.c.bf16 %v115_v58, %v112_v57  ;;  %v114_v63 = vld [vmem:[#allocation2 + $0x168] sm:$0xff]  ;;  %v101_v2 = vld [vmem:[#allocation2 + $0x100] sm:$0xff] }
  0x45   :  { %5382 = vmatprep.subr.bf16.mxu1 %v6991_v0  ;;  %v104_v3 = vld [vmem:[#allocation2 + $0x118] sm:$0xff]  ;;  %v7155_v4 = vpack.c.bf16 %v114_v63, %v111_v60  ;;  %v107_v7 = vld [vmem:[#allocation2 + $0x130] sm:$0xff]  ;;  %v110_v8 = vld [vmem:[#allocation2 + $0x148] sm:$0xff] }
  0x46   :  { %v7158_v6 = vpack.c.bf16 %v104_v3, %v101_v2  ;;  %v7164_v11 = vpack.c.bf16 %v110_v8, %v107_v7  ;;  %v113_v12 = vld [vmem:[#allocation2 + $0x160] sm:$0xff]  ;;  %v116_v13 = vld [vmem:[#allocation2 + $0x178] sm:$0xff] }
  0x47   :  { %5359 = vmatpush1.bf16.msra.mxu0 %v7115_v32  ;;  %v7170_v14 = vpack.c.bf16 %v116_v13, %v113_v12  ;;  %v68_v17 = vld [vmem:[%s8272_s0] sm:$0x3f]  ;;  %v4058_v55 = vld [vmem:[%s8272_s0 + $0x6] sm:$0x3f] }
  0x48   :  { %5361 = vmatprep.subr.bf16.mxu0 %v7121_v35  ;;  %5384 = vmatpush3.bf16.msra.mxu1 %v7128_v43  ;;  %v266_v19 = vrot.slane %v68_v17, 2  ;;  %v7217_v36 = vld [vmem:[%s8274_s2] ss:$0 sm:$0xff]  ;;  %v284_v39 = vrot.slane %v68_v17, 4  ;;  %v443_v58 = vrot.slane %v4058_v55, 2 }
  0x49   :  { %5385 = vmatprep.subr.bf16.mxu1 %v6991_v0 }
  0x4b   :  { %5363 = vmatpush1.bf16.msra.mxu0 %v7125_v41 }
  0x4c   :  { %5365 = vmatprep.subr.bf16.mxu0 %v7131_v44  ;;  %5387 = vmatpush3.bf16.msra.mxu1 %v7138_v52 }
  0x4d   :  { %5388 = vmatprep.subr.bf16.mxu1 %v6991_v0 }
  0x4f   :  { %5367 = vmatpush1.bf16.msra.mxu0 %v7135_v50 }
  0x50   :  { %5369 = vmatprep.subr.bf16.mxu0 %v7141_v53  ;;  %5390 = vmatpush3.bf16.msra.mxu1 %v7148_v61 }
  0x51   :  { %5391 = vmatprep.subr.bf16.mxu1 %v6991_v0 }
  0x53   :  { %5371 = vmatpush1.bf16.msra.mxu0 %v7145_v59 }
  0x54   :  { %5373 = vmatprep.subr.bf16.mxu0 %v7151_v62  ;;  %5393 = vmatpush3.bf16.msra.mxu1 %v7158_v6 }
  0x55   :  { %5394 = vmatprep.subr.bf16.mxu1 %v6991_v0 }
  0x57   :  { %5375 = vmatpush1.bf16.msra.mxu0 %v7155_v4 }
  0x58   :  { %5401 = vmatprep.subr.bf16.mxu0 %v7093_v5  ;;  %5396 = vmatpush3.bf16.msra.mxu1 %v7164_v11 }
  0x59   :  { %5397 = vmatprep.subr.bf16.mxu1 %v6991_v0 }
  0x5a   :  { %182 = vmatmul.mubr.f32.vlgmr.msra.gmra.mrb[0].mxu0 %v6992_v1 }
  0x5b   :  { %5403 = vmatpush1.bf16.msra.mxu0 %v7095_v9  ;;  %358 = vmatprep.mubr.f32.mxu0 %v6992_v1 }
  0x5c   :  { %5405 = vmatprep.subr.bf16.mxu0 %v7097_v10  ;;  %5399 = vmatpush3.bf16.msra.mxu1 %v7170_v14 }
  0x5d   :  { %5432 = vmatprep.subr.bf16.mxu1 %v6991_v0 }
  0x5f   :  { %5407 = vmatpush1.bf16.msra.mxu0 %v7101_v15  ;;  %4537 = vmatmul.mubr.f32.vlgmr.msra.gmra.mrb[0].mxu1 %v6992_v1 }
  0x60   :  { %5409 = vmatprep.subr.bf16.mxu0 %v7104_v16  ;;  %5434 = vmatpush3.bf16.msra.mxu1 %v7112_v29 }
  0x61   :  { %5435 = vmatprep.subr.bf16.mxu1 %v6991_v0  ;;  %4571 = vmatprep.mubr.msk.f32.mxu1 %vm6993_vm0, %v6992_v1 }
  0x63   :  { %5411 = vmatpush1.bf16.msra.mxu0 %v7107_v21 }
  0x64   :  { %5413 = vmatprep.subr.bf16.mxu0 %v7110_v23  ;;  %5437 = vmatpush3.bf16.msra.mxu1 %v7118_v34 }
  0x65   :  { %5438 = vmatprep.subr.bf16.mxu1 %v6991_v0 }
  0x67   :  { %5415 = vmatpush1.bf16.msra.mxu0 %v7115_v32 }
  0x68   :  { %5417 = vmatprep.subr.bf16.mxu0 %v7121_v35  ;;  %5440 = vmatpush3.bf16.msra.mxu1 %v7128_v43 }
  0x69   :  { %5441 = vmatprep.subr.bf16.mxu1 %v6991_v0 }
  0x6b   :  { %5419 = vmatpush1.bf16.msra.mxu0 %v7125_v41 }
  0x6c   :  { %5421 = vmatprep.subr.bf16.mxu0 %v7131_v44  ;;  %5443 = vmatpush3.bf16.msra.mxu1 %v7138_v52 }
  0x6d   :  { %5444 = vmatprep.subr.bf16.mxu1 %v6991_v0 }
  0x6f   :  { %5423 = vmatpush1.bf16.msra.mxu0 %v7135_v50 }
  0x70   :  { %5425 = vmatprep.subr.bf16.mxu0 %v7141_v53  ;;  %5446 = vmatpush3.bf16.msra.mxu1 %v7148_v61 }
  0x71   :  { %5447 = vmatprep.subr.bf16.mxu1 %v6991_v0 }
  0x73   :  { %5427 = vmatpush1.bf16.msra.mxu0 %v7145_v59 }
  0x74   :  { %5429 = vmatprep.subr.bf16.mxu0 %v7151_v62  ;;  %5449 = vmatpush3.bf16.msra.mxu1 %v7158_v6 }
  0x75   :  { %5450 = vmatprep.subr.bf16.mxu1 %v6991_v0 }
  0x77   :  { %5431 = vmatpush1.bf16.msra.mxu0 %v7155_v4 }
  0x78   :  { %5457 = vmatprep.subr.bf16.mxu0 %v7093_v5  ;;  %5452 = vmatpush3.bf16.msra.mxu1 %v7164_v11 }
  0x79   :  { %5453 = vmatprep.subr.bf16.mxu1 %v6991_v0 }
  0x7c   :  { %5455 = vmatpush3.bf16.msra.mxu1 %v7170_v14 }
  0x7d   :  { %5488 = vmatprep.subr.bf16.mxu1 %v6991_v0 }
 0x12d   :  { %v183_v18 = vpop.f32.mrb[0].mxu0 }
 0x12e   :  { %v258_v20 = vadd.f32 %v183_v18, %v68_v17  ;;  %v185_v22 = vpop.f32.mrb[1].mxu0 }
 0x12f   :  { %v268_v25 = vadd.f32 %v266_v19, %v185_v22  ;;  %v454_v19 = vrot.slane %v4058_v55, 4 }
 0x130   :  { %v4055_v24 = vmul.f32 -1.442695, %v258_v20 }
 0x131   :  { %v4056_v26 = vmul.f32 -1.442695, %v268_v25 }
 0x132   :  { %6731 = vpow2.f32 %v4055_v24  ;;  %v254_v27 = vpop.f32.mrb[0].mxu1 }
 0x133   :  { %v4538_v28 = vpop.f32.mrb[1].mxu1  ;;  %6733 = vpow2.f32 %v4056_v26  ;;  %v282_v38 = vadd.f32 %v7217_v36, %v254_v27 }
 0x13c   :  { %v6732_v30 = vpop.eup %6731 }
 0x13d   :  { %v262_v31 = vadd.f32 1.0, %v6732_v30  ;;  %v6734_v33 = vpop.eup %6733 }
 0x13e   :  { %v272_v37 = vadd.f32 1.0, %v6734_v33 }
 0x13f   :  { %6735 = vrcp.f32 %v262_v31 }
 0x140   :  { %6737 = vrcp.f32 %v272_v37  ;;  %v4061_v37 = vld [vmem:[%s8272_s0 + $0xc] sm:$0x3f] }
 0x149   :  { %v6736_v40 = vpop.eup %6735 }
 0x14a   :  { %v283_v42 = vmul.f32 %v6736_v40, %v282_v38  ;;  %v6738_v46 = vpop.eup %6737  ;;  %v613_v40 = vrot.slane %v4061_v37, 2 }
 0x14b   :  { %v288_v47 = vsub.f32 1.0, %v6738_v46  ;;  %v290_v51 = vmul.f32 0.0, %v6738_v46 }
 0x14c   :  { %v286_v45 = vadd.f32 %v284_v39, %v283_v42 }
 0x14e   :  { %6739 = vtanh.f32 %v286_v45 }
 0x158   :  { %v6740_v48 = vpop.eup %6739 }
 0x159   :  { %v289_v49 = vmul.f32 %v6740_v48, %v288_v47 }
 0x15b   :  { %v7220_v54 = vadd.f32 %v290_v51, %v289_v49 }
 0x15d   :  { %359 = vmatmul.mubr.f32.vlgmr.msra.gmra.mrb[2].mxu0 %v7220_v54  ;;  %4572 = vmatmul.mubr.f32.vlgmr.msra.gmra.mrb[2].mxu1 %v7220_v54 }
 0x15e   :  { %5459 = vmatpush1.bf16.msra.mxu0 %v7095_v9  ;;  %5490 = vmatpush3.bf16.msra.mxu1 %v7112_v29 }
 0x15f   :  { %5461 = vmatprep.subr.bf16.mxu0 %v7097_v10  ;;  %5491 = vmatprep.subr.bf16.mxu1 %v6991_v0 }
 0x160   :  { %528 = vmatprep.mubr.f32.mxu0 %v6992_v1  ;;  %4606 = vmatprep.mubr.msk.f32.mxu1 %vm6993_vm0, %v6992_v1 }
 0x162   :  { %5463 = vmatpush1.bf16.msra.mxu0 %v7101_v15  ;;  %5493 = vmatpush3.bf16.msra.mxu1 %v7118_v34 }
 0x163   :  { %5465 = vmatprep.subr.bf16.mxu0 %v7104_v16  ;;  %5494 = vmatprep.subr.bf16.mxu1 %v6991_v0 }
 0x166   :  { %5467 = vmatpush1.bf16.msra.mxu0 %v7107_v21  ;;  %5496 = vmatpush3.bf16.msra.mxu1 %v7128_v43 }
 0x167   :  { %5469 = vmatprep.subr.bf16.mxu0 %v7110_v23  ;;  %5497 = vmatprep.subr.bf16.mxu1 %v6991_v0 }
 0x16a   :  { %5471 = vmatpush1.bf16.msra.mxu0 %v7115_v32  ;;  %5499 = vmatpush3.bf16.msra.mxu1 %v7138_v52 }
 0x16b   :  { %5473 = vmatprep.subr.bf16.mxu0 %v7121_v35  ;;  %5500 = vmatprep.subr.bf16.mxu1 %v6991_v0 }
 0x16e   :  { %5475 = vmatpush1.bf16.msra.mxu0 %v7125_v41  ;;  %5502 = vmatpush3.bf16.msra.mxu1 %v7148_v61 }
 0x16f   :  { %5477 = vmatprep.subr.bf16.mxu0 %v7131_v44  ;;  %5503 = vmatprep.subr.bf16.mxu1 %v6991_v0 }
 0x172   :  { %5479 = vmatpush1.bf16.msra.mxu0 %v7135_v50  ;;  %5505 = vmatpush3.bf16.msra.mxu1 %v7158_v6 }
 0x173   :  { %5481 = vmatprep.subr.bf16.mxu0 %v7141_v53  ;;  %5506 = vmatprep.subr.bf16.mxu1 %v6991_v0 }
 0x176   :  { %5483 = vmatpush1.bf16.msra.mxu0 %v7145_v59  ;;  %5508 = vmatpush3.bf16.msra.mxu1 %v7164_v11 }
 0x177   :  { %5485 = vmatprep.subr.bf16.mxu0 %v7151_v62  ;;  %5509 = vmatprep.subr.bf16.mxu1 %v6991_v0 }
 0x17a   :  { %5487 = vmatpush1.bf16.msra.mxu0 %v7155_v4  ;;  %5511 = vmatpush3.bf16.msra.mxu1 %v7170_v14 }
 0x17b   :  { %5513 = vmatprep.subr.bf16.mxu0 %v7093_v5  ;;  %5544 = vmatprep.subr.bf16.mxu1 %v6991_v0 }
 0x230   :  { %v360_v56 = vpop.f32.mrb[2].mxu0  ;;  %v431_v57 = vpop.f32.mrb[2].mxu1 }
 0x231   :  { %v435_v60 = vadd.f32 %v4058_v55, %v360_v56  ;;  %v362_v63 = vpop.f32.mrb[3].mxu0  ;;  %v4573_v2 = vpop.f32.mrb[3].mxu1  ;;  %v452_v20 = vadd.f32 %v7217_v36, %v431_v57 }
 0x232   :  { %v445_v7 = vadd.f32 %v443_v58, %v362_v63  ;;  %v624_v58 = vrot.slane %v4061_v37, 4 }
 0x233   :  { %v4059_v3 = vmul.f32 -1.442695, %v435_v60 }
 0x234   :  { %v4060_v8 = vmul.f32 -1.442695, %v445_v7 }
 0x235   :  { %6741 = vpow2.f32 %v4059_v3 }
 0x236   :  { %6743 = vpow2.f32 %v4060_v8 }
 0x23f   :  { %v6742_v12 = vpop.eup %6741 }
 0x240   :  { %v439_v13 = vadd.f32 1.0, %v6742_v12  ;;  %v6744_v17 = vpop.eup %6743 }
 0x241   :  { %v449_v18 = vadd.f32 1.0, %v6744_v17 }
 0x242   :  { %6745 = vrcp.f32 %v439_v13 }
 0x243   :  { %6747 = vrcp.f32 %v449_v18 }
 0x24c   :  { %v6746_v22 = vpop.eup %6745 }
 0x24d   :  { %v453_v24 = vmul.f32 %v6746_v22, %v452_v20  ;;  %v6748_v26 = vpop.eup %6747 }
 0x24e   :  { %v458_v27 = vsub.f32 1.0, %v6748_v26  ;;  %v460_v31 = vmul.f32 %v6748_v26, %v7220_v54 }
 0x24f   :  { %v456_v25 = vadd.f32 %v454_v19, %v453_v24  ;;  %v4064_v19 = vld [vmem:[%s8272_s0 + $0x12] sm:$0x3f] }
 0x250   :  { %v783_v24 = vrot.slane %v4064_v19, 2 }
 0x251   :  { %6749 = vtanh.f32 %v456_v25 }
 0x25b   :  { %v6750_v28 = vpop.eup %6749 }
 0x25c   :  { %v459_v30 = vmul.f32 %v6750_v28, %v458_v27 }
 0x25e   :  { %v7264_v33 = vadd.f32 %v460_v31, %v459_v30 }
 0x260   :  { %529 = vmatmul.mubr.f32.vlgmr.msra.gmra.mrb[4].mxu0 %v7264_v33  ;;  %4607 = vmatmul.mubr.f32.vlgmr.msra.gmra.mrb[4].mxu1 %v7264_v33 }
 0x261   :  { %5515 = vmatpush1.bf16.msra.mxu0 %v7095_v9  ;;  %5546 = vmatpush3.bf16.msra.mxu1 %v7112_v29 }
 0x262   :  { %5517 = vmatprep.subr.bf16.mxu0 %v7097_v10  ;;  %5547 = vmatprep.subr.bf16.mxu1 %v6991_v0 }
 0x263   :  { %698 = vmatprep.mubr.f32.mxu0 %v6992_v1  ;;  %4641 = vmatprep.mubr.msk.f32.mxu1 %vm6993_vm0, %v6992_v1 }
 0x265   :  { %5519 = vmatpush1.bf16.msra.mxu0 %v7101_v15  ;;  %5549 = vmatpush3.bf16.msra.mxu1 %v7118_v34 }
 0x266   :  { %5521 = vmatprep.subr.bf16.mxu0 %v7104_v16  ;;  %5550 = vmatprep.subr.bf16.mxu1 %v6991_v0 }
 0x269   :  { %5523 = vmatpush1.bf16.msra.mxu0 %v7107_v21  ;;  %5552 = vmatpush3.bf16.msra.mxu1 %v7128_v43 }
 0x26a   :  { %5525 = vmatprep.subr.bf16.mxu0 %v7110_v23  ;;  %5553 = vmatprep.subr.bf16.mxu1 %v6991_v0 }
 0x26d   :  { %5527 = vmatpush1.bf16.msra.mxu0 %v7115_v32  ;;  %5555 = vmatpush3.bf16.msra.mxu1 %v7138_v52 }
 0x26e   :  { %5529 = vmatprep.subr.bf16.mxu0 %v7121_v35  ;;  %5556 = vmatprep.subr.bf16.mxu1 %v6991_v0 }
 0x271   :  { %5531 = vmatpush1.bf16.msra.mxu0 %v7125_v41  ;;  %5558 = vmatpush3.bf16.msra.mxu1 %v7148_v61 }
 0x272   :  { %5533 = vmatprep.subr.bf16.mxu0 %v7131_v44  ;;  %5559 = vmatprep.subr.bf16.mxu1 %v6991_v0 }
 0x275   :  { %5535 = vmatpush1.bf16.msra.mxu0 %v7135_v50  ;;  %5561 = vmatpush3.bf16.msra.mxu1 %v7158_v6 }
 0x276   :  { %5537 = vmatprep.subr.bf16.mxu0 %v7141_v53  ;;  %5562 = vmatprep.subr.bf16.mxu1 %v6991_v0 }
 0x279   :  { %5539 = vmatpush1.bf16.msra.mxu0 %v7145_v59  ;;  %5564 = vmatpush3.bf16.msra.mxu1 %v7164_v11 }
 0x27a   :  { %5541 = vmatprep.subr.bf16.mxu0 %v7151_v62  ;;  %5565 = vmatprep.subr.bf16.mxu1 %v6991_v0 }
 0x27d   :  { %5543 = vmatpush1.bf16.msra.mxu0 %v7155_v4  ;;  %5567 = vmatpush3.bf16.msra.mxu1 %v7170_v14 }
 0x27e   :  { %5569 = vmatprep.subr.bf16.mxu0 %v7093_v5  ;;  %5600 = vmatprep.subr.bf16.mxu1 %v6991_v0 }
 0x333   :  { %v530_v38 = vpop.f32.mrb[4].mxu0  ;;  %v601_v39 = vpop.f32.mrb[4].mxu1 }
 0x334   :  { %v605_v42 = vadd.f32 %v4061_v37, %v530_v38  ;;  %v532_v45 = vpop.f32.mrb[5].mxu0  ;;  %v4608_v46 = vpop.f32.mrb[5].mxu1  ;;  %v622_v60 = vadd.f32 %v7217_v36, %v601_v39 }
 0x335   :  { %v615_v48 = vadd.f32 %v613_v40, %v532_v45 }
 0x336   :  { %v4062_v47 = vmul.f32 -1.442695, %v605_v42  ;;  %v794_v42 = vrot.slane %v4064_v19, 4 }
 0x337   :  { %v4063_v49 = vmul.f32 -1.442695, %v615_v48 }
 0x338   :  { %6751 = vpow2.f32 %v4062_v47 }
 0x339   :  { %6753 = vpow2.f32 %v4063_v49 }
 0x342   :  { %v6752_v51 = vpop.eup %6751 }
 0x343   :  { %v609_v55 = vadd.f32 1.0, %v6752_v51  ;;  %v6754_v56 = vpop.eup %6753 }
 0x344   :  { %v619_v57 = vadd.f32 1.0, %v6754_v56 }
 0x345   :  { %6755 = vrcp.f32 %v609_v55 }
 0x346   :  { %6757 = vrcp.f32 %v619_v57 }
 0x34f   :  { %v6756_v63 = vpop.eup %6755 }
 0x350   :  { %v623_v2 = vmul.f32 %v6756_v63, %v622_v60  ;;  %v6758_v7 = vpop.eup %6757  ;;  %v4067_v60 = vld [vmem:[%s8272_s0 + $0x18] sm:$0x3f] }
 0x351   :  { %v628_v8 = vsub.f32 1.0, %v6758_v7  ;;  %v630_v17 = vmul.f32 %v6758_v7, %v7264_v33 }
 0x352   :  { %v626_v3 = vadd.f32 %v624_v58, %v623_v2 }
 0x354   :  { %6759 = vtanh.f32 %v626_v3  ;;  %v953_v3 = vrot.slane %v4067_v60, 2 }
 0x35e   :  { %v6760_v12 = vpop.eup %6759 }
 0x35f   :  { %v629_v13 = vmul.f32 %v6760_v12, %v628_v8 }
 0x361   :  { %v7308_v18 = vadd.f32 %v630_v17, %v629_v13 }
 0x363   :  { %699 = vmatmul.mubr.f32.vlgmr.msra.gmra.mrb[6].mxu0 %v7308_v18  ;;  %4642 = vmatmul.mubr.f32.vlgmr.msra.gmra.mrb[6].mxu1 %v7308_v18 }
 0x364   :  { %5571 = vmatpush1.bf16.msra.mxu0 %v7095_v9  ;;  %5602 = vmatpush3.bf16.msra.mxu1 %v7112_v29 }
 0x365   :  { %5573 = vmatprep.subr.bf16.mxu0 %v7097_v10  ;;  %5603 = vmatprep.subr.bf16.mxu1 %v6991_v0 }
 0x366   :  { %868 = vmatprep.mubr.f32.mxu0 %v6992_v1  ;;  %4676 = vmatprep.mubr.msk.f32.mxu1 %vm6993_vm0, %v6992_v1 }
 0x368   :  { %5575 = vmatpush1.bf16.msra.mxu0 %v7101_v15  ;;  %5605 = vmatpush3.bf16.msra.mxu1 %v7118_v34 }
 0x369   :  { %5577 = vmatprep.subr.bf16.mxu0 %v7104_v16  ;;  %5606 = vmatprep.subr.bf16.mxu1 %v6991_v0 }
 0x36c   :  { %5579 = vmatpush1.bf16.msra.mxu0 %v7107_v21  ;;  %5608 = vmatpush3.bf16.msra.mxu1 %v7128_v43 }
 0x36d   :  { %5581 = vmatprep.subr.bf16.mxu0 %v7110_v23  ;;  %5609 = vmatprep.subr.bf16.mxu1 %v6991_v0 }
 0x370   :  { %5583 = vmatpush1.bf16.msra.mxu0 %v7115_v32  ;;  %5611 = vmatpush3.bf16.msra.mxu1 %v7138_v52 }
 0x371   :  { %5585 = vmatprep.subr.bf16.mxu0 %v7121_v35  ;;  %5612 = vmatprep.subr.bf16.mxu1 %v6991_v0 }
 0x374   :  { %5587 = vmatpush1.bf16.msra.mxu0 %v7125_v41  ;;  %5614 = vmatpush3.bf16.msra.mxu1 %v7148_v61 }
 0x375   :  { %5589 = vmatprep.subr.bf16.mxu0 %v7131_v44  ;;  %5615 = vmatprep.subr.bf16.mxu1 %v6991_v0 }
 0x378   :  { %5591 = vmatpush1.bf16.msra.mxu0 %v7135_v50  ;;  %5617 = vmatpush3.bf16.msra.mxu1 %v7158_v6 }
 0x379   :  { %5593 = vmatprep.subr.bf16.mxu0 %v7141_v53  ;;  %5618 = vmatprep.subr.bf16.mxu1 %v6991_v0 }
 0x37c   :  { %5595 = vmatpush1.bf16.msra.mxu0 %v7145_v59  ;;  %5620 = vmatpush3.bf16.msra.mxu1 %v7164_v11 }
 0x37d   :  { %5597 = vmatprep.subr.bf16.mxu0 %v7151_v62  ;;  %5621 = vmatprep.subr.bf16.mxu1 %v6991_v0 }
 0x380   :  { %5599 = vmatpush1.bf16.msra.mxu0 %v7155_v4  ;;  %5623 = vmatpush3.bf16.msra.mxu1 %v7170_v14 }
 0x381   :  { %5625 = vmatprep.subr.bf16.mxu0 %v7093_v5  ;;  %5656 = vmatprep.subr.bf16.mxu1 %v6991_v0 }
 0x436   :  { %v700_v20 = vpop.f32.mrb[6].mxu0  ;;  %v771_v22 = vpop.f32.mrb[6].mxu1 }
 0x437   :  { %v775_v25 = vadd.f32 %v4064_v19, %v700_v20  ;;  %v702_v26 = vpop.f32.mrb[7].mxu0  ;;  %v4643_v27 = vpop.f32.mrb[7].mxu1  ;;  %v792_v45 = vadd.f32 %v7217_v36, %v771_v22 }
 0x438   :  { %v785_v30 = vadd.f32 %v783_v24, %v702_v26  ;;  %v964_v26 = vrot.slane %v4067_v60, 4 }
 0x439   :  { %v4065_v28 = vmul.f32 -1.442695, %v775_v25 }
 0x43a   :  { %v4066_v31 = vmul.f32 -1.442695, %v785_v30 }
 0x43b   :  { %6761 = vpow2.f32 %v4065_v28 }
 0x43c   :  { %6763 = vpow2.f32 %v4066_v31 }
 0x445   :  { %v6762_v37 = vpop.eup %6761 }
 0x446   :  { %v779_v38 = vadd.f32 1.0, %v6762_v37  ;;  %v6764_v39 = vpop.eup %6763 }
 0x447   :  { %v789_v40 = vadd.f32 1.0, %v6764_v39 }
 0x448   :  { %6765 = vrcp.f32 %v779_v38 }
 0x449   :  { %6767 = vrcp.f32 %v789_v40 }
 0x452   :  { %v6766_v46 = vpop.eup %6765 }
 0x453   :  { %v793_v47 = vmul.f32 %v6766_v46, %v792_v45  ;;  %v6768_v49 = vpop.eup %6767  ;;  %v4070_v46 = vld [vmem:[%s8272_s0 + $0x1e] sm:$0x3f] }
 0x454   :  { %v798_v51 = vsub.f32 1.0, %v6768_v49  ;;  %v800_v57 = vmul.f32 %v6768_v49, %v7308_v18  ;;  %v1123_v49 = vrot.slane %v4070_v46, 2 }
 0x455   :  { %v796_v48 = vadd.f32 %v794_v42, %v793_v47 }
 0x457   :  { %6769 = vtanh.f32 %v796_v48 }
 0x461   :  { %v6770_v55 = vpop.eup %6769 }
 0x462   :  { %v799_v56 = vmul.f32 %v6770_v55, %v798_v51 }
 0x464   :  { %v7352_v58 = vadd.f32 %v800_v57, %v799_v56 }
 0x466   :  { %869 = vmatmul.mubr.f32.vlgmr.msra.gmra.mrb[8].mxu0 %v7352_v58  ;;  %4677 = vmatmul.mubr.f32.vlgmr.msra.gmra.mrb[8].mxu1 %v7352_v58 }
 0x467   :  { %5627 = vmatpush1.bf16.msra.mxu0 %v7095_v9  ;;  %5658 = vmatpush3.bf16.msra.mxu1 %v7112_v29 }
 0x468   :  { %5629 = vmatprep.subr.bf16.mxu0 %v7097_v10  ;;  %5659 = vmatprep.subr.bf16.mxu1 %v6991_v0 }
 0x469   :  { %1038 = vmatprep.mubr.f32.mxu0 %v6992_v1  ;;  %4711 = vmatprep.mubr.msk.f32.mxu1 %vm6993_vm0, %v6992_v1 }
 0x46b   :  { %5631 = vmatpush1.bf16.msra.mxu0 %v7101_v15  ;;  %5661 = vmatpush3.bf16.msra.mxu1 %v7118_v34 }
 0x46c   :  { %5633 = vmatprep.subr.bf16.mxu0 %v7104_v16  ;;  %5662 = vmatprep.subr.bf16.mxu1 %v6991_v0 }
 0x46f   :  { %5635 = vmatpush1.bf16.msra.mxu0 %v7107_v21  ;;  %5664 = vmatpush3.bf16.msra.mxu1 %v7128_v43 }
 0x470   :  { %5637 = vmatprep.subr.bf16.mxu0 %v7110_v23  ;;  %5665 = vmatprep.subr.bf16.mxu1 %v6991_v0 }
 0x473   :  { %5639 = vmatpush1.bf16.msra.mxu0 %v7115_v32  ;;  %5667 = vmatpush3.bf16.msra.mxu1 %v7138_v52 }
 0x474   :  { %5641 = vmatprep.subr.bf16.mxu0 %v7121_v35  ;;  %5668 = vmatprep.subr.bf16.mxu1 %v6991_v0 }
 0x477   :  { %5643 = vmatpush1.bf16.msra.mxu0 %v7125_v41  ;;  %5670 = vmatpush3.bf16.msra.mxu1 %v7148_v61 }
 0x478   :  { %5645 = vmatprep.subr.bf16.mxu0 %v7131_v44  ;;  %5671 = vmatprep.subr.bf16.mxu1 %v6991_v0 }
 0x47b   :  { %5647 = vmatpush1.bf16.msra.mxu0 %v7135_v50  ;;  %5673 = vmatpush3.bf16.msra.mxu1 %v7158_v6 }
 0x47c   :  { %5649 = vmatprep.subr.bf16.mxu0 %v7141_v53  ;;  %5674 = vmatprep.subr.bf16.mxu1 %v6991_v0 }
 0x47f   :  { %5651 = vmatpush1.bf16.msra.mxu0 %v7145_v59  ;;  %5676 = vmatpush3.bf16.msra.mxu1 %v7164_v11 }
 0x480   :  { %5653 = vmatprep.subr.bf16.mxu0 %v7151_v62  ;;  %5677 = vmatprep.subr.bf16.mxu1 %v6991_v0 }
 0x483   :  { %5655 = vmatpush1.bf16.msra.mxu0 %v7155_v4  ;;  %5679 = vmatpush3.bf16.msra.mxu1 %v7170_v14 }
 0x484   :  { %5681 = vmatprep.subr.bf16.mxu0 %v7093_v5  ;;  %5712 = vmatprep.subr.bf16.mxu1 %v6991_v0 }
 0x539   :  { %v870_v63 = vpop.f32.mrb[8].mxu0  ;;  %v941_v2 = vpop.f32.mrb[8].mxu1 }
 0x53a   :  { %v945_v7 = vadd.f32 %v4067_v60, %v870_v63  ;;  %v872_v8 = vpop.f32.mrb[9].mxu0  ;;  %v4678_v12 = vpop.f32.mrb[9].mxu1  ;;  %v962_v27 = vadd.f32 %v7217_v36, %v941_v2 }
 0x53b   :  { %v955_v17 = vadd.f32 %v953_v3, %v872_v8  ;;  %v1134_v8 = vrot.slane %v4070_v46, 4 }
 0x53c   :  { %v4068_v13 = vmul.f32 -1.442695, %v945_v7 }
 0x53d   :  { %v4069_v19 = vmul.f32 -1.442695, %v955_v17 }
 0x53e   :  { %6771 = vpow2.f32 %v4068_v13 }
 0x53f   :  { %6773 = vpow2.f32 %v4069_v19 }
 0x548   :  { %v6772_v20 = vpop.eup %6771 }
 0x549   :  { %v949_v22 = vadd.f32 1.0, %v6772_v20  ;;  %v6774_v24 = vpop.eup %6773 }
 0x54a   :  { %v959_v25 = vadd.f32 1.0, %v6774_v24 }
 0x54b   :  { %6775 = vrcp.f32 %v949_v22 }
 0x54c   :  { %6777 = vrcp.f32 %v959_v25 }
 0x555   :  { %v6776_v28 = vpop.eup %6775 }
 0x556   :  { %v963_v30 = vmul.f32 %v6776_v28, %v962_v27  ;;  %v6778_v37 = vpop.eup %6777  ;;  %v1483_v28 = vld [vmem:[#allocation5] sm:$0xff] }
 0x557   :  { %v968_v38 = vsub.f32 1.0, %v6778_v37  ;;  %v970_v42 = vmul.f32 %v6778_v37, %v7352_v58  ;;  %v1485_v37 = vld [vmem:[#allocation5 + $0x10] sm:$0xff] }
 0x558   :  { %v966_v31 = vadd.f32 %v964_v26, %v963_v30 }
 0x55a   :  { %6779 = vtanh.f32 %v966_v31  ;;  %v1486_v31 = vld [vmem:[#allocation5 + $0x18] sm:$0xff] }
 0x564   :  { %v6780_v39 = vpop.eup %6779 }
 0x565   :  { %v969_v40 = vmul.f32 %v6780_v39, %v968_v38  ;;  %v1488_v38 = vld [vmem:[#allocation5 + $0x28] sm:$0xff] }
 0x567   :  { %v7396_v45 = vadd.f32 %v970_v42, %v969_v40  ;;  %v1490_v40 = vld [vmem:[#allocation5 + $0x38] sm:$0xff]  ;;  %v1493_v42 = vld [vmem:[#allocation5 + $0x50] sm:$0xff] }
 0x569   :  { %1039 = vmatmul.mubr.f32.vlgmr.msra.gmra.mrb[10].mxu0 %v7396_v45  ;;  %4712 = vmatmul.mubr.f32.vlgmr.msra.gmra.mrb[10].mxu1 %v7396_v45 }
 0x56a   :  { %5683 = vmatpush1.bf16.msra.mxu0 %v7095_v9  ;;  %5714 = vmatpush3.bf16.msra.mxu1 %v7112_v29 }
 0x56b   :  { %5685 = vmatprep.subr.bf16.mxu0 %v7097_v10  ;;  %5715 = vmatprep.subr.bf16.mxu1 %v6991_v0 }
 0x56c   :  { %1208 = vmatprep.mubr.f32.mxu0 %v6992_v1  ;;  %4746 = vmatprep.mubr.msk.f32.mxu1 %vm6993_vm0, %v6992_v1 }
 0x56e   :  { %5687 = vmatpush1.bf16.msra.mxu0 %v7101_v15  ;;  %5717 = vmatpush3.bf16.msra.mxu1 %v7118_v34 }
 0x56f   :  { %5689 = vmatprep.subr.bf16.mxu0 %v7104_v16  ;;  %5718 = vmatprep.subr.bf16.mxu1 %v6991_v0 }
 0x572   :  { %5691 = vmatpush1.bf16.msra.mxu0 %v7107_v21  ;;  %5720 = vmatpush3.bf16.msra.mxu1 %v7128_v43 }
 0x573   :  { %5693 = vmatprep.subr.bf16.mxu0 %v7110_v23  ;;  %5721 = vmatprep.subr.bf16.mxu1 %v6991_v0 }
 0x576   :  { %5695 = vmatpush1.bf16.msra.mxu0 %v7115_v32  ;;  %5723 = vmatpush3.bf16.msra.mxu1 %v7138_v52 }
 0x577   :  { %5697 = vmatprep.subr.bf16.mxu0 %v7121_v35  ;;  %5724 = vmatprep.subr.bf16.mxu1 %v6991_v0 }
 0x57a   :  { %5699 = vmatpush1.bf16.msra.mxu0 %v7125_v41  ;;  %5726 = vmatpush3.bf16.msra.mxu1 %v7148_v61 }
 0x57b   :  { %5701 = vmatprep.subr.bf16.mxu0 %v7131_v44  ;;  %5727 = vmatprep.subr.bf16.mxu1 %v6991_v0 }
 0x57e   :  { %5703 = vmatpush1.bf16.msra.mxu0 %v7135_v50  ;;  %5729 = vmatpush3.bf16.msra.mxu1 %v7158_v6 }
 0x57f   :  { %5705 = vmatprep.subr.bf16.mxu0 %v7141_v53  ;;  %5730 = vmatprep.subr.bf16.mxu1 %v6991_v0 }
 0x582   :  { %5707 = vmatpush1.bf16.msra.mxu0 %v7145_v59  ;;  %5732 = vmatpush3.bf16.msra.mxu1 %v7164_v11 }
 0x583   :  { %5709 = vmatprep.subr.bf16.mxu0 %v7151_v62  ;;  %5733 = vmatprep.subr.bf16.mxu1 %v6991_v0 }
 0x586   :  { %5711 = vmatpush1.bf16.msra.mxu0 %v7155_v4  ;;  %5735 = vmatpush3.bf16.msra.mxu1 %v7170_v14 }
 0x587   :  { %5737 = vmatprep.subr.bf16.mxu0 %v7093_v5  ;;  %5768 = vmatprep.subr.bf16.mxu1 %v6991_v0 }
 0x63c   :  { %v1040_v47 = vpop.f32.mrb[10].mxu0  ;;  %v1111_v48 = vpop.f32.mrb[10].mxu1 }
 0x63d   :  { %v1115_v51 = vadd.f32 %v4070_v46, %v1040_v47  ;;  %v1042_v55 = vpop.f32.mrb[11].mxu0  ;;  %v4713_v56 = vpop.f32.mrb[11].mxu1  ;;  %v1132_v12 = vadd.f32 %v7217_v36, %v1111_v48  ;;  %v7486_v48 = vpack.c.bf16 %v1486_v31, %v1483_v28  ;;  %v1523_v28 = vld [vmem:[#allocation5 + $0x140] sm:$0xff] }
 0x63e   :  { %v1125_v60 = vadd.f32 %v1123_v49, %v1042_v55  ;;  %v1489_v49 = vld [vmem:[#allocation5 + $0x30] sm:$0xff]  ;;  %v7492_v55 = vpack.c.bf16 %v1493_v42, %v1490_v40  ;;  %v1492_v56 = vld [vmem:[#allocation5 + $0x48] sm:$0xff] }
 0x63f   :  { %v4071_v57 = vmul.f32 -1.442695, %v1115_v51  ;;  %v1521_v40 = vld [vmem:[#allocation5 + $0x130] sm:$0xff]  ;;  %v1524_v42 = vld [vmem:[#allocation5 + $0x148] sm:$0xff] }
 0x640   :  { %v4072_v63 = vmul.f32 -1.442695, %v1125_v60  ;;  %v1494_v60 = vld [vmem:[#allocation5 + $0x58] sm:$0xff] }
 0x641   :  { %6781 = vpow2.f32 %v4071_v57  ;;  %v1491_v57 = vld [vmem:[#allocation5 + $0x40] sm:$0xff] }
 0x642   :  { %6783 = vpow2.f32 %v4072_v63  ;;  %v1496_v63 = vld [vmem:[#allocation5 + $0x68] sm:$0xff] }
 0x64b   :  { %v6782_v2 = vpop.eup %6781 }
 0x64c   :  { %v1119_v3 = vadd.f32 1.0, %v6782_v2  ;;  %v6784_v5 = vpop.eup %6783  ;;  %v1499_v2 = vld [vmem:[#allocation5 + $0x80] sm:$0xff] }
 0x64d   :  { %v1129_v7 = vadd.f32 1.0, %v6784_v5  ;;  %v7500_v5 = vpack.c.bf16 %v1494_v60, %v1491_v57  ;;  %v1525_v57 = vld [vmem:[#allocation5 + $0x150] sm:$0xff] }
 0x64e   :  { %6785 = vrcp.f32 %v1119_v3  ;;  %v7498_v3 = vpack.c.bf16 %v1492_v56, %v1489_v49  ;;  %v7553_v56 = vpack.c.bf16 %v1524_v42, %v1521_v40  ;;  %v2691_v42 = vld [vmem:[#allocation7 + $0x78] sm:$0xff] }
 0x64f   :  { %6787 = vrcp.f32 %v1129_v7  ;;  %v1495_v7 = vld [vmem:[#allocation5 + $0x60] sm:$0xff] }
 0x658   :  { %v6786_v13 = vpop.eup %6785 }
 0x659   :  { %v1133_v17 = vmul.f32 %v6786_v13, %v1132_v12  ;;  %v6788_v20 = vpop.eup %6787  ;;  %v1498_v12 = vld [vmem:[#allocation5 + $0x78] sm:$0xff]  ;;  %v1497_v13 = vld [vmem:[#allocation5 + $0x70] sm:$0xff] }
 0x65a   :  { %v1138_v22 = vsub.f32 1.0, %v6788_v20  ;;  %v1140_v26 = vmul.f32 %v6788_v20, %v7396_v45  ;;  %v1505_v20 = vld [vmem:[#allocation5 + $0xb0] sm:$0xff] }
 0x65b   :  { %v1136_v19 = vadd.f32 %v1134_v8, %v1133_v17  ;;  %v7504_v8 = vpack.c.bf16 %v1499_v2, %v1496_v63  ;;  %v1500_v17 = vld [vmem:[#allocation5 + $0x88] sm:$0xff]  ;;  %v1527_v2 = vld [vmem:[#allocation5 + $0x160] sm:$0xff] }
 0x65c   :  { %v1528_v63 = vld [vmem:[#allocation5 + $0x168] sm:$0xff] }
 0x65d   :  { %6789 = vtanh.f32 %v1136_v19  ;;  %v1502_v19 = vld [vmem:[#allocation5 + $0x98] sm:$0xff] }
 0x667   :  { %v6790_v24 = vpop.eup %6789 }
 0x668   :  { %v1139_v25 = vmul.f32 %v6790_v24, %v1138_v22  ;;  %v7511_v22 = vpack.c.bf16 %v1498_v12, %v1495_v7  ;;  %v7513_v24 = vpack.c.bf16 %v1500_v17, %v1497_v13  ;;  %v1530_v7 = vld [vmem:[#allocation5 + $0x178] sm:$0xff]  ;;  %v7561_v12 = vpack.c.bf16 %v1528_v63, %v1525_v57 }
 0x669   :  { %v7563_v13 = vpack.c.bf16 %v1530_v7, %v1527_v2  ;;  %v2697_v7 = vld [vmem:[#allocation7 + $0xa8] sm:$0xff] }
 0x66a   :  { %v7440_v27 = vadd.f32 %v1140_v26, %v1139_v25  ;;  %v1501_v25 = vld [vmem:[#allocation5 + $0x90] sm:$0xff]  ;;  %v7517_v26 = vpack.c.bf16 %v1505_v20, %v1502_v19 }
 0x66c   :  { %1209 = vmatmul.mubr.f32.vlgmr.msra.gmra.mrb[12].mxu0 %v7440_v27  ;;  %4747 = vmatmul.mubr.f32.vlgmr.msra.gmra.mrb[12].mxu1 %v7440_v27 }
 0x66d   :  { %5739 = vmatpush1.bf16.msra.mxu0 %v7095_v9  ;;  %5770 = vmatpush3.bf16.msra.mxu1 %v7112_v29  ;;  %v1484_v9 = vld [vmem:[#allocation5 + $0x8] sm:$0xff] }
 0x66e   :  { %5741 = vmatprep.subr.bf16.mxu0 %v7097_v10  ;;  %5771 = vmatprep.subr.bf16.mxu1 %v6991_v0  ;;  %v1487_v10 = vld [vmem:[#allocation5 + $0x20] sm:$0xff] }
 0x66f   :  { %1378 = vmatprep.mubr.f32.mxu0 %v6992_v1  ;;  %4781 = vmatprep.mubr.msk.f32.mxu1 %vm6993_vm0, %v6992_v1 }
 0x671   :  { %5743 = vmatpush1.bf16.msra.mxu0 %v7101_v15  ;;  %5773 = vmatpush3.bf16.msra.mxu1 %v7118_v34  ;;  %v7478_v15 = vpack.c.bf16 %v1487_v10, %v1484_v9  ;;  %v1504_v9 = vld [vmem:[#allocation5 + $0xa8] sm:$0xff]  ;;  %v1503_v10 = vld [vmem:[#allocation5 + $0xa0] sm:$0xff] }
 0x672   :  { %5745 = vmatprep.subr.bf16.mxu0 %v7104_v16  ;;  %5774 = vmatprep.subr.bf16.mxu1 %v6991_v0  ;;  %v4073_v16 = vld [vmem:[%s8272_s0 + $0x24] sm:$0x3f] }
 0x673   :  { %v1293_v29 = vrot.slane %v4073_v16, 2 }
 0x675   :  { %5747 = vmatpush1.bf16.msra.mxu0 %v7107_v21  ;;  %5776 = vmatpush3.bf16.msra.mxu1 %v7128_v43 }
 0x676   :  { %5749 = vmatprep.subr.bf16.mxu0 %v7110_v23  ;;  %5777 = vmatprep.subr.bf16.mxu1 %v6991_v0 }
 0x679   :  { %5751 = vmatpush1.bf16.msra.mxu0 %v7115_v32  ;;  %5779 = vmatpush3.bf16.msra.mxu1 %v7138_v52 }
 0x67a   :  { %5753 = vmatprep.subr.bf16.mxu0 %v7121_v35  ;;  %5780 = vmatprep.subr.bf16.mxu1 %v6991_v0 }
 0x67d   :  { %5755 = vmatpush1.bf16.msra.mxu0 %v7125_v41  ;;  %5782 = vmatpush3.bf16.msra.mxu1 %v7148_v61  ;;  %v1304_v61 = vrot.slane %v4073_v16, 4 }
 0x67e   :  { %5757 = vmatprep.subr.bf16.mxu0 %v7131_v44  ;;  %5783 = vmatprep.subr.bf16.mxu1 %v6991_v0 }
 0x681   :  { %5759 = vmatpush1.bf16.msra.mxu0 %v7135_v50  ;;  %5785 = vmatpush3.bf16.msra.mxu1 %v7158_v6 }
 0x682   :  { %5761 = vmatprep.subr.bf16.mxu0 %v7141_v53  ;;  %5786 = vmatprep.subr.bf16.mxu1 %v6991_v0 }
 0x685   :  { %5763 = vmatpush1.bf16.msra.mxu0 %v7145_v59  ;;  %5788 = vmatpush3.bf16.msra.mxu1 %v7164_v11 }
 0x686   :  { %5765 = vmatprep.subr.bf16.mxu0 %v7151_v62  ;;  %5789 = vmatprep.subr.bf16.mxu1 %v6991_v0 }
 0x689   :  { %5767 = vmatpush1.bf16.msra.mxu0 %v7155_v4  ;;  %5791 = vmatpush3.bf16.msra.mxu1 %v7170_v14 }
 0x68a   :  { %5824 = vmatprep.subr.bf16.mxu1 %v6991_v0  ;;  %5793 = vmatprep.subr.bf16.mxu0 %v7478_v15 }
 0x73f   :  { %v1210_v21 = vpop.f32.mrb[12].mxu0  ;;  %v1281_v23 = vpop.f32.mrb[12].mxu1 }
 0x740   :  { %v1285_v32 = vadd.f32 %v4073_v16, %v1210_v21  ;;  %v1212_v34 = vpop.f32.mrb[13].mxu0  ;;  %v4748_v35 = vpop.f32.mrb[13].mxu1  ;;  %v1302_v62 = vadd.f32 %v7217_v36, %v1281_v23  ;;  %v7488_v36 = vpack.c.bf16 %v1488_v38, %v1485_v37  ;;  %v1506_v16 = vld [vmem:[#allocation5 + $0xb8] sm:$0xff]  ;;  %v1508_v21 = vld [vmem:[#allocation5 + $0xc8] sm:$0xff]  ;;  %v1511_v23 = vld [vmem:[#allocation5 + $0xe0] sm:$0xff] }
 0x741   :  { %v1295_v43 = vadd.f32 %v1293_v29, %v1212_v34  ;;  %v7521_v29 = vpack.c.bf16 %v1504_v9, %v1501_v25  ;;  %v1507_v34 = vld [vmem:[#allocation5 + $0xc0] sm:$0xff]  ;;  %v7527_v35 = vpack.c.bf16 %v1511_v23, %v1508_v21 }
 0x742   :  { %v4074_v41 = vmul.f32 -1.442695, %v1285_v32  ;;  %v7523_v32 = vpack.c.bf16 %v1506_v16, %v1503_v10  ;;  %v1519_v37 = vld [vmem:[#allocation5 + $0x120] sm:$0xff]  ;;  %v2677_v16 = vld [vmem:[#allocation7 + $0x8] sm:$0xff] }
 0x743   :  { %v4075_v44 = vmul.f32 -1.442695, %v1295_v43  ;;  %v1509_v43 = vld [vmem:[#allocation5 + $0xd0] sm:$0xff]  ;;  %v2680_v21 = vld [vmem:[#allocation7 + $0x20] sm:$0xff] }
 0x744   :  { %6791 = vpow2.f32 %v4074_v41  ;;  %v1510_v41 = vld [vmem:[#allocation5 + $0xd8] sm:$0xff] }
 0x745   :  { %6793 = vpow2.f32 %v4075_v44  ;;  %v1512_v44 = vld [vmem:[#allocation5 + $0xe8] sm:$0xff] }
 0x74e   :  { %v6792_v50 = vpop.eup %6791 }
 0x74f   :  { %v1289_v52 = vadd.f32 1.0, %v6792_v50  ;;  %v6794_v53 = vpop.eup %6793  ;;  %v1514_v50 = vld [vmem:[#allocation5 + $0xf8] sm:$0xff] }
 0x750   :  { %v1299_v59 = vadd.f32 1.0, %v6794_v53  ;;  %v7531_v53 = vpack.c.bf16 %v1510_v41, %v1507_v34  ;;  %v2678_v41 = vld [vmem:[#allocation7 + $0x10] sm:$0xff] }
 0x751   :  { %6795 = vrcp.f32 %v1289_v52  ;;  %v1517_v52 = vld [vmem:[#allocation5 + $0x110] sm:$0xff] }
 0x752   :  { %6797 = vrcp.f32 %v1299_v59  ;;  %v7533_v59 = vpack.c.bf16 %v1512_v44, %v1509_v43  ;;  %v2681_v43 = vld [vmem:[#allocation7 + $0x28] sm:$0xff] }
 0x75b   :  { %v6796_v4 = vpop.eup %6795 }
 0x75c   :  { %v1303_v6 = vmul.f32 %v6796_v4, %v1302_v62  ;;  %v6798_v14 = vpop.eup %6797  ;;  %v7537_v62 = vpack.c.bf16 %v1517_v52, %v1514_v50  ;;  %v1516_v4 = vld [vmem:[#allocation5 + $0x108] sm:$0xff]  ;;  %v2683_v50 = vld [vmem:[#allocation7 + $0x38] sm:$0xff]  ;;  %v2686_v52 = vld [vmem:[#allocation7 + $0x50] sm:$0xff] }
 0x75d   :  { %v1308_v30 = vsub.f32 1.0, %v6798_v14  ;;  %v1310_v47 = vmul.f32 %v6798_v14, %v7440_v27  ;;  %v1520_v14 = vld [vmem:[#allocation5 + $0x128] sm:$0xff] }
 0x75e   :  { %v1306_v11 = vadd.f32 %v1304_v61, %v1303_v6  ;;  %v1513_v61 = vld [vmem:[#allocation5 + $0xf0] sm:$0xff]  ;;  %v1515_v6 = vld [vmem:[#allocation5 + $0x100] sm:$0xff]  ;;  %v7547_v38 = vpack.c.bf16 %v1523_v28, %v1520_v14  ;;  %v2685_v14 = vld [vmem:[#allocation7 + $0x48] sm:$0xff] }
 0x75f   :  { %v2684_v28 = vld [vmem:[#allocation7 + $0x40] sm:$0xff] }
 0x760   :  { %6799 = vtanh.f32 %v1306_v11  ;;  %v1518_v11 = vld [vmem:[#allocation5 + $0x118] sm:$0xff] }
 0x761   :  { %v7543_v31 = vpack.c.bf16 %v1518_v11, %v1515_v6  ;;  %v7845_v11 = vpack.c.bf16 %v2686_v52, %v2683_v50  ;;  %v2722_v50 = vld [vmem:[#allocation7 + $0x170] sm:$0xff] }
 0x76a   :  { %v6800_v39 = vpop.eup %6799 }
 0x76b   :  { %v1309_v46 = vmul.f32 %v6800_v39, %v1308_v30  ;;  %v7541_v30 = vpack.c.bf16 %v1516_v4, %v1513_v61  ;;  %v1522_v39 = vld [vmem:[#allocation5 + $0x138] sm:$0xff]  ;;  %v7843_v4 = vpack.c.bf16 %v2681_v43, %v2678_v41  ;;  %v2714_v41 = vld [vmem:[#allocation7 + $0x130] sm:$0xff]  ;;  %v2717_v43 = vld [vmem:[#allocation7 + $0x148] sm:$0xff] }
 0x76c   :  { %v7551_v49 = vpack.c.bf16 %v1522_v39, %v1519_v37  ;;  %v2692_v37 = vld [vmem:[#allocation7 + $0x80] sm:$0xff] }
 0x76d   :  { %v7490_v51 = vadd.f32 %v1310_v47, %v1309_v46  ;;  %v1526_v46 = vld [vmem:[#allocation5 + $0x158] sm:$0xff]  ;;  %v1529_v47 = vld [vmem:[#allocation5 + $0x170] sm:$0xff] }
 0x76e   :  { %v7557_v60 = vpack.c.bf16 %v1529_v47, %v1526_v46  ;;  %v2690_v46 = vld [vmem:[#allocation7 + $0x70] sm:$0xff]  ;;  %v2693_v47 = vld [vmem:[#allocation7 + $0x88] sm:$0xff] }
 0x76f   :  { %1379 = vmatmul.mubr.f32.vlgmr.msra.gmra.mrb[14].mxu0 %v7490_v51  ;;  %4782 = vmatmul.mubr.f32.vlgmr.msra.gmra.mrb[14].mxu1 %v7490_v51  ;;  %v7864_v63 = vpack.c.bf16 %v2693_v47, %v2690_v46 }
 0x770   :  { %5795 = vmatpush1.bf16.msra.mxu0 %v7486_v48  ;;  %5826 = vmatpush3.bf16.msra.mxu1 %v7488_v36 }
 0x771   :  { %5797 = vmatprep.subr.bf16.mxu0 %v7492_v55  ;;  %5827 = vmatprep.subr.bf16.mxu1 %v6991_v0 }
 0x772   :  { %1612 = vmatprep.mubr.f32.mxu0 %v6992_v1  ;;  %4816 = vmatprep.mubr.msk.f32.mxu1 %vm6993_vm0, %v6992_v1 }
 0x774   :  { %5799 = vmatpush1.bf16.msra.mxu0 %v7498_v3  ;;  %5829 = vmatpush3.bf16.msra.mxu1 %v7500_v5 }
 0x775   :  { %5801 = vmatprep.subr.bf16.mxu0 %v7504_v8  ;;  %5830 = vmatprep.subr.bf16.mxu1 %v6991_v0 }
 0x778   :  { %5803 = vmatpush1.bf16.msra.mxu0 %v7511_v22  ;;  %5832 = vmatpush3.bf16.msra.mxu1 %v7513_v24 }
 0x779   :  { %5805 = vmatprep.subr.bf16.mxu0 %v7517_v26  ;;  %5833 = vmatprep.subr.bf16.mxu1 %v6991_v0 }
 0x77c   :  { %5807 = vmatpush1.bf16.msra.mxu0 %v7521_v29  ;;  %5835 = vmatpush3.bf16.msra.mxu1 %v7523_v32 }
 0x77d   :  { %5809 = vmatprep.subr.bf16.mxu0 %v7527_v35  ;;  %5836 = vmatprep.subr.bf16.mxu1 %v6991_v0 }
 0x780   :  { %5811 = vmatpush1.bf16.msra.mxu0 %v7531_v53  ;;  %5838 = vmatpush3.bf16.msra.mxu1 %v7533_v59 }
 0x781   :  { %5813 = vmatprep.subr.bf16.mxu0 %v7537_v62  ;;  %5839 = vmatprep.subr.bf16.mxu1 %v6991_v0 }
 0x784   :  { %5815 = vmatpush1.bf16.msra.mxu0 %v7541_v30  ;;  %5841 = vmatpush3.bf16.msra.mxu1 %v7543_v31 }
 0x785   :  { %5817 = vmatprep.subr.bf16.mxu0 %v7547_v38  ;;  %5842 = vmatprep.subr.bf16.mxu1 %v6991_v0 }
 0x788   :  { %5819 = vmatpush1.bf16.msra.mxu0 %v7551_v49  ;;  %5844 = vmatpush3.bf16.msra.mxu1 %v7553_v56 }
 0x789   :  { %5821 = vmatprep.subr.bf16.mxu0 %v7557_v60  ;;  %5845 = vmatprep.subr.bf16.mxu1 %v6991_v0 }
 0x78c   :  { %5823 = vmatpush1.bf16.msra.mxu0 %v7561_v12  ;;  %5847 = vmatpush3.bf16.msra.mxu1 %v7563_v13 }
 0x78d   :  { %5849 = vmatprep.subr.bf16.mxu0 %v7478_v15  ;;  %5880 = vmatprep.subr.bf16.mxu1 %v6991_v0 }
 0x78f   :  { %1613 = vmatmul.mubr.f32.vlgmr.msra.gmra.mrb[16].mxu0 %v7220_v54  ;;  %4817 = vmatmul.mubr.f32.vlgmr.msra.gmra.mrb[16].mxu1 %v7220_v54  ;;  %v4076_v54 = vld [vmem:[%s8272_s0 + $0x2a] sm:$0x3f] }
 0x790   :  { %5851 = vmatpush1.bf16.msra.mxu0 %v7486_v48  ;;  %5882 = vmatpush3.bf16.msra.mxu1 %v7488_v36 }
 0x791   :  { %5853 = vmatprep.subr.bf16.mxu0 %v7492_v55  ;;  %5883 = vmatprep.subr.bf16.mxu1 %v6991_v0 }
 0x792   :  { %1753 = vmatprep.mubr.f32.mxu0 %v6992_v1  ;;  %4851 = vmatprep.mubr.msk.f32.mxu1 %vm6993_vm0, %v6992_v1 }
 0x794   :  { %5855 = vmatpush1.bf16.msra.mxu0 %v7498_v3  ;;  %5885 = vmatpush3.bf16.msra.mxu1 %v7500_v5 }
 0x795   :  { %5857 = vmatprep.subr.bf16.mxu0 %v7504_v8  ;;  %5886 = vmatprep.subr.bf16.mxu1 %v6991_v0 }
 0x798   :  { %5859 = vmatpush1.bf16.msra.mxu0 %v7511_v22  ;;  %5888 = vmatpush3.bf16.msra.mxu1 %v7513_v24 }
 0x799   :  { %5861 = vmatprep.subr.bf16.mxu0 %v7517_v26  ;;  %5889 = vmatprep.subr.bf16.mxu1 %v6991_v0 }
 0x79c   :  { %5863 = vmatpush1.bf16.msra.mxu0 %v7521_v29  ;;  %5891 = vmatpush3.bf16.msra.mxu1 %v7523_v32 }
 0x79d   :  { %5865 = vmatprep.subr.bf16.mxu0 %v7527_v35  ;;  %5892 = vmatprep.subr.bf16.mxu1 %v6991_v0 }
 0x7a0   :  { %5867 = vmatpush1.bf16.msra.mxu0 %v7531_v53  ;;  %5894 = vmatpush3.bf16.msra.mxu1 %v7533_v59 }
 0x7a1   :  { %5869 = vmatprep.subr.bf16.mxu0 %v7537_v62  ;;  %5895 = vmatprep.subr.bf16.mxu1 %v6991_v0 }
 0x7a4   :  { %5871 = vmatpush1.bf16.msra.mxu0 %v7541_v30  ;;  %5897 = vmatpush3.bf16.msra.mxu1 %v7543_v31 }
 0x7a5   :  { %5873 = vmatprep.subr.bf16.mxu0 %v7547_v38  ;;  %5898 = vmatprep.subr.bf16.mxu1 %v6991_v0 }
 0x7a8   :  { %5875 = vmatpush1.bf16.msra.mxu0 %v7551_v49  ;;  %5900 = vmatpush3.bf16.msra.mxu1 %v7553_v56 }
 0x7a9   :  { %5877 = vmatprep.subr.bf16.mxu0 %v7557_v60  ;;  %5901 = vmatprep.subr.bf16.mxu1 %v6991_v0 }
 0x7ac   :  { %5879 = vmatpush1.bf16.msra.mxu0 %v7561_v12  ;;  %5903 = vmatpush3.bf16.msra.mxu1 %v7563_v13 }
 0x7ad   :  { %5905 = vmatprep.subr.bf16.mxu0 %v7478_v15  ;;  %5936 = vmatprep.subr.bf16.mxu1 %v6991_v0 }
 0x7af   :  { %1754 = vmatmul.mubr.f32.vlgmr.msra.gmra.mrb[18].mxu0 %v7264_v33  ;;  %4852 = vmatmul.mubr.f32.vlgmr.msra.gmra.mrb[18].mxu1 %v7264_v33 }
 0x7b0   :  { %5907 = vmatpush1.bf16.msra.mxu0 %v7486_v48  ;;  %5938 = vmatpush3.bf16.msra.mxu1 %v7488_v36 }
 0x7b1   :  { %5909 = vmatprep.subr.bf16.mxu0 %v7492_v55  ;;  %5939 = vmatprep.subr.bf16.mxu1 %v6991_v0 }
 0x7b2   :  { %1894 = vmatprep.mubr.f32.mxu0 %v6992_v1  ;;  %4886 = vmatprep.mubr.msk.f32.mxu1 %vm6993_vm0, %v6992_v1 }
 0x7b4   :  { %5911 = vmatpush1.bf16.msra.mxu0 %v7498_v3  ;;  %5941 = vmatpush3.bf16.msra.mxu1 %v7500_v5 }
 0x7b5   :  { %5913 = vmatprep.subr.bf16.mxu0 %v7504_v8  ;;  %5942 = vmatprep.subr.bf16.mxu1 %v6991_v0 }
 0x7b8   :  { %5915 = vmatpush1.bf16.msra.mxu0 %v7511_v22  ;;  %5944 = vmatpush3.bf16.msra.mxu1 %v7513_v24 }
 0x7b9   :  { %5917 = vmatprep.subr.bf16.mxu0 %v7517_v26  ;;  %5945 = vmatprep.subr.bf16.mxu1 %v6991_v0 }
 0x7bc   :  { %5919 = vmatpush1.bf16.msra.mxu0 %v7521_v29  ;;  %5947 = vmatpush3.bf16.msra.mxu1 %v7523_v32 }
 0x7bd   :  { %5921 = vmatprep.subr.bf16.mxu0 %v7527_v35  ;;  %5948 = vmatprep.subr.bf16.mxu1 %v6991_v0 }
 0x7c0   :  { %5923 = vmatpush1.bf16.msra.mxu0 %v7531_v53  ;;  %5950 = vmatpush3.bf16.msra.mxu1 %v7533_v59 }
 0x7c1   :  { %5925 = vmatprep.subr.bf16.mxu0 %v7537_v62  ;;  %5951 = vmatprep.subr.bf16.mxu1 %v6991_v0 }
 0x7c4   :  { %5927 = vmatpush1.bf16.msra.mxu0 %v7541_v30  ;;  %5953 = vmatpush3.bf16.msra.mxu1 %v7543_v31 }
 0x7c5   :  { %5929 = vmatprep.subr.bf16.mxu0 %v7547_v38  ;;  %5954 = vmatprep.subr.bf16.mxu1 %v6991_v0 }
 0x7c8   :  { %5931 = vmatpush1.bf16.msra.mxu0 %v7551_v49  ;;  %5956 = vmatpush3.bf16.msra.mxu1 %v7553_v56 }
 0x7c9   :  { %5933 = vmatprep.subr.bf16.mxu0 %v7557_v60  ;;  %5957 = vmatprep.subr.bf16.mxu1 %v6991_v0 }
 0x7cc   :  { %5935 = vmatpush1.bf16.msra.mxu0 %v7561_v12  ;;  %5959 = vmatpush3.bf16.msra.mxu1 %v7563_v13 }
 0x7cd   :  { %5961 = vmatprep.subr.bf16.mxu0 %v7478_v15  ;;  %5992 = vmatprep.subr.bf16.mxu1 %v6991_v0 }
 0x7cf   :  { %1895 = vmatmul.mubr.f32.vlgmr.msra.gmra.mrb[20].mxu0 %v7308_v18  ;;  %4887 = vmatmul.mubr.f32.vlgmr.msra.gmra.mrb[20].mxu1 %v7308_v18 }
 0x7d0   :  { %5963 = vmatpush1.bf16.msra.mxu0 %v7486_v48  ;;  %5994 = vmatpush3.bf16.msra.mxu1 %v7488_v36 }
 0x7d1   :  { %5965 = vmatprep.subr.bf16.mxu0 %v7492_v55  ;;  %5995 = vmatprep.subr.bf16.mxu1 %v6991_v0 }
 0x7d2   :  { %2035 = vmatprep.mubr.f32.mxu0 %v6992_v1  ;;  %4921 = vmatprep.mubr.msk.f32.mxu1 %vm6993_vm0, %v6992_v1 }
 0x7d4   :  { %5967 = vmatpush1.bf16.msra.mxu0 %v7498_v3  ;;  %5997 = vmatpush3.bf16.msra.mxu1 %v7500_v5 }
 0x7d5   :  { %5969 = vmatprep.subr.bf16.mxu0 %v7504_v8  ;;  %5998 = vmatprep.subr.bf16.mxu1 %v6991_v0 }
 0x7d8   :  { %5971 = vmatpush1.bf16.msra.mxu0 %v7511_v22  ;;  %6000 = vmatpush3.bf16.msra.mxu1 %v7513_v24 }
 0x7d9   :  { %5973 = vmatprep.subr.bf16.mxu0 %v7517_v26  ;;  %6001 = vmatprep.subr.bf16.mxu1 %v6991_v0 }
 0x7dc   :  { %5975 = vmatpush1.bf16.msra.mxu0 %v7521_v29  ;;  %6003 = vmatpush3.bf16.msra.mxu1 %v7523_v32 }
 0x7dd   :  { %5977 = vmatprep.subr.bf16.mxu0 %v7527_v35  ;;  %6004 = vmatprep.subr.bf16.mxu1 %v6991_v0 }
 0x7e0   :  { %5979 = vmatpush1.bf16.msra.mxu0 %v7531_v53  ;;  %6006 = vmatpush3.bf16.msra.mxu1 %v7533_v59 }
 0x7e1   :  { %5981 = vmatprep.subr.bf16.mxu0 %v7537_v62  ;;  %6007 = vmatprep.subr.bf16.mxu1 %v6991_v0 }
 0x7e4   :  { %5983 = vmatpush1.bf16.msra.mxu0 %v7541_v30  ;;  %6009 = vmatpush3.bf16.msra.mxu1 %v7543_v31 }
 0x7e5   :  { %5985 = vmatprep.subr.bf16.mxu0 %v7547_v38  ;;  %6010 = vmatprep.subr.bf16.mxu1 %v6991_v0 }
 0x7e8   :  { %5987 = vmatpush1.bf16.msra.mxu0 %v7551_v49  ;;  %6012 = vmatpush3.bf16.msra.mxu1 %v7553_v56 }
 0x7e9   :  { %5989 = vmatprep.subr.bf16.mxu0 %v7557_v60  ;;  %6013 = vmatprep.subr.bf16.mxu1 %v6991_v0 }
 0x7ec   :  { %5991 = vmatpush1.bf16.msra.mxu0 %v7561_v12  ;;  %6015 = vmatpush3.bf16.msra.mxu1 %v7563_v13 }
 0x7ed   :  { %6017 = vmatprep.subr.bf16.mxu0 %v7478_v15  ;;  %6048 = vmatprep.subr.bf16.mxu1 %v6991_v0 }
 0x7ef   :  { %2036 = vmatmul.mubr.f32.vlgmr.msra.gmra.mrb[22].mxu0 %v7352_v58  ;;  %4922 = vmatmul.mubr.f32.vlgmr.msra.gmra.mrb[22].mxu1 %v7352_v58  ;;  %v1463_v58 = vrot.slane %v4076_v54, 2 }
 0x7f0   :  { %6019 = vmatpush1.bf16.msra.mxu0 %v7486_v48  ;;  %6050 = vmatpush3.bf16.msra.mxu1 %v7488_v36 }
 0x7f1   :  { %6021 = vmatprep.subr.bf16.mxu0 %v7492_v55  ;;  %6051 = vmatprep.subr.bf16.mxu1 %v6991_v0 }
 0x7f2   :  { %2176 = vmatprep.mubr.f32.mxu0 %v6992_v1  ;;  %4956 = vmatprep.mubr.msk.f32.mxu1 %vm6993_vm0, %v6992_v1 }
 0x7f4   :  { %6023 = vmatpush1.bf16.msra.mxu0 %v7498_v3  ;;  %6053 = vmatpush3.bf16.msra.mxu1 %v7500_v5 }
 0x7f5   :  { %6025 = vmatprep.subr.bf16.mxu0 %v7504_v8  ;;  %6054 = vmatprep.subr.bf16.mxu1 %v6991_v0 }
 0x7f8   :  { %6027 = vmatpush1.bf16.msra.mxu0 %v7511_v22  ;;  %6056 = vmatpush3.bf16.msra.mxu1 %v7513_v24 }
 0x7f9   :  { %6029 = vmatprep.subr.bf16.mxu0 %v7517_v26  ;;  %6057 = vmatprep.subr.bf16.mxu1 %v6991_v0 }
 0x7fc   :  { %6031 = vmatpush1.bf16.msra.mxu0 %v7521_v29  ;;  %6059 = vmatpush3.bf16.msra.mxu1 %v7523_v32 }
 0x7fd   :  { %6033 = vmatprep.subr.bf16.mxu0 %v7527_v35  ;;  %6060 = vmatprep.subr.bf16.mxu1 %v6991_v0 }
 0x800   :  { %6035 = vmatpush1.bf16.msra.mxu0 %v7531_v53  ;;  %6062 = vmatpush3.bf16.msra.mxu1 %v7533_v59 }
 0x801   :  { %6037 = vmatprep.subr.bf16.mxu0 %v7537_v62  ;;  %6063 = vmatprep.subr.bf16.mxu1 %v6991_v0 }
 0x804   :  { %6039 = vmatpush1.bf16.msra.mxu0 %v7541_v30  ;;  %6065 = vmatpush3.bf16.msra.mxu1 %v7543_v31 }
 0x805   :  { %6041 = vmatprep.subr.bf16.mxu0 %v7547_v38  ;;  %6066 = vmatprep.subr.bf16.mxu1 %v6991_v0 }
 0x808   :  { %6043 = vmatpush1.bf16.msra.mxu0 %v7551_v49  ;;  %6068 = vmatpush3.bf16.msra.mxu1 %v7553_v56 }
 0x809   :  { %6045 = vmatprep.subr.bf16.mxu0 %v7557_v60  ;;  %6069 = vmatprep.subr.bf16.mxu1 %v6991_v0 }
 0x80c   :  { %6047 = vmatpush1.bf16.msra.mxu0 %v7561_v12  ;;  %6071 = vmatpush3.bf16.msra.mxu1 %v7563_v13 }
 0x80d   :  { %6073 = vmatprep.subr.bf16.mxu0 %v7478_v15  ;;  %6104 = vmatprep.subr.bf16.mxu1 %v6991_v0 }
 0x80f   :  { %2177 = vmatmul.mubr.f32.vlgmr.msra.gmra.mrb[24].mxu0 %v7396_v45  ;;  %4957 = vmatmul.mubr.f32.vlgmr.msra.gmra.mrb[24].mxu1 %v7396_v45 }
 0x810   :  { %6075 = vmatpush1.bf16.msra.mxu0 %v7486_v48  ;;  %6106 = vmatpush3.bf16.msra.mxu1 %v7488_v36 }
 0x811   :  { %6077 = vmatprep.subr.bf16.mxu0 %v7492_v55  ;;  %6107 = vmatprep.subr.bf16.mxu1 %v6991_v0 }
 0x812   :  { %2317 = vmatprep.mubr.f32.mxu0 %v6992_v1  ;;  %4991 = vmatprep.mubr.msk.f32.mxu1 %vm6993_vm0, %v6992_v1 }
 0x814   :  { %6079 = vmatpush1.bf16.msra.mxu0 %v7498_v3  ;;  %6109 = vmatpush3.bf16.msra.mxu1 %v7500_v5 }
 0x815   :  { %6081 = vmatprep.subr.bf16.mxu0 %v7504_v8  ;;  %6110 = vmatprep.subr.bf16.mxu1 %v6991_v0 }
 0x818   :  { %6083 = vmatpush1.bf16.msra.mxu0 %v7511_v22  ;;  %6112 = vmatpush3.bf16.msra.mxu1 %v7513_v24 }
 0x819   :  { %6085 = vmatprep.subr.bf16.mxu0 %v7517_v26  ;;  %6113 = vmatprep.subr.bf16.mxu1 %v6991_v0 }
 0x81c   :  { %6087 = vmatpush1.bf16.msra.mxu0 %v7521_v29  ;;  %6115 = vmatpush3.bf16.msra.mxu1 %v7523_v32 }
 0x81d   :  { %6089 = vmatprep.subr.bf16.mxu0 %v7527_v35  ;;  %6116 = vmatprep.subr.bf16.mxu1 %v6991_v0 }
 0x820   :  { %6091 = vmatpush1.bf16.msra.mxu0 %v7531_v53  ;;  %6118 = vmatpush3.bf16.msra.mxu1 %v7533_v59 }
 0x821   :  { %6093 = vmatprep.subr.bf16.mxu0 %v7537_v62  ;;  %6119 = vmatprep.subr.bf16.mxu1 %v6991_v0 }
 0x824   :  { %6095 = vmatpush1.bf16.msra.mxu0 %v7541_v30  ;;  %6121 = vmatpush3.bf16.msra.mxu1 %v7543_v31 }
 0x825   :  { %6097 = vmatprep.subr.bf16.mxu0 %v7547_v38  ;;  %6122 = vmatprep.subr.bf16.mxu1 %v6991_v0 }
 0x828   :  { %6099 = vmatpush1.bf16.msra.mxu0 %v7551_v49  ;;  %6124 = vmatpush3.bf16.msra.mxu1 %v7553_v56 }
 0x829   :  { %6101 = vmatprep.subr.bf16.mxu0 %v7557_v60  ;;  %6125 = vmatprep.subr.bf16.mxu1 %v6991_v0 }
 0x82c   :  { %6103 = vmatpush1.bf16.msra.mxu0 %v7561_v12  ;;  %6127 = vmatpush3.bf16.msra.mxu1 %v7563_v13 }
 0x82d   :  { %6129 = vmatprep.subr.bf16.mxu0 %v7478_v15  ;;  %6160 = vmatprep.subr.bf16.mxu1 %v6991_v0 }
 0x82f   :  { %2318 = vmatmul.mubr.f32.vlgmr.msra.gmra.mrb[26].mxu0 %v7440_v27  ;;  %4992 = vmatmul.mubr.f32.vlgmr.msra.gmra.mrb[26].mxu1 %v7440_v27 }
 0x830   :  { %6131 = vmatpush1.bf16.msra.mxu0 %v7486_v48  ;;  %6162 = vmatpush3.bf16.msra.mxu1 %v7488_v36 }
 0x831   :  { %6133 = vmatprep.subr.bf16.mxu0 %v7492_v55  ;;  %6163 = vmatprep.subr.bf16.mxu1 %v6991_v0 }
 0x832   :  { %2458 = vmatprep.mubr.f32.mxu0 %v6992_v1  ;;  %5026 = vmatprep.mubr.msk.f32.mxu1 %vm6993_vm0, %v6992_v1 }
 0x834   :  { %6135 = vmatpush1.bf16.msra.mxu0 %v7498_v3  ;;  %6165 = vmatpush3.bf16.msra.mxu1 %v7500_v5 }
 0x835   :  { %6137 = vmatprep.subr.bf16.mxu0 %v7504_v8  ;;  %6166 = vmatprep.subr.bf16.mxu1 %v6991_v0 }
 0x838   :  { %6139 = vmatpush1.bf16.msra.mxu0 %v7511_v22  ;;  %6168 = vmatpush3.bf16.msra.mxu1 %v7513_v24 }
 0x839   :  { %6141 = vmatprep.subr.bf16.mxu0 %v7517_v26  ;;  %6169 = vmatprep.subr.bf16.mxu1 %v6991_v0 }
 0x83c   :  { %6143 = vmatpush1.bf16.msra.mxu0 %v7521_v29  ;;  %6171 = vmatpush3.bf16.msra.mxu1 %v7523_v32 }
 0x83d   :  { %6145 = vmatprep.subr.bf16.mxu0 %v7527_v35  ;;  %6172 = vmatprep.subr.bf16.mxu1 %v6991_v0 }
 0x840   :  { %6147 = vmatpush1.bf16.msra.mxu0 %v7531_v53  ;;  %6174 = vmatpush3.bf16.msra.mxu1 %v7533_v59 }
 0x841   :  { %6149 = vmatprep.subr.bf16.mxu0 %v7537_v62  ;;  %6175 = vmatprep.subr.bf16.mxu1 %v6991_v0 }
 0x842   :  { %v1380_v33 = vpop.f32.mrb[14].mxu0  ;;  %v1451_v18 = vpop.f32.mrb[14].mxu1 }
 0x843   :  { %v1455_v45 = vadd.f32 %v4076_v54, %v1380_v33  ;;  %v1382_v27 = vpop.f32.mrb[15].mxu0  ;;  %v4783_v17 = vpop.f32.mrb[15].mxu1  ;;  %v2704_v33 = vld [vmem:[#allocation7 + $0xe0] sm:$0xff] }
 0x844   :  { %6151 = vmatpush1.bf16.msra.mxu0 %v7541_v30  ;;  %6177 = vmatpush3.bf16.msra.mxu1 %v7543_v31  ;;  %v1465_v20 = vadd.f32 %v1463_v58, %v1382_v27  ;;  %v2700_v58 = vld [vmem:[#allocation7 + $0xc0] sm:$0xff]  ;;  %v2703_v17 = vld [vmem:[#allocation7 + $0xd8] sm:$0xff] }
 0x845   :  { %v4077_v19 = vmul.f32 -1.442695, %v1455_v45  ;;  %6153 = vmatprep.subr.bf16.mxu0 %v7547_v38  ;;  %6178 = vmatprep.subr.bf16.mxu1 %v6991_v0 }
 0x846   :  { %v4078_v25 = vmul.f32 -1.442695, %v1465_v20  ;;  %v2705_v20 = vld [vmem:[#allocation7 + $0xe8] sm:$0xff] }
 0x847   :  { %6801 = vpow2.f32 %v4077_v19  ;;  %v2702_v19 = vld [vmem:[#allocation7 + $0xd0] sm:$0xff] }
 0x848   :  { %6155 = vmatpush1.bf16.msra.mxu0 %v7551_v49  ;;  %6180 = vmatpush3.bf16.msra.mxu1 %v7553_v56  ;;  %6803 = vpow2.f32 %v4078_v25  ;;  %v2707_v25 = vld [vmem:[#allocation7 + $0xf8] sm:$0xff] }
 0x849   :  { %6157 = vmatprep.subr.bf16.mxu0 %v7557_v60  ;;  %6181 = vmatprep.subr.bf16.mxu1 %v6991_v0 }
 0x84c   :  { %6159 = vmatpush1.bf16.msra.mxu0 %v7561_v12  ;;  %6183 = vmatpush3.bf16.msra.mxu1 %v7563_v13 }
 0x84d   :  { %6185 = vmatprep.subr.bf16.mxu0 %v7478_v15  ;;  %6216 = vmatprep.subr.bf16.mxu1 %v6991_v0 }
 0x84f   :  { %2459 = vmatmul.mubr.f32.vlgmr.msra.gmra.mrb[28].mxu0 %v7490_v51  ;;  %5027 = vmatmul.mubr.f32.vlgmr.msra.gmra.mrb[28].mxu1 %v7490_v51 }
 0x850   :  { %6187 = vmatpush1.bf16.msra.mxu0 %v7486_v48  ;;  %6218 = vmatpush3.bf16.msra.mxu1 %v7488_v36  ;;  %v1474_v36 = vrot.slane %v4076_v54, 4  ;;  %v2701_v54 = vld [vmem:[#allocation7 + $0xc8] sm:$0xff] }
 0x851   :  { %v6802_v9 = vpop.eup %6801  ;;  %6189 = vmatprep.subr.bf16.mxu0 %v7492_v55  ;;  %6219 = vmatprep.subr.bf16.mxu1 %v6991_v0  ;;  %v6891_v55 = vld [vmem:[%s8274_s2] ss:$0 sm:$0xff]  ;;  %v7877_v27 = vpack.c.bf16 %v2704_v33, %v2701_v54  ;;  %v1533_v33 = vlaneseq }
 0x852   :  { %v1459_v10 = vadd.f32 1.0, %v6802_v9  ;;  %2599 = vmatprep.mubr.f32.mxu0 %v6992_v1  ;;  %5061 = vmatprep.mubr.msk.f32.mxu1 %vm6993_vm0, %v6992_v1  ;;  %v6804_v15 = vpop.eup %6803  ;;  %v2710_v9 = vld [vmem:[#allocation7 + $0x110] sm:$0xff] }
 0x853   :  { %v1469_v48 = vadd.f32 1.0, %v6804_v15  ;;  %v2706_v15 = vld [vmem:[#allocation7 + $0xf0] sm:$0xff] }
 0x854   :  { %6805 = vrcp.f32 %v1459_v10  ;;  %6191 = vmatpush1.bf16.msra.mxu0 %v7498_v3  ;;  %6221 = vmatpush3.bf16.msra.mxu1 %v7500_v5  ;;  %v1472_v3 = vadd.f32 %v6891_v55, %v1451_v18  ;;  %v7881_v10 = vpack.c.bf16 %v2703_v17, %v2700_v58  ;;  %v2709_v55 = vld [vmem:[#allocation7 + $0x108] sm:$0xff]  ;;  %v1534_v58 = vshrl.u32 %v1533_v33, 7 }
 0x855   :  { %6193 = vmatprep.subr.bf16.mxu0 %v7504_v8  ;;  %6222 = vmatprep.subr.bf16.mxu1 %v6991_v0  ;;  %6807 = vrcp.f32 %v1469_v48  ;;  %v7884_v48 = vpack.c.bf16 %v2705_v20, %v2702_v19  ;;  %v1531_v19 = vld [vmem:[%s8276_s4] sm:$0x7] }
 0x856   :  { %v1535_v17 = vsub.s32 0, %v1534_v58  ;;  %v1539_v20 = vsub.s32 1, %v1534_v58 }
 0x858   :  { %6195 = vmatpush1.bf16.msra.mxu0 %v7511_v22  ;;  %6224 = vmatpush3.bf16.msra.mxu1 %v7513_v24 }
 0x859   :  { %6197 = vmatprep.subr.bf16.mxu0 %v7517_v26  ;;  %6225 = vmatprep.subr.bf16.mxu1 %v6991_v0 }
 0x85c   :  { %6199 = vmatpush1.bf16.msra.mxu0 %v7521_v29  ;;  %6227 = vmatpush3.bf16.msra.mxu1 %v7523_v32  ;;  %v7834_v29 = vpack.c.bf16 %v2680_v21, %v2677_v16  ;;  %v2676_v32 = vld [vmem:[#allocation7] sm:$0xff]  ;;  %v7893_v21 = vpack.c.bf16 %v2709_v55, %v2706_v15  ;;  %v7978_v15 = vrot.slane %v1531_v19, %v1539_v20 }
 0x85d   :  { %6201 = vmatprep.subr.bf16.mxu0 %v7527_v35  ;;  %6228 = vmatprep.subr.bf16.mxu1 %v6991_v0  ;;  %v2679_v35 = vld [vmem:[#allocation7 + $0x18] sm:$0xff] }
 0x85e   :  { %v6806_v5 = vpop.eup %6805  ;;  %v7841_v61 = vpack.c.bf16 %v2679_v35, %v2676_v32  ;;  %v2715_v35 = vld [vmem:[#allocation7 + $0x138] sm:$0xff] }
 0x85f   :  { %v1473_v8 = vmul.f32 %v6806_v5, %v1472_v3  ;;  %v6808_v23 = vpop.eup %6807  ;;  %v2708_v3 = vld [vmem:[#allocation7 + $0x100] sm:$0xff]  ;;  %v2711_v5 = vld [vmem:[#allocation7 + $0x118] sm:$0xff] }
 0x860   :  { %6203 = vmatpush1.bf16.msra.mxu0 %v7531_v53  ;;  %6230 = vmatpush3.bf16.msra.mxu1 %v7533_v59  ;;  %v1478_v34 = vsub.f32 1.0, %v6808_v23  ;;  %v1480_v59 = vmul.f32 %v6808_v23, %v7490_v51  ;;  %v2688_v51 = vld [vmem:[#allocation7 + $0x60] sm:$0xff]  ;;  %v7896_v32 = vpack.c.bf16 %v2711_v5, %v2708_v3 }
 0x861   :  { %v1476_v22 = vadd.f32 %v1474_v36, %v1473_v8  ;;  %6205 = vmatprep.subr.bf16.mxu0 %v7537_v62  ;;  %6231 = vmatprep.subr.bf16.mxu1 %v6991_v0  ;;  %v2682_v62 = vld [vmem:[#allocation7 + $0x30] sm:$0xff]  ;;  %v7861_v57 = vpack.c.bf16 %v2691_v42, %v2688_v51  ;;  %v7887_v36 = vpack.c.bf16 %v2710_v9, %v2707_v25  ;;  %v2713_v8 = vld [vmem:[#allocation7 + $0x128] sm:$0xff]  ;;  %v2712_v23 = vld [vmem:[#allocation7 + $0x120] sm:$0xff] }
 0x862   :  { %v7824_v24 = vpop.f32.mrb[16].mxu1  ;;  %v7903_v52 = vpack.c.bf16 %v2715_v35, %v2712_v23  ;;  %v7976_v25 = vrot.slane %v1531_v19, %v1535_v17 }
 0x863   :  { %6809 = vtanh.f32 %v1476_v22  ;;  %v4818_v26 = vpop.f32.mrb[17].mxu1  ;;  %v2716_v22 = vld [vmem:[#allocation7 + $0x140] sm:$0xff] }
 0x864   :  { %6207 = vmatpush1.bf16.msra.mxu0 %v7541_v30  ;;  %6233 = vmatpush3.bf16.msra.mxu1 %v7543_v31  ;;  %v2687_v30 = vld [vmem:[#allocation7 + $0x58] sm:$0xff]  ;;  %v2689_v31 = vld [vmem:[#allocation7 + $0x68] sm:$0xff] }
 0x865   :  { %6209 = vmatprep.subr.bf16.mxu0 %v7547_v38  ;;  %6234 = vmatprep.subr.bf16.mxu1 %v6991_v0  ;;  %v7848_v38 = vpack.c.bf16 %v2685_v14, %v2682_v62  ;;  %v7851_v39 = vpack.c.bf16 %v2687_v30, %v2684_v28  ;;  %v7854_v40 = vpack.c.bf16 %v2692_v37, %v2689_v31  ;;  %v2720_v14 = vld [vmem:[#allocation7 + $0x160] sm:$0xff]  ;;  %v2723_v28 = vld [vmem:[#allocation7 + $0x178] sm:$0xff] }
 0x866   :  { %v7916_v31 = vpack.c.bf16 %v2723_v28, %v2720_v14 }
 0x868   :  { %6211 = vmatpush1.bf16.msra.mxu0 %v7551_v49  ;;  %6236 = vmatpush3.bf16.msra.mxu1 %v7553_v56  ;;  %v2695_v49 = vld [vmem:[#allocation7 + $0x98] sm:$0xff]  ;;  %v2698_v56 = vld [vmem:[#allocation7 + $0xb0] sm:$0xff] }
 0x869   :  { %6213 = vmatprep.subr.bf16.mxu0 %v7557_v60  ;;  %6237 = vmatprep.subr.bf16.mxu1 %v6991_v0  ;;  %v2694_v60 = vld [vmem:[#allocation7 + $0x90] sm:$0xff]  ;;  %v7867_v2 = vpack.c.bf16 %v2698_v56, %v2695_v49 }
 0x86a   :  { %v7871_v18 = vpack.c.bf16 %v2697_v7, %v2694_v60 }
 0x86c   :  { %6215 = vmatpush1.bf16.msra.mxu0 %v7561_v12  ;;  %6239 = vmatpush3.bf16.msra.mxu1 %v7563_v13  ;;  %v2696_v12 = vld [vmem:[#allocation7 + $0xa0] sm:$0xff]  ;;  %v2699_v13 = vld [vmem:[#allocation7 + $0xb8] sm:$0xff] }
 0x86d   :  { %v6810_v44 = vpop.eup %6809  ;;  %6241 = vmatprep.subr.bf16.mxu0 %v7834_v29  ;;  %6272 = vmatprep.subr.bf16.mxu1 %v6991_v0  ;;  %v7874_v45 = vpack.c.bf16 %v2699_v13, %v2696_v12 }
 0x86e   :  { %v1479_v53 = vmul.f32 %v6810_v44, %v1478_v34  ;;  %v7899_v34 = vpack.c.bf16 %v2716_v22, %v2713_v8  ;;  %v2719_v44 = vld [vmem:[#allocation7 + $0x158] sm:$0xff] }
 0x86f   :  { %v7909_v62 = vpack.c.bf16 %v2722_v50, %v2719_v44  ;;  %v7985_v50 = vld [vmem:[%s8278_s6] ss:$0 sm:$0xff]  ;;  %s6994_s6 = smov [#allocation8]  }
 0x870   :  { %v1481_v6 = vadd.f32 %v1480_v59, %v1479_v53  ;;  %v2718_v53 = vld [vmem:[#allocation7 + $0x150] sm:$0xff]  ;;  %v7906_v59 = vpack.c.bf16 %v2717_v43, %v2714_v41  ;;  %v1543_v43 = vsub.s32 2, %v1534_v58  ;;  %s4042_s11 = sshll.u32 %s6994_s6, 4  ;;  %s4043_s11 = int_to_ptr.vmem [resolvable:$true] %s4042_s11 }
 0x871   :  { %s6958_s12 = scalar_lea.vmem %s4043_s11, 64  ;;  %p6963_p11 = scmp.lt.s32.totalorder %s4043_s11, %s4043_s11 }
 0x872   :  { %2600 = vmatmul.mubr.f32.vlgmr.msra.gmra.mrb[30].mxu0 %v1481_v6  ;;  %1482 = vst [vmem:[#allocation8] sm:$0x3] %v1481_v6  ;;  %5062 = vmatmul.mubr.f32.vlgmr.msra.gmra.mrb[30].mxu1 %v1481_v6  ;;  %v2721_v6 = vld [vmem:[#allocation7 + $0x168] sm:$0xff]  ;;  %p6959_p10 = scmp.ne.s32.totalorder %s4043_s11, %s6958_s12  ;;  %p6964_p12 = scmp.lt.s32.totalorder %s6958_s12, %s6958_s12 }
 0x873   :  { %6243 = vmatpush1.bf16.msra.mxu0 %v7841_v61  ;;  %6274 = vmatpush3.bf16.msra.mxu1 %v7843_v4  ;;  %v7913_v30 = vpack.c.bf16 %v2721_v6, %v2718_v53  ;;  %v7987_v53 = vrot.slane %v1531_v19, %v1543_v43 }
 0x874   :  { %6245 = vmatprep.subr.bf16.mxu0 %v7845_v11  ;;  %6275 = vmatprep.subr.bf16.mxu1 %v6991_v0  ;;  %p6965_p13 = por %p6964_p12, %p6963_p11 }
 0x875   :  { %2788 = vmatprep.mubr.f32.mxu0 %v6992_v1  ;;  %5096 = vmatprep.mubr.msk.f32.mxu1 %vm6993_vm0, %v6992_v1 }
 0x876   :  { %p6966_p0 = pnand %p6965_p13, %p6959_p10 }
 0x877   :  { %6247 = vmatpush1.bf16.msra.mxu0 %v7848_v38  ;;  %6277 = vmatpush3.bf16.msra.mxu1 %v7851_v39 }
 0x878   :  { %6249 = vmatprep.subr.bf16.mxu0 %v7854_v40  ;;  %6278 = vmatprep.subr.bf16.mxu1 %v6991_v0 }
 0x87b   :  { %6251 = vmatpush1.bf16.msra.mxu0 %v7861_v57  ;;  %6280 = vmatpush3.bf16.msra.mxu1 %v7864_v63 }
 0x87c   :  { %6253 = vmatprep.subr.bf16.mxu0 %v7867_v2  ;;  %6281 = vmatprep.subr.bf16.mxu1 %v6991_v0 }
 0x87f   :  { %6255 = vmatpush1.bf16.msra.mxu0 %v7871_v18  ;;  %6283 = vmatpush3.bf16.msra.mxu1 %v7874_v45 }
 0x880   :  { %6257 = vmatprep.subr.bf16.mxu0 %v7877_v27  ;;  %6284 = vmatprep.subr.bf16.mxu1 %v6991_v0 }
 0x882   :  { %v7890_v26 = vpop.f32.mrb[18].mxu1 }
 0x883   :  { %v4853_v16 = vpop.f32.mrb[19].mxu1  ;;  %6259 = vmatpush1.bf16.msra.mxu0 %v7881_v10  ;;  %6286 = vmatpush3.bf16.msra.mxu1 %v7884_v48 }
 0x884   :  { %6261 = vmatprep.subr.bf16.mxu0 %v7887_v36  ;;  %6287 = vmatprep.subr.bf16.mxu1 %v6991_v0 }
 0x887   :  { %6263 = vmatpush1.bf16.msra.mxu0 %v7893_v21  ;;  %6289 = vmatpush3.bf16.msra.mxu1 %v7896_v32 }
 0x888   :  { %6265 = vmatprep.subr.bf16.mxu0 %v7899_v34  ;;  %6290 = vmatprep.subr.bf16.mxu1 %v6991_v0 }
 0x88b   :  { %6267 = vmatpush1.bf16.msra.mxu0 %v7903_v52  ;;  %6292 = vmatpush3.bf16.msra.mxu1 %v7906_v59 }
 0x88c   :  { %6269 = vmatprep.subr.bf16.mxu0 %v7909_v62  ;;  %6293 = vmatprep.subr.bf16.mxu1 %v6991_v0 }
 0x88f   :  { %6271 = vmatpush1.bf16.msra.mxu0 %v7913_v30  ;;  %6295 = vmatpush3.bf16.msra.mxu1 %v7916_v31 }
 0x890   :  { %6297 = vmatprep.subr.bf16.mxu0 %v7834_v29  ;;  %6328 = vmatprep.subr.bf16.mxu1 %v6991_v0 }
 0x892   :  { %2789 = vmatmul.mubr.f32.vlgmr.msra.gmra.mrb[16].mxu0 %v6992_v1  ;;  %5097 = vmatmul.mubr.f32.vlgmr.msra.gmra.mrb[32].mxu1 %v6992_v1 }
 0x893   :  { %6299 = vmatpush1.bf16.msra.mxu0 %v7841_v61  ;;  %6330 = vmatpush3.bf16.msra.mxu1 %v7843_v4 }
 0x894   :  { %6301 = vmatprep.subr.bf16.mxu0 %v7845_v11  ;;  %6331 = vmatprep.subr.bf16.mxu1 %v6991_v0 }
 0x895   :  { %2958 = vmatprep.mubr.f32.mxu0 %v6992_v1  ;;  %5131 = vmatprep.mubr.msk.f32.mxu1 %vm6993_vm0, %v6992_v1 }
 0x897   :  { %6303 = vmatpush1.bf16.msra.mxu0 %v7848_v38  ;;  %6333 = vmatpush3.bf16.msra.mxu1 %v7851_v39 }
 0x898   :  { %6305 = vmatprep.subr.bf16.mxu0 %v7854_v40  ;;  %6334 = vmatprep.subr.bf16.mxu1 %v6991_v0 }
 0x89b   :  { %6307 = vmatpush1.bf16.msra.mxu0 %v7861_v57  ;;  %6336 = vmatpush3.bf16.msra.mxu1 %v7864_v63 }
 0x89c   :  { %6309 = vmatprep.subr.bf16.mxu0 %v7867_v2  ;;  %6337 = vmatprep.subr.bf16.mxu1 %v6991_v0 }
 0x89f   :  { %6311 = vmatpush1.bf16.msra.mxu0 %v7871_v18  ;;  %6339 = vmatpush3.bf16.msra.mxu1 %v7874_v45 }
 0x8a0   :  { %6313 = vmatprep.subr.bf16.mxu0 %v7877_v27  ;;  %6340 = vmatprep.subr.bf16.mxu1 %v6991_v0 }
 0x8a2   :  { %v7945_v37 = vpop.f32.mrb[20].mxu1 }
 0x8a3   :  { %v4888_v51 = vpop.f32.mrb[21].mxu1  ;;  %6315 = vmatpush1.bf16.msra.mxu0 %v7881_v10  ;;  %6342 = vmatpush3.bf16.msra.mxu1 %v7884_v48 }
 0x8a4   :  { %6317 = vmatprep.subr.bf16.mxu0 %v7887_v36  ;;  %6343 = vmatprep.subr.bf16.mxu1 %v6991_v0  ;;  %v1686_v51 = vadd.f32 %v7824_v24, %v7987_v53 }
 0x8a7   :  { %6319 = vmatpush1.bf16.msra.mxu0 %v7893_v21  ;;  %6345 = vmatpush3.bf16.msra.mxu1 %v7896_v32 }
 0x8a8   :  { %6321 = vmatprep.subr.bf16.mxu0 %v7899_v34  ;;  %6346 = vmatprep.subr.bf16.mxu1 %v6991_v0 }
 0x8ab   :  { %6323 = vmatpush1.bf16.msra.mxu0 %v7903_v52  ;;  %6348 = vmatpush3.bf16.msra.mxu1 %v7906_v59 }
 0x8ac   :  { %6325 = vmatprep.subr.bf16.mxu0 %v7909_v62  ;;  %6349 = vmatprep.subr.bf16.mxu1 %v6991_v0 }
 0x8af   :  { %6327 = vmatpush1.bf16.msra.mxu0 %v7913_v30  ;;  %6351 = vmatpush3.bf16.msra.mxu1 %v7916_v31 }
 0x8b0   :  { %6353 = vmatprep.subr.bf16.mxu0 %v7834_v29  ;;  %6384 = vmatprep.subr.bf16.mxu1 %v6991_v0 }
 0x8c2   :  { %v7963_v42 = vpop.f32.mrb[22].mxu1 }
 0x8c3   :  { %v4923_v46 = vpop.f32.mrb[23].mxu1 }
 0x8e2   :  { %v7965_v47 = vpop.f32.mrb[24].mxu1 }
 0x8e3   :  { %v4958_v49 = vpop.f32.mrb[25].mxu1 }
 0x902   :  { %v7967_v56 = vpop.f32.mrb[26].mxu1 }
 0x903   :  { %v4993_v60 = vpop.f32.mrb[27].mxu1 }
 0x922   :  { %v7969_v7 = vpop.f32.mrb[28].mxu1 }
 0x923   :  { %v5028_v12 = vpop.f32.mrb[29].mxu1 }
 0x945   :  { %v7971_v13 = vpop.f32.mrb[30].mxu1 }
 0x946   :  { %v5063_v54 = vpop.f32.mrb[31].mxu1 }
 0x965   :  { %v2790_v9 = vpop.f32.mrb[16].mxu0  ;;  %v2861_v55 = vpop.f32.mrb[32].mxu1 }
 0x966   :  { %v6688_v3 = vadd.f32 %v2790_v9, %v7976_v25  ;;  %v2792_v5 = vpop.f32.mrb[17].mxu0  ;;  %v5098_v8 = vpop.f32.mrb[33].mxu1  ;;  %v2886_v14 = vadd.f32 %v7985_v50, %v2861_v55 }
 0x967   :  { %v6689_v16 = vadd.f32 %v2792_v5, %v7978_v15 }
 0x968   :  { %v4079_v22 = vmul.f32 -1.442695, %v6688_v3 }
 0x969   :  { %v4080_v23 = vmul.f32 -1.442695, %v6689_v16 }
 0x96a   :  { %6811 = vpow2.f32 %v4079_v22 }
 0x96b   :  { %6813 = vpow2.f32 %v4080_v23 }
 0x974   :  { %v6812_v35 = vpop.eup %6811 }
 0x975   :  { %v2869_v41 = vadd.f32 1.0, %v6812_v35  ;;  %v6814_v44 = vpop.eup %6813 }
 0x976   :  { %v2876_v6 = vadd.f32 1.0, %v6814_v44  ;;  %v1827_v44 = vadd.f32 %v7890_v26, %v7987_v53 }
 0x977   :  { %6815 = vrcp.f32 %v2869_v41 }
 0x978   :  { %6817 = vrcp.f32 %v2876_v6 }
 0x981   :  { %v6816_v28 = vpop.eup %6815 }
 0x982   :  { %v2887_v46 = vmul.f32 %v6816_v28, %v2886_v14  ;;  %v6818_v60 = vpop.eup %6817 }
 0x983   :  { %v2890_v12 = vsub.f32 1.0, %v6818_v60  ;;  %v2892_v58 = vmul.f32 0.0, %v6818_v60 }
 0x984   :  { %v2888_v49 = vadd.f32 %v2887_v46, %v1686_v51 }
 0x986   :  { %6819 = vtanh.f32 %v2888_v49 }
 0x990   :  { %v6820_v54 = vpop.eup %6819 }
 0x991   :  { %v2891_v33 = vmul.f32 %v6820_v54, %v2890_v12 }
 0x993   :  { %v7992_v17 = vadd.f32 %v2892_v58, %v2891_v33 }
 0x995   :  { %2959 = vmatmul.mubr.f32.vlgmr.msra.gmra.mrb[18].mxu0 %v7992_v17  ;;  %5132 = vmatmul.mubr.f32.vlgmr.msra.gmra.mrb[34].mxu1 %v7992_v17 }
 0x996   :  { %6355 = vmatpush1.bf16.msra.mxu0 %v7841_v61  ;;  %6386 = vmatpush3.bf16.msra.mxu1 %v7843_v4 }
 0x997   :  { %6357 = vmatprep.subr.bf16.mxu0 %v7845_v11  ;;  %6387 = vmatprep.subr.bf16.mxu1 %v6991_v0 }
 0x998   :  { %3121 = vmatprep.mubr.f32.mxu0 %v6992_v1  ;;  %5166 = vmatprep.mubr.msk.f32.mxu1 %vm6993_vm0, %v6992_v1 }
 0x99a   :  { %6359 = vmatpush1.bf16.msra.mxu0 %v7848_v38  ;;  %6389 = vmatpush3.bf16.msra.mxu1 %v7851_v39 }
 0x99b   :  { %6361 = vmatprep.subr.bf16.mxu0 %v7854_v40  ;;  %6390 = vmatprep.subr.bf16.mxu1 %v6991_v0 }
 0x99e   :  { %6363 = vmatpush1.bf16.msra.mxu0 %v7861_v57  ;;  %6392 = vmatpush3.bf16.msra.mxu1 %v7864_v63 }
 0x99f   :  { %6365 = vmatprep.subr.bf16.mxu0 %v7867_v2  ;;  %6393 = vmatprep.subr.bf16.mxu1 %v6991_v0 }
 0x9a2   :  { %6367 = vmatpush1.bf16.msra.mxu0 %v7871_v18  ;;  %6395 = vmatpush3.bf16.msra.mxu1 %v7874_v45 }
 0x9a3   :  { %6369 = vmatprep.subr.bf16.mxu0 %v7877_v27  ;;  %6396 = vmatprep.subr.bf16.mxu1 %v6991_v0 }
 0x9a6   :  { %6371 = vmatpush1.bf16.msra.mxu0 %v7881_v10  ;;  %6398 = vmatpush3.bf16.msra.mxu1 %v7884_v48 }
 0x9a7   :  { %6373 = vmatprep.subr.bf16.mxu0 %v7887_v36  ;;  %6399 = vmatprep.subr.bf16.mxu1 %v6991_v0 }
 0x9aa   :  { %6375 = vmatpush1.bf16.msra.mxu0 %v7893_v21  ;;  %6401 = vmatpush3.bf16.msra.mxu1 %v7896_v32 }
 0x9ab   :  { %6377 = vmatprep.subr.bf16.mxu0 %v7899_v34  ;;  %6402 = vmatprep.subr.bf16.mxu1 %v6991_v0 }
 0x9ae   :  { %6379 = vmatpush1.bf16.msra.mxu0 %v7903_v52  ;;  %6404 = vmatpush3.bf16.msra.mxu1 %v7906_v59 }
 0x9af   :  { %6381 = vmatprep.subr.bf16.mxu0 %v7909_v62  ;;  %6405 = vmatprep.subr.bf16.mxu1 %v6991_v0 }
 0x9b2   :  { %6383 = vmatpush1.bf16.msra.mxu0 %v7913_v30  ;;  %6407 = vmatpush3.bf16.msra.mxu1 %v7916_v31 }
 0x9b3   :  { %6409 = vmatprep.subr.bf16.mxu0 %v7834_v29  ;;  %6440 = vmatprep.subr.bf16.mxu1 %v6991_v0 }
 0xa68   :  { %v2960_v24 = vpop.f32.mrb[18].mxu0  ;;  %v3031_v19 = vpop.f32.mrb[34].mxu1 }
 0xa69   :  { %v6690_v20 = vadd.f32 %v2960_v24, %v7976_v25  ;;  %v2962_v9 = vpop.f32.mrb[19].mxu0  ;;  %v5133_v55 = vpop.f32.mrb[35].mxu1  ;;  %v3049_v41 = vadd.f32 %v7985_v50, %v3031_v19 }
 0xa6a   :  { %v6691_v5 = vadd.f32 %v2962_v9, %v7978_v15 }
 0xa6b   :  { %v4082_v3 = vmul.f32 -1.442695, %v6690_v20 }
 0xa6c   :  { %v4083_v8 = vmul.f32 -1.442695, %v6691_v5 }
 0xa6d   :  { %6821 = vpow2.f32 %v4082_v3 }
 0xa6e   :  { %6823 = vpow2.f32 %v4083_v8 }
 0xa77   :  { %v6822_v22 = vpop.eup %6821 }
 0xa78   :  { %v3039_v16 = vadd.f32 1.0, %v6822_v22  ;;  %v6824_v23 = vpop.eup %6823 }
 0xa79   :  { %v3046_v35 = vadd.f32 1.0, %v6824_v23 }
 0xa7a   :  { %6825 = vrcp.f32 %v3039_v16  ;;  %v1968_v16 = vadd.f32 %v7945_v37, %v7987_v53 }
 0xa7b   :  { %6827 = vrcp.f32 %v3046_v35 }
 0xa84   :  { %v6826_v43 = vpop.eup %6825 }
 0xa85   :  { %v3050_v6 = vmul.f32 %v6826_v43, %v3049_v41  ;;  %v6828_v28 = vpop.eup %6827 }
 0xa86   :  { %v3053_v51 = vsub.f32 1.0, %v6828_v28  ;;  %v3055_v60 = vmul.f32 %v6828_v28, %v7992_v17 }
 0xa87   :  { %v3051_v14 = vadd.f32 %v3050_v6, %v1827_v44 }
 0xa89   :  { %6829 = vtanh.f32 %v3051_v14 }
 0xa93   :  { %v6830_v46 = vpop.eup %6829 }
 0xa94   :  { %v3054_v49 = vmul.f32 %v6830_v46, %v3053_v51 }
 0xa96   :  { %v8037_v12 = vadd.f32 %v3055_v60, %v3054_v49 }
 0xa98   :  { %3122 = vmatmul.mubr.f32.vlgmr.msra.gmra.mrb[20].mxu0 %v8037_v12  ;;  %5167 = vmatmul.mubr.f32.vlgmr.msra.gmra.mrb[36].mxu1 %v8037_v12 }
 0xa99   :  { %6411 = vmatpush1.bf16.msra.mxu0 %v7841_v61  ;;  %6442 = vmatpush3.bf16.msra.mxu1 %v7843_v4 }
 0xa9a   :  { %6413 = vmatprep.subr.bf16.mxu0 %v7845_v11  ;;  %6443 = vmatprep.subr.bf16.mxu1 %v6991_v0 }
 0xa9b   :  { %3284 = vmatprep.mubr.f32.mxu0 %v6992_v1  ;;  %5201 = vmatprep.mubr.msk.f32.mxu1 %vm6993_vm0, %v6992_v1 }
 0xa9d   :  { %6415 = vmatpush1.bf16.msra.mxu0 %v7848_v38  ;;  %6445 = vmatpush3.bf16.msra.mxu1 %v7851_v39 }
 0xa9e   :  { %6417 = vmatprep.subr.bf16.mxu0 %v7854_v40  ;;  %6446 = vmatprep.subr.bf16.mxu1 %v6991_v0 }
 0xaa1   :  { %6419 = vmatpush1.bf16.msra.mxu0 %v7861_v57  ;;  %6448 = vmatpush3.bf16.msra.mxu1 %v7864_v63 }
 0xaa2   :  { %6421 = vmatprep.subr.bf16.mxu0 %v7867_v2  ;;  %6449 = vmatprep.subr.bf16.mxu1 %v6991_v0 }
 0xaa5   :  { %6423 = vmatpush1.bf16.msra.mxu0 %v7871_v18  ;;  %6451 = vmatpush3.bf16.msra.mxu1 %v7874_v45 }
 0xaa6   :  { %6425 = vmatprep.subr.bf16.mxu0 %v7877_v27  ;;  %6452 = vmatprep.subr.bf16.mxu1 %v6991_v0 }
 0xaa9   :  { %6427 = vmatpush1.bf16.msra.mxu0 %v7881_v10  ;;  %6454 = vmatpush3.bf16.msra.mxu1 %v7884_v48 }
 0xaaa   :  { %6429 = vmatprep.subr.bf16.mxu0 %v7887_v36  ;;  %6455 = vmatprep.subr.bf16.mxu1 %v6991_v0 }
 0xaad   :  { %6431 = vmatpush1.bf16.msra.mxu0 %v7893_v21  ;;  %6457 = vmatpush3.bf16.msra.mxu1 %v7896_v32 }
 0xaae   :  { %6433 = vmatprep.subr.bf16.mxu0 %v7899_v34  ;;  %6458 = vmatprep.subr.bf16.mxu1 %v6991_v0 }
 0xab1   :  { %6435 = vmatpush1.bf16.msra.mxu0 %v7903_v52  ;;  %6460 = vmatpush3.bf16.msra.mxu1 %v7906_v59 }
 0xab2   :  { %6437 = vmatprep.subr.bf16.mxu0 %v7909_v62  ;;  %6461 = vmatprep.subr.bf16.mxu1 %v6991_v0 }
 0xab5   :  { %6439 = vmatpush1.bf16.msra.mxu0 %v7913_v30  ;;  %6463 = vmatpush3.bf16.msra.mxu1 %v7916_v31 }
 0xab6   :  { %6465 = vmatprep.subr.bf16.mxu0 %v7834_v29  ;;  %6496 = vmatprep.subr.bf16.mxu1 %v6991_v0 }
 0xb6b   :  { %v3123_v26 = vpop.f32.mrb[20].mxu0  ;;  %v3194_v54 = vpop.f32.mrb[36].mxu1 }
 0xb6c   :  { %v6692_v33 = vadd.f32 %v3123_v26, %v7976_v25  ;;  %v3125_v58 = vpop.f32.mrb[21].mxu0  ;;  %v5168_v17 = vpop.f32.mrb[37].mxu1  ;;  %v3212_v8 = vadd.f32 %v7985_v50, %v3194_v54 }
 0xb6d   :  { %v6693_v19 = vadd.f32 %v3125_v58, %v7978_v15 }
 0xb6e   :  { %v4084_v24 = vmul.f32 -1.442695, %v6692_v33 }
 0xb6f   :  { %v4085_v20 = vmul.f32 -1.442695, %v6693_v19 }
 0xb70   :  { %6831 = vpow2.f32 %v4084_v24 }
 0xb71   :  { %6833 = vpow2.f32 %v4085_v20 }
 0xb7a   :  { %v6832_v9 = vpop.eup %6831 }
 0xb7b   :  { %v3202_v55 = vadd.f32 1.0, %v6832_v9  ;;  %v6834_v3 = vpop.eup %6833  ;;  %v2109_v9 = vadd.f32 %v7963_v42, %v7987_v53 }
 0xb7c   :  { %v3209_v5 = vadd.f32 1.0, %v6834_v3 }
 0xb7d   :  { %6835 = vrcp.f32 %v3202_v55 }
 0xb7e   :  { %6837 = vrcp.f32 %v3209_v5 }
 0xb87   :  { %v6836_v22 = vpop.eup %6835 }
 0xb88   :  { %v3213_v23 = vmul.f32 %v6836_v22, %v3212_v8  ;;  %v6838_v41 = vpop.eup %6837 }
 0xb89   :  { %v3216_v43 = vsub.f32 1.0, %v6838_v41  ;;  %v3218_v14 = vmul.f32 %v6838_v41, %v8037_v12 }
 0xb8a   :  { %v3214_v35 = vadd.f32 %v3213_v23, %v1968_v16 }
 0xb8c   :  { %6839 = vtanh.f32 %v3214_v35 }
 0xb96   :  { %v6840_v44 = vpop.eup %6839 }
 0xb97   :  { %v3217_v6 = vmul.f32 %v6840_v44, %v3216_v43 }
 0xb99   :  { %v8082_v28 = vadd.f32 %v3218_v14, %v3217_v6 }
 0xb9b   :  { %3285 = vmatmul.mubr.f32.vlgmr.msra.gmra.mrb[22].mxu0 %v8082_v28  ;;  %5202 = vmatmul.mubr.f32.vlgmr.msra.gmra.mrb[38].mxu1 %v8082_v28 }
 0xb9c   :  { %6467 = vmatpush1.bf16.msra.mxu0 %v7841_v61  ;;  %6498 = vmatpush3.bf16.msra.mxu1 %v7843_v4 }
 0xb9d   :  { %6469 = vmatprep.subr.bf16.mxu0 %v7845_v11  ;;  %6499 = vmatprep.subr.bf16.mxu1 %v6991_v0 }
 0xb9e   :  { %3447 = vmatprep.mubr.f32.mxu0 %v6992_v1  ;;  %5236 = vmatprep.mubr.msk.f32.mxu1 %vm6993_vm0, %v6992_v1 }
 0xba0   :  { %6471 = vmatpush1.bf16.msra.mxu0 %v7848_v38  ;;  %6501 = vmatpush3.bf16.msra.mxu1 %v7851_v39 }
 0xba1   :  { %6473 = vmatprep.subr.bf16.mxu0 %v7854_v40  ;;  %6502 = vmatprep.subr.bf16.mxu1 %v6991_v0 }
 0xba4   :  { %6475 = vmatpush1.bf16.msra.mxu0 %v7861_v57  ;;  %6504 = vmatpush3.bf16.msra.mxu1 %v7864_v63 }
 0xba5   :  { %6477 = vmatprep.subr.bf16.mxu0 %v7867_v2  ;;  %6505 = vmatprep.subr.bf16.mxu1 %v6991_v0 }
 0xba8   :  { %6479 = vmatpush1.bf16.msra.mxu0 %v7871_v18  ;;  %6507 = vmatpush3.bf16.msra.mxu1 %v7874_v45 }
 0xba9   :  { %6481 = vmatprep.subr.bf16.mxu0 %v7877_v27  ;;  %6508 = vmatprep.subr.bf16.mxu1 %v6991_v0 }
 0xbac   :  { %6483 = vmatpush1.bf16.msra.mxu0 %v7881_v10  ;;  %6510 = vmatpush3.bf16.msra.mxu1 %v7884_v48 }
 0xbad   :  { %6485 = vmatprep.subr.bf16.mxu0 %v7887_v36  ;;  %6511 = vmatprep.subr.bf16.mxu1 %v6991_v0 }
 0xbb0   :  { %6487 = vmatpush1.bf16.msra.mxu0 %v7893_v21  ;;  %6513 = vmatpush3.bf16.msra.mxu1 %v7896_v32 }
 0xbb1   :  { %6489 = vmatprep.subr.bf16.mxu0 %v7899_v34  ;;  %6514 = vmatprep.subr.bf16.mxu1 %v6991_v0 }
 0xbb4   :  { %6491 = vmatpush1.bf16.msra.mxu0 %v7903_v52  ;;  %6516 = vmatpush3.bf16.msra.mxu1 %v7906_v59 }
 0xbb5   :  { %6493 = vmatprep.subr.bf16.mxu0 %v7909_v62  ;;  %6517 = vmatprep.subr.bf16.mxu1 %v6991_v0 }
 0xbb8   :  { %6495 = vmatpush1.bf16.msra.mxu0 %v7913_v30  ;;  %6519 = vmatpush3.bf16.msra.mxu1 %v7916_v31 }
 0xbb9   :  { %6521 = vmatprep.subr.bf16.mxu0 %v7834_v29  ;;  %6552 = vmatprep.subr.bf16.mxu1 %v6991_v0 }
 0xc6e   :  { %v3286_v37 = vpop.f32.mrb[22].mxu0  ;;  %v3357_v51 = vpop.f32.mrb[38].mxu1 }
 0xc6f   :  { %v6694_v46 = vadd.f32 %v3286_v37, %v7976_v25  ;;  %v3288_v49 = vpop.f32.mrb[23].mxu0  ;;  %v5203_v60 = vpop.f32.mrb[39].mxu1  ;;  %v3375_v19 = vadd.f32 %v7985_v50, %v3357_v51 }
 0xc70   :  { %v6695_v26 = vadd.f32 %v3288_v49, %v7978_v15 }
 0xc71   :  { %v4086_v12 = vmul.f32 -1.442695, %v6694_v46 }
 0xc72   :  { %v4087_v54 = vmul.f32 -1.442695, %v6695_v26 }
 0xc73   :  { %6841 = vpow2.f32 %v4086_v12 }
 0xc74   :  { %6843 = vpow2.f32 %v4087_v54  ;;  %v2250_v54 = vadd.f32 %v7965_v47, %v7987_v53 }
 0xc7d   :  { %v6842_v33 = vpop.eup %6841 }
 0xc7e   :  { %v3365_v58 = vadd.f32 1.0, %v6842_v33  ;;  %v6844_v17 = vpop.eup %6843 }
 0xc7f   :  { %v3372_v24 = vadd.f32 1.0, %v6844_v17 }
 0xc80   :  { %6845 = vrcp.f32 %v3365_v58 }
 0xc81   :  { %6847 = vrcp.f32 %v3372_v24 }
 0xc8a   :  { %v6846_v20 = vpop.eup %6845 }
 0xc8b   :  { %v3376_v55 = vmul.f32 %v6846_v20, %v3375_v19  ;;  %v6848_v5 = vpop.eup %6847 }
 0xc8c   :  { %v3379_v8 = vsub.f32 1.0, %v6848_v5  ;;  %v3381_v23 = vmul.f32 %v6848_v5, %v8082_v28 }
 0xc8d   :  { %v3377_v3 = vadd.f32 %v3376_v55, %v2109_v9 }
 0xc8f   :  { %6849 = vtanh.f32 %v3377_v3 }
 0xc99   :  { %v6850_v22 = vpop.eup %6849 }
 0xc9a   :  { %v3380_v16 = vmul.f32 %v6850_v22, %v3379_v8 }
 0xc9c   :  { %v8127_v35 = vadd.f32 %v3381_v23, %v3380_v16 }
 0xc9e   :  { %3448 = vmatmul.mubr.f32.vlgmr.msra.gmra.mrb[24].mxu0 %v8127_v35  ;;  %5237 = vmatmul.mubr.f32.vlgmr.msra.gmra.mrb[40].mxu1 %v8127_v35 }
 0xc9f   :  { %6523 = vmatpush1.bf16.msra.mxu0 %v7841_v61  ;;  %6554 = vmatpush3.bf16.msra.mxu1 %v7843_v4 }
 0xca0   :  { %6525 = vmatprep.subr.bf16.mxu0 %v7845_v11  ;;  %6555 = vmatprep.subr.bf16.mxu1 %v6991_v0 }
 0xca1   :  { %3610 = vmatprep.mubr.f32.mxu0 %v6992_v1  ;;  %5271 = vmatprep.mubr.msk.f32.mxu1 %vm6993_vm0, %v6992_v1 }
 0xca3   :  { %6527 = vmatpush1.bf16.msra.mxu0 %v7848_v38  ;;  %6557 = vmatpush3.bf16.msra.mxu1 %v7851_v39 }
 0xca4   :  { %6529 = vmatprep.subr.bf16.mxu0 %v7854_v40  ;;  %6558 = vmatprep.subr.bf16.mxu1 %v6991_v0 }
 0xca7   :  { %6531 = vmatpush1.bf16.msra.mxu0 %v7861_v57  ;;  %6560 = vmatpush3.bf16.msra.mxu1 %v7864_v63 }
 0xca8   :  { %6533 = vmatprep.subr.bf16.mxu0 %v7867_v2  ;;  %6561 = vmatprep.subr.bf16.mxu1 %v6991_v0 }
 0xcab   :  { %6535 = vmatpush1.bf16.msra.mxu0 %v7871_v18  ;;  %6563 = vmatpush3.bf16.msra.mxu1 %v7874_v45 }
 0xcac   :  { %6537 = vmatprep.subr.bf16.mxu0 %v7877_v27  ;;  %6564 = vmatprep.subr.bf16.mxu1 %v6991_v0 }
 0xcaf   :  { %6539 = vmatpush1.bf16.msra.mxu0 %v7881_v10  ;;  %6566 = vmatpush3.bf16.msra.mxu1 %v7884_v48 }
 0xcb0   :  { %6541 = vmatprep.subr.bf16.mxu0 %v7887_v36  ;;  %6567 = vmatprep.subr.bf16.mxu1 %v6991_v0 }
 0xcb3   :  { %6543 = vmatpush1.bf16.msra.mxu0 %v7893_v21  ;;  %6569 = vmatpush3.bf16.msra.mxu1 %v7896_v32 }
 0xcb4   :  { %6545 = vmatprep.subr.bf16.mxu0 %v7899_v34  ;;  %6570 = vmatprep.subr.bf16.mxu1 %v6991_v0 }
 0xcb7   :  { %6547 = vmatpush1.bf16.msra.mxu0 %v7903_v52  ;;  %6572 = vmatpush3.bf16.msra.mxu1 %v7906_v59 }
 0xcb8   :  { %6549 = vmatprep.subr.bf16.mxu0 %v7909_v62  ;;  %6573 = vmatprep.subr.bf16.mxu1 %v6991_v0 }
 0xcbb   :  { %6551 = vmatpush1.bf16.msra.mxu0 %v7913_v30  ;;  %6575 = vmatpush3.bf16.msra.mxu1 %v7916_v31 }
 0xcbc   :  { %6577 = vmatprep.subr.bf16.mxu0 %v7834_v29  ;;  %6608 = vmatprep.subr.bf16.mxu1 %v6991_v0 }
 0xd71   :  { %v3449_v42 = vpop.f32.mrb[24].mxu0  ;;  %v3520_v41 = vpop.f32.mrb[40].mxu1 }
 0xd72   :  { %v6696_v43 = vadd.f32 %v3449_v42, %v7976_v25  ;;  %v3451_v44 = vpop.f32.mrb[25].mxu0  ;;  %v5238_v6 = vpop.f32.mrb[41].mxu1  ;;  %v3538_v12 = vadd.f32 %v7985_v50, %v3520_v41 }
 0xd73   :  { %v6697_v28 = vadd.f32 %v3451_v44, %v7978_v15 }
 0xd74   :  { %v4088_v14 = vmul.f32 -1.442695, %v6696_v43 }
 0xd75   :  { %v4089_v37 = vmul.f32 -1.442695, %v6697_v28 }
 0xd76   :  { %6851 = vpow2.f32 %v4088_v14  ;;  %v2391_v14 = vadd.f32 %v7967_v56, %v7987_v53 }
 0xd77   :  { %6853 = vpow2.f32 %v4089_v37 }
 0xd80   :  { %v6852_v51 = vpop.eup %6851 }
 0xd81   :  { %v3528_v46 = vadd.f32 1.0, %v6852_v51  ;;  %v6854_v49 = vpop.eup %6853 }
 0xd82   :  { %v3535_v60 = vadd.f32 1.0, %v6854_v49 }
 0xd83   :  { %6855 = vrcp.f32 %v3528_v46 }
 0xd84   :  { %6857 = vrcp.f32 %v3535_v60 }
 0xd8d   :  { %v6856_v26 = vpop.eup %6855 }
 0xd8e   :  { %v3539_v33 = vmul.f32 %v6856_v26, %v3538_v12  ;;  %v6858_v17 = vpop.eup %6857 }
 0xd8f   :  { %v3542_v24 = vsub.f32 1.0, %v6858_v17  ;;  %v3544_v9 = vmul.f32 %v6858_v17, %v8127_v35 }
 0xd90   :  { %v3540_v58 = vadd.f32 %v3539_v33, %v2250_v54 }
 0xd92   :  { %6859 = vtanh.f32 %v3540_v58 }
 0xd9c   :  { %v6860_v19 = vpop.eup %6859 }
 0xd9d   :  { %v3543_v20 = vmul.f32 %v6860_v19, %v3542_v24 }
 0xd9f   :  { %v8172_v55 = vadd.f32 %v3544_v9, %v3543_v20 }
 0xda1   :  { %3611 = vmatmul.mubr.f32.vlgmr.msra.gmra.mrb[26].mxu0 %v8172_v55  ;;  %5272 = vmatmul.mubr.f32.vlgmr.msra.gmra.mrb[42].mxu1 %v8172_v55 }
 0xda2   :  { %6579 = vmatpush1.bf16.msra.mxu0 %v7841_v61  ;;  %6610 = vmatpush3.bf16.msra.mxu1 %v7843_v4 }
 0xda3   :  { %6581 = vmatprep.subr.bf16.mxu0 %v7845_v11  ;;  %6611 = vmatprep.subr.bf16.mxu1 %v6991_v0 }
 0xda4   :  { %3773 = vmatprep.mubr.f32.mxu0 %v6992_v1  ;;  %5306 = vmatprep.mubr.msk.f32.mxu1 %vm6993_vm0, %v6992_v1 }
 0xda6   :  { %6583 = vmatpush1.bf16.msra.mxu0 %v7848_v38  ;;  %6613 = vmatpush3.bf16.msra.mxu1 %v7851_v39 }
 0xda7   :  { %6585 = vmatprep.subr.bf16.mxu0 %v7854_v40  ;;  %6614 = vmatprep.subr.bf16.mxu1 %v6991_v0 }
 0xdaa   :  { %6587 = vmatpush1.bf16.msra.mxu0 %v7861_v57  ;;  %6616 = vmatpush3.bf16.msra.mxu1 %v7864_v63 }
 0xdab   :  { %6589 = vmatprep.subr.bf16.mxu0 %v7867_v2  ;;  %6617 = vmatprep.subr.bf16.mxu1 %v6991_v0 }
 0xdae   :  { %6591 = vmatpush1.bf16.msra.mxu0 %v7871_v18  ;;  %6619 = vmatpush3.bf16.msra.mxu1 %v7874_v45 }
 0xdaf   :  { %6593 = vmatprep.subr.bf16.mxu0 %v7877_v27  ;;  %6620 = vmatprep.subr.bf16.mxu1 %v6991_v0 }
 0xdb2   :  { %6595 = vmatpush1.bf16.msra.mxu0 %v7881_v10  ;;  %6622 = vmatpush3.bf16.msra.mxu1 %v7884_v48 }
 0xdb3   :  { %6597 = vmatprep.subr.bf16.mxu0 %v7887_v36  ;;  %6623 = vmatprep.subr.bf16.mxu1 %v6991_v0 }
 0xdb6   :  { %6599 = vmatpush1.bf16.msra.mxu0 %v7893_v21  ;;  %6625 = vmatpush3.bf16.msra.mxu1 %v7896_v32 }
 0xdb7   :  { %6601 = vmatprep.subr.bf16.mxu0 %v7899_v34  ;;  %6626 = vmatprep.subr.bf16.mxu1 %v6991_v0 }
 0xdba   :  { %6603 = vmatpush1.bf16.msra.mxu0 %v7903_v52  ;;  %6628 = vmatpush3.bf16.msra.mxu1 %v7906_v59 }
 0xdbb   :  { %6605 = vmatprep.subr.bf16.mxu0 %v7909_v62  ;;  %6629 = vmatprep.subr.bf16.mxu1 %v6991_v0 }
 0xdbe   :  { %6607 = vmatpush1.bf16.msra.mxu0 %v7913_v30  ;;  %6631 = vmatpush3.bf16.msra.mxu1 %v7916_v31 }
 0xdbf   :  { %6633 = vmatprep.subr.bf16.mxu0 %v7834_v29  ;;  %6664 = vmatprep.subr.bf16.mxu1 %v6991_v0 }
 0xe74   :  { %v3612_v47 = vpop.f32.mrb[26].mxu0  ;;  %v3683_v3 = vpop.f32.mrb[42].mxu1 }
 0xe75   :  { %v6698_v5 = vadd.f32 %v3612_v47, %v7976_v25  ;;  %v3614_v8 = vpop.f32.mrb[27].mxu0  ;;  %v5273_v22 = vpop.f32.mrb[43].mxu1  ;;  %v3701_v29 = vadd.f32 %v7985_v50, %v3683_v3  ;;  %v2673_v3 = vadd.f32 %v7971_v13, %v7987_v53 }
 0xe76   :  { %v6699_v23 = vadd.f32 %v3614_v8, %v7978_v15 }
 0xe77   :  { %v4090_v16 = vmul.f32 -1.442695, %v6698_v5 }
 0xe78   :  { %v4091_v35 = vmul.f32 -1.442695, %v6699_v23 }
 0xe79   :  { %6861 = vpow2.f32 %v4090_v16 }
 0xe7a   :  { %6863 = vpow2.f32 %v4091_v35 }
 0xe83   :  { %v6862_v42 = vpop.eup %6861 }
 0xe84   :  { %v3691_v41 = vadd.f32 1.0, %v6862_v42  ;;  %v6864_v43 = vpop.eup %6863 }
 0xe85   :  { %v3698_v44 = vadd.f32 1.0, %v6864_v43 }
 0xe86   :  { %6865 = vrcp.f32 %v3691_v41 }
 0xe87   :  { %6867 = vrcp.f32 %v3698_v44 }
 0xe90   :  { %v6866_v6 = vpop.eup %6865 }
 0xe91   :  { %v3702_v28 = vmul.f32 %v6866_v6, %v3701_v29  ;;  %v6868_v51 = vpop.eup %6867 }
 0xe92   :  { %v3705_v46 = vsub.f32 1.0, %v6868_v51  ;;  %v3707_v12 = vmul.f32 %v6868_v51, %v8172_v55 }
 0xe93   :  { %v3703_v37 = vadd.f32 %v3702_v28, %v2391_v14 }
 0xe95   :  { %6869 = vtanh.f32 %v3703_v37 }
 0xe9f   :  { %v6870_v49 = vpop.eup %6869 }
 0xea0   :  { %v3706_v60 = vmul.f32 %v6870_v49, %v3705_v46 }
 0xea2   :  { %v3708_v26 = vadd.f32 %v3707_v12, %v3706_v60 }
 0xea4   :  { %3774 = vmatmul.mubr.f32.vlgmr.msra.gmra.mrb[28].mxu0 %v3708_v26  ;;  %5307 = vmatmul.mubr.f32.vlgmr.msra.gmra.mrb[44].mxu1 %v3708_v26 }
 0xea5   :  { %6635 = vmatpush1.bf16.msra.mxu0 %v7841_v61  ;;  %6666 = vmatpush3.bf16.msra.mxu1 %v7843_v4 }
 0xea6   :  { %6637 = vmatprep.subr.bf16.mxu0 %v7845_v11  ;;  %6667 = vmatprep.subr.bf16.mxu1 %v6991_v0 }
 0xea7   :  { %3936 = vmatprep.mubr.f32.mxu0 %v6992_v1  ;;  %5341 = vmatprep.mubr.msk.f32.mxu1 %vm6993_vm0, %v6992_v1 }
 0xea9   :  { %6639 = vmatpush1.bf16.msra.mxu0 %v7848_v38  ;;  %6669 = vmatpush3.bf16.msra.mxu1 %v7851_v39 }
 0xeaa   :  { %6641 = vmatprep.subr.bf16.mxu0 %v7854_v40  ;;  %6670 = vmatprep.subr.bf16.mxu1 %v6991_v0 }
 0xead   :  { %6643 = vmatpush1.bf16.msra.mxu0 %v7861_v57  ;;  %6672 = vmatpush3.bf16.msra.mxu1 %v7864_v63 }
 0xeae   :  { %6645 = vmatprep.subr.bf16.mxu0 %v7867_v2  ;;  %6673 = vmatprep.subr.bf16.mxu1 %v6991_v0 }
 0xeb1   :  { %6647 = vmatpush1.bf16.msra.mxu0 %v7871_v18  ;;  %6675 = vmatpush3.bf16.msra.mxu1 %v7874_v45 }
 0xeb2   :  { %6649 = vmatprep.subr.bf16.mxu0 %v7877_v27  ;;  %6676 = vmatprep.subr.bf16.mxu1 %v6991_v0 }
 0xeb5   :  { %6651 = vmatpush1.bf16.msra.mxu0 %v7881_v10  ;;  %6678 = vmatpush3.bf16.msra.mxu1 %v7884_v48  ;;  %v2532_v10 = vadd.f32 %v7969_v7, %v7987_v53 }
 0xeb6   :  { %6653 = vmatprep.subr.bf16.mxu0 %v7887_v36  ;;  %6679 = vmatprep.subr.bf16.mxu1 %v6991_v0 }
 0xeb9   :  { %6655 = vmatpush1.bf16.msra.mxu0 %v7893_v21  ;;  %6681 = vmatpush3.bf16.msra.mxu1 %v7896_v32 }
 0xeba   :  { %6657 = vmatprep.subr.bf16.mxu0 %v7899_v34  ;;  %6682 = vmatprep.subr.bf16.mxu1 %v6991_v0 }
 0xebd   :  { %6659 = vmatpush1.bf16.msra.mxu0 %v7903_v52  ;;  %6684 = vmatpush3.bf16.msra.mxu1 %v7906_v59 }
 0xebe   :  { %6661 = vmatprep.subr.bf16.mxu0 %v7909_v62  ;;  %6685 = vmatprep.subr.bf16.mxu1 %v6991_v0 }
 0xec1   :  { %6663 = vmatpush1.bf16.msra.mxu0 %v7913_v30  ;;  %6687 = vmatpush3.bf16.msra.mxu1 %v7916_v31 }
 0xf77   :  { %v3775_v1 = vpop.f32.mrb[28].mxu0  ;;  %v3846_v61 = vpop.f32.mrb[44].mxu1 }
 0xf78   :  { %v6700_v4 = vadd.f32 %v3775_v1, %v7976_v25  ;;  %v3777_v11 = vpop.f32.mrb[29].mxu0  ;;  %v5308_v38 = vpop.f32.mrb[45].mxu1  ;;  %v3864_v45 = vadd.f32 %v7985_v50, %v3846_v61 }
 0xf79   :  { %v6701_v40 = vadd.f32 %v3777_v11, %v7978_v15 }
 0xf7a   :  { %v4092_v39 = vmul.f32 -1.442695, %v6700_v4 }
 0xf7b   :  { %v4093_v57 = vmul.f32 -1.442695, %v6701_v40 }
 0xf7c   :  { %6871 = vpow2.f32 %v4092_v39 }
 0xf7d   :  { %6873 = vpow2.f32 %v4093_v57 }
 0xf86   :  { %v6872_v63 = vpop.eup %6871 }
 0xf87   :  { %v3854_v2 = vadd.f32 1.0, %v6872_v63  ;;  %v6874_v0 = vpop.eup %6873 }
 0xf88   :  { %v3861_v18 = vadd.f32 1.0, %v6874_v0 }
 0xf89   :  { %6875 = vrcp.f32 %v3854_v2 }
 0xf8a   :  { %6877 = vrcp.f32 %v3861_v18 }
 0xf93   :  { %v6876_v27 = vpop.eup %6875 }
 0xf94   :  { %v3865_v48 = vmul.f32 %v6876_v27, %v3864_v45  ;;  %v6878_v21 = vpop.eup %6877 }
 0xf95   :  { %v3868_v32 = vsub.f32 1.0, %v6878_v21  ;;  %v3870_v59 = vmul.f32 %v6878_v21, %v3708_v26 }
 0xf96   :  { %v3866_v36 = vadd.f32 %v3865_v48, %v2532_v10 }
 0xf98   :  { %6879 = vtanh.f32 %v3866_v36 }
 0xfa2   :  { %v6880_v34 = vpop.eup %6879 }
 0xfa3   :  { %v3869_v52 = vmul.f32 %v6880_v34, %v3868_v32 }
 0xfa5   :  { %v3871_v62 = vadd.f32 %v3870_v59, %v3869_v52 }
 0xfa7   :  { %3937 = vmatmul.mubr.f32.vlgmr.msra.gmra.mrb[30].mxu0 %v3871_v62  ;;  %5342 = vmatmul.mubr.f32.vlgmr.msra.gmra.mrb[46].mxu1 %v3871_v62 }
0x107a   :  { %v3938_v30 = vpop.f32.mrb[30].mxu0  ;;  %v4009_v31 = vpop.f32.mrb[46].mxu1 }
0x107b   :  { %v6702_v56 = vadd.f32 %v3938_v30, %v7976_v25  ;;  %v3940_v54 = vpop.f32.mrb[31].mxu0  ;;  %v5343_v33 = vpop.f32.mrb[47].mxu1  ;;  %v4027_v55 = vadd.f32 %v7985_v50, %v4009_v31 }
0x107c   :  { %v6703_v7 = vadd.f32 %v3940_v54, %v7978_v15 }
0x107d   :  { %v4094_v58 = vmul.f32 -1.442695, %v6702_v56 }
0x107e   :  { %v4095_v17 = vmul.f32 -1.442695, %v6703_v7 }
0x107f   :  { %6881 = vpow2.f32 %v4094_v58 }
0x1080   :  { %6883 = vpow2.f32 %v4095_v17 }
0x1089   :  { %v6882_v24 = vpop.eup %6881 }
0x108a   :  { %v4017_v19 = vadd.f32 1.0, %v6882_v24  ;;  %v6884_v20 = vpop.eup %6883 }
0x108b   :  { %v4024_v9 = vadd.f32 1.0, %v6884_v20 }
0x108c   :  { %6885 = vrcp.f32 %v4017_v19 }
0x108d   :  { %6887 = vrcp.f32 %v4024_v9 }
0x1096   :  { %v6886_v47 = vpop.eup %6885 }
0x1097   :  { %v4028_v25 = vmul.f32 %v6886_v47, %v4027_v55  ;;  %v6888_v8 = vpop.eup %6887 }
0x1098   :  { %v4031_v15 = vsub.f32 1.0, %v6888_v8  ;;  %v4033_v23 = vmul.f32 %v6888_v8, %v3871_v62 }
0x1099   :  { %v4029_v5 = vadd.f32 %v4028_v25, %v2673_v3 }
0x109b   :  { %6889 = vtanh.f32 %v4029_v5 }
0x10a5   :  { %v6890_v22 = vpop.eup %6889 }
0x10a6   :  { %v4032_v16 = vmul.f32 %v6890_v22, %v4031_v15 }
0x10a8   :  { %v4034_v35 = vadd.f32 %v4033_v23, %v4032_v16 }
0x10aa   :  { %4036 = vst [vmem:[#allocation8 + $0x2] sm:$0x3] %v4034_v35 }
0x10ab   :  { %6969 = shalt.err (!%p6966_p0)
}
0x10ac   :  { %s6970_s27 = scalar_lea.hbm %s8279_s7, 64 }
0x10ad   :  { %p6971_p1 = scmp.ne.s32.totalorder %s8279_s7, %s6970_s27  ;;  %p6974_p2 = scmp.lt.u32.totalorder %s6970_s27, %s8279_s7 }
0x10af   :  { %p6976_p3 = pnand %p6974_p2, %p6971_p1 }
0x10b1   :  { %6979 = shalt.err (!%p6976_p3)
}
0x10b2   :  { %s6995_s17 = smov 32   ;;  %s6996_s18 = smov 2  }
0x10b3   :  { %4048 = dma.vmem_to_hbm [thread:$0]  %s4043_s11, 64, %s8279_s7, [#allocation4], %s6995_s17, %s6995_s17, %s6996_s18  }
0x10b4   :  { %6984 = dma.done.wait [#allocation4], 64  }
0x10b5   :  { %6985 = vsyncadd [#allocation4], 4294967232 }
0x10b6   :  { %4052 = vsyncpa [#allocation3], 1 }
0x10b7   :  { %4053 = vsyncpa [#allocation6], 1 }
0x10b8   :  { %4054 = vsyncpa [#allocation4], 1 }

</bundles_post_ra>
